<compile_context>
chip_gen: v5e
topology: v5e:2x2
jax: 0.10.0
libtpu: 0.0.40
codegen_flags: <defaults>
</compile_context>

<pallas_src>
import math
import functools

import jax
import jax.numpy as jnp
from jax.experimental import pallas as pl
from jax.experimental.pallas import tpu as pltpu

# ----------------------------- model config (small) -----------------------------
VOCAB = 16        # len(src_vocab)
VPAD = 128        # lane-dense padded vocab for the output head
D_MODEL = 32
N_LAYERS = 2
N_HEADS = 4
D_FF = 64
MAX_LEN = 10

BATCH = 2
SEQ = 8


# ----------------------------- fused kernel -----------------------------
def fused_decoder_kernel(
    ids_ref, prop_ref,
    emb_ref, pe_ref, mask_ref,
    sa_wq_ref, sa_wk_ref, sa_wv_ref, sa_bq_ref, sa_bk_ref, sa_bv_ref,
    sa_wo_ref, sa_bo_ref,
    pa_wv_ref, pa_bv_ref, pa_wo_ref, pa_bo_ref,
    ff_w1_ref, ff_b1_ref, ff_w2_ref, ff_b2_ref,
    n1_g_ref, n1_b_ref, n2_g_ref, n2_b_ref, n3_g_ref, n3_b_ref,
    out_w_ref, out_b_ref,
    out_ref,
    *, n_layers, n_heads, batch, seq,
):
    BS = batch * seq
    V, D = emb_ref.shape
    hd = D // n_heads

    def mxu(a, w_bf16):
        # a: [M, K] f32 activation, w_bf16: [K, N] pre-cast bf16 weight.
        # Only the activation is cast; f32 accumulation on the MXU.
        return jnp.dot(a.astype(jnp.bfloat16), w_bf16,
                       preferred_element_type=jnp.float32)

    def layer_norm(x2, g, b):  # f32 VPU math (v5e-safe)
        mu = jnp.mean(x2, axis=-1, keepdims=True)
        var = jnp.mean((x2 - mu) ** 2, axis=-1, keepdims=True)
        return (x2 - mu) * jax.lax.rsqrt(var + 1e-5) * g + b

    # ---- token embedding (exact one-hot bf16 matmul) + positional encoding ----
    ids = ids_ref[...]                                            # [B*S, 1] int32
    iota_v = jax.lax.broadcasted_iota(jnp.int32, (BS, V), 1)
    onehot = (ids == iota_v).astype(jnp.bfloat16)                 # 0/1 exact in bf16
    x2 = jnp.dot(onehot, emb_ref[...], preferred_element_type=jnp.float32)  # [B*S, D]
    x2 = (x2.reshape(batch, seq, D) + pe_ref[...][None, :, :]).reshape(BS, D)

    prop = prop_ref[...]                                          # [B, D] f32

    # Hoisted once: JAX does not CSE broadcast_in_dim, so don't rebuild per head/layer.
    mask_b = jnp.broadcast_to(mask_ref[...][None, :, :], (batch, seq, seq))

    for l in range(n_layers):                                     # unrolled layer loop
        # ---------------- self-attention (causal, multi-head) ----------------
        # Wq / bq are pre-scaled by 1/sqrt(hd) on the host.
        q3 = (mxu(x2, sa_wq_ref[l]) + sa_bq_ref[l]).reshape(batch, seq, D)
        k3 = (mxu(x2, sa_wk_ref[l]) + sa_bk_ref[l]).reshape(batch, seq, D)
        v3 = (mxu(x2, sa_wv_ref[l]) + sa_bv_ref[l]).reshape(batch, seq, D)
        wo_l = sa_wo_ref[l]                                       # [D, D] bf16
        sa = jnp.zeros((BS, D), jnp.float32)
        for h in range(n_heads):                                  # tiny unrolled head loop
            sl = slice(h * hd, (h + 1) * hd)
            qh, kh, vh = q3[:, :, sl], k3[:, :, sl], v3[:, :, sl]
            s = jnp.einsum('bqd,bkd->bqk', qh, kh,
                           preferred_element_type=jnp.float32)
            s = s + mask_b
            s = s - jnp.max(s, axis=-1, keepdims=True)
            p = jnp.exp(s)
            p = p * pl.reciprocal(jnp.sum(p, axis=-1, keepdims=True), approx=True)
            head = jnp.einsum('bqk,bkd->bqd', p, vh,
                              preferred_element_type=jnp.float32)  # [B, S, hd]
            # Fold the output projection per head: no lane-axis concat / relayout.
            sa = sa + mxu(head.reshape(BS, hd), wo_l[sl, :])
        sa = sa + sa_bo_ref[l]
        x2 = layer_norm(x2 + sa, n1_g_ref[l], n1_b_ref[l])

        # ---------------- property cross-attention (collapsed) ----------------
        # Keys/values are identical at every position (prop broadcast over S), so the
        # softmax is exactly uniform and the attention output is exactly
        # Wo(Wv(prop) + bv) + bo, independent of the query.
        pa_row = mxu(mxu(prop, pa_wv_ref[l]) + pa_bv_ref[l], pa_wo_ref[l]) + pa_bo_ref[l]
        pa = jnp.broadcast_to(pa_row[:, None, :], (batch, seq, D)).reshape(BS, D)
        x2 = layer_norm(x2 + pa, n2_g_ref[l], n2_b_ref[l])

        # ---------------- feed-forward ----------------
        hidden = jnp.maximum(mxu(x2, ff_w1_ref[l]) + ff_b1_ref[l], 0.0)
        ff = mxu(hidden, ff_w2_ref[l]) + ff_b2_ref[l]
        x2 = layer_norm(x2 + ff, n3_g_ref[l], n3_b_ref[l])

    # ---------------- output head: lane-dense padded vocab + log-softmax ----------------
    logits = mxu(x2, out_w_ref[...]) + out_b_ref[...]             # [B*S, VPAD]
    m = jnp.max(logits, axis=-1, keepdims=True)
    z = logits - m
    lse = jnp.log(jnp.sum(jnp.exp(z), axis=-1, keepdims=True))    # exact f32 normalization
    out_ref[...] = z - lse


# ----------------------------- one-time host-side prep -----------------------------
def make_positional_encoding(max_len, d_model):
    position = jnp.arange(max_len, dtype=jnp.float32)[:, None]
    div_term = jnp.exp(jnp.arange(0, d_model, 2, dtype=jnp.float32)
                       * (-math.log(10000.0) / d_model))
    pe = jnp.zeros((max_len, d_model), jnp.float32)
    pe = pe.at[:, 0::2].set(jnp.sin(position * div_term))
    pe = pe.at[:, 1::2].set(jnp.cos(position * div_term))
    return pe


def causal_mask(s):
    i = jnp.arange(s)[:, None]
    j = jnp.arange(s)[None, :]
    return jnp.where(j <= i, 0.0, -1e9).astype(jnp.float32)


def init_params(key):
    keys = iter(jax.random.split(key, 64))

    def nrm(shape, scale=0.05):
        return (scale * jax.random.normal(next(keys), shape)).astype(jnp.float32)

    zeros = lambda shape: jnp.zeros(shape, jnp.float32)
    ones = lambda shape: jnp.ones(shape, jnp.float32)

    params = {'emb': nrm((VOCAB, D_MODEL), 1.0), 'layers': []}
    for _ in range(N_LAYERS):
        params['layers'].append(dict(
            sa_win=nrm((3 * D_MODEL, D_MODEL)), sa_bin=zeros((1, 3 * D_MODEL)),
            sa_wo=nrm((D_MODEL, D_MODEL)), sa_bo=zeros((1, D_MODEL)),
            pa_win=nrm((3 * D_MODEL, D_MODEL)), pa_bin=zeros((1, 3 * D_MODEL)),
            pa_wo=nrm((D_MODEL, D_MODEL)), pa_bo=zeros((1, D_MODEL)),
            ff_w1=nrm((D_FF, D_MODEL)), ff_b1=zeros((1, D_FF)),
            ff_w2=nrm((D_MODEL, D_FF)), ff_b2=zeros((1, D_MODEL)),
            n1_g=ones((1, D_MODEL)), n1_b=zeros((1, D_MODEL)),
            n2_g=ones((1, D_MODEL)), n2_b=zeros((1, D_MODEL)),
            n3_g=ones((1, D_MODEL)), n3_b=zeros((1, D_MODEL)),
        ))
    params['out_w'] = nrm((VOCAB, D_MODEL))
    params['out_b'] = zeros((1, VOCAB))
    return params


def prepare_params(params, seq):
    """One-time prep: stack per-layer weights to [L, in, out], pre-cast matmul weights to
    bf16, fold the attention scale into Wq/bq, build PE / mask / padded output head."""
    D = D_MODEL
    layers = params['layers']
    scale = 1.0 / math.sqrt(D // N_HEADS)

    def stack_t(key, sl=None, mult=1.0):
        ws = [(l[key] if sl is None else l[key][sl]) for l in layers]
        return (jnp.stack([w.T for w in ws]) * mult).astype(jnp.bfloat16)   # [L, in, out]

    def stack_b(key, sl=None, mult=1.0):
        return jnp.stack([(l[key] if sl is None else l[key][:, sl])
                          for l in layers]) * mult                          # [L, 1, out] f32

    sa_wq = stack_t('sa_win', slice(0, D), scale)          # scale folded into Wq
    sa_wk = stack_t('sa_win', slice(D, 2 * D))
    sa_wv = stack_t('sa_win', slice(2 * D, 3 * D))
    sa_bq = stack_b('sa_bin', slice(0, D), scale)          # ... and into bq
    sa_bk = stack_b('sa_bin', slice(D, 2 * D))
    sa_bv = stack_b('sa_bin', slice(2 * D, 3 * D))
    sa_wo = stack_t('sa_wo'); sa_bo = stack_b('sa_bo')
    pa_wv = stack_t('pa_win', slice(2 * D, 3 * D))
    pa_bv = stack_b('pa_bin', slice(2 * D, 3 * D))
    pa_wo = stack_t('pa_wo'); pa_bo = stack_b('pa_bo')
    ff_w1 = stack_t('ff_w1'); ff_b1 = stack_b('ff_b1')
    ff_w2 = stack_t('ff_w2'); ff_b2 = stack_b('ff_b2')
    n1_g = stack_b('n1_g'); n1_b = stack_b('n1_b')
    n2_g = stack_b('n2_g'); n2_b = stack_b('n2_b')
    n3_g = stack_b('n3_g'); n3_b = stack_b('n3_b')

    emb = params['emb'].astype(jnp.bfloat16)
    pe = make_positional_encoding(MAX_LEN, D)[:seq]         # [S, D] f32
    mask = causal_mask(seq)                                 # [S, S] f32

    # Lane-dense output head: pad vocab to 128; padded bias -1e9 so log-softmax ignores it.
    out_w_pad = (jnp.zeros((D, VPAD), jnp.float32)
                 .at[:, :VOCAB].set(params['out_w'].T)).astype(jnp.bfloat16)
    out_b_pad = jnp.full((1, VPAD), -1e9, jnp.float32).at[:, :VOCAB].set(params['out_b'])

    return (
        emb, pe, mask,
        sa_wq, sa_wk, sa_wv, sa_bq, sa_bk, sa_bv, sa_wo, sa_bo,
        pa_wv, pa_bv, pa_wo, pa_bo,
        ff_w1, ff_b1, ff_w2, ff_b2,
        n1_g, n1_b, n2_g, n2_b, n3_g, n3_b,
        out_w_pad, out_b_pad,
    )


# ----------------------------- per-call forward -----------------------------
@jax.jit
def sequence_decoder_forward(prepped, tgt_seq, prop_encoding):
    """prepped: output of prepare_params; tgt_seq: [B, S] int32; prop_encoding: [B, D].
    Returns log-probs [B, S, VOCAB]."""
    B, S = tgt_seq.shape
    ids = tgt_seq.reshape(B * S, 1).astype(jnp.int32)
    prop = prop_encoding.astype(jnp.float32)

    kernel = functools.partial(fused_decoder_kernel,
                               n_layers=N_LAYERS, n_heads=N_HEADS, batch=B, seq=S)

    inputs = (ids, prop) + tuple(prepped)

    # Single fused gridless pallas_call: everything fits comfortably in VMEM (<1 MiB), so
    # each operand is one whole-array VMEM block.
    # (When B/S grow, add a leading grid axis over batch with
    #  dimension_semantics=("parallel",) to use the second TensorCore on v7x.)
    out = pl.pallas_call(
        kernel,
        out_shape=jax.ShapeDtypeStruct((B * S, VPAD), jnp.float32),
        in_specs=[pl.BlockSpec(memory_space=pltpu.MemorySpace.VMEM)] * len(inputs),
        out_specs=pl.BlockSpec(memory_space=pltpu.MemorySpace.VMEM),
    )(*inputs)

    return out.reshape(B, S, VPAD)[:, :, :VOCAB]


# ----------------------------- main -----------------------------
if __name__ == "__main__":
    key = jax.random.PRNGKey(0)
    k_params, k_seq, k_prop = jax.random.split(key, 3)

    params = init_params(k_params)
    prepped = prepare_params(params, SEQ)          # one-time weight prep (not per-call)

    tgt_seq = jax.random.randint(k_seq, (BATCH, SEQ), 0, VOCAB, dtype=jnp.int32)
    prop_encoding = jax.random.normal(k_prop, (BATCH, D_MODEL), dtype=jnp.float32)

    out = sequence_decoder_forward(prepped, tgt_seq, prop_encoding)
    out = jax.block_until_ready(out)

    assert out.shape == (BATCH, SEQ, VOCAB)
    assert bool(jnp.all(jnp.isfinite(out)))
    # log_softmax rows must (log-)sum to ~0
    row_lse = jax.scipy.special.logsumexp(out, axis=-1)
    assert bool(jnp.max(jnp.abs(row_lse)) < 1e-4)

    print("KERNEL_OK")
</pallas_src>

<mosaic_0001>
module attributes {stable_mosaic.version = 11 : i64} {
  func.func @fused_decoder_kernel(%arg0: memref<16x1xi32, #tpu.memory_space<vmem>>, %arg1: memref<2x32xf32, #tpu.memory_space<vmem>>, %arg2: memref<16x32xbf16, #tpu.memory_space<vmem>>, %arg3: memref<8x32xf32, #tpu.memory_space<vmem>>, %arg4: memref<8x8xf32, #tpu.memory_space<vmem>>, %arg5: memref<2x32x32xbf16, #tpu.memory_space<vmem>>, %arg6: memref<2x32x32xbf16, #tpu.memory_space<vmem>>, %arg7: memref<2x32x32xbf16, #tpu.memory_space<vmem>>, %arg8: memref<2x1x32xf32, #tpu.memory_space<vmem>>, %arg9: memref<2x1x32xf32, #tpu.memory_space<vmem>>, %arg10: memref<2x1x32xf32, #tpu.memory_space<vmem>>, %arg11: memref<2x32x32xbf16, #tpu.memory_space<vmem>>, %arg12: memref<2x1x32xf32, #tpu.memory_space<vmem>>, %arg13: memref<2x32x32xbf16, #tpu.memory_space<vmem>>, %arg14: memref<2x1x32xf32, #tpu.memory_space<vmem>>, %arg15: memref<2x32x32xbf16, #tpu.memory_space<vmem>>, %arg16: memref<2x1x32xf32, #tpu.memory_space<vmem>>, %arg17: memref<2x32x64xbf16, #tpu.memory_space<vmem>>, %arg18: memref<2x1x64xf32, #tpu.memory_space<vmem>>, %arg19: memref<2x64x32xbf16, #tpu.memory_space<vmem>>, %arg20: memref<2x1x32xf32, #tpu.memory_space<vmem>>, %arg21: memref<2x1x32xf32, #tpu.memory_space<vmem>>, %arg22: memref<2x1x32xf32, #tpu.memory_space<vmem>>, %arg23: memref<2x1x32xf32, #tpu.memory_space<vmem>>, %arg24: memref<2x1x32xf32, #tpu.memory_space<vmem>>, %arg25: memref<2x1x32xf32, #tpu.memory_space<vmem>>, %arg26: memref<2x1x32xf32, #tpu.memory_space<vmem>>, %arg27: memref<32x128xbf16, #tpu.memory_space<vmem>>, %arg28: memref<1x128xf32, #tpu.memory_space<vmem>>, %arg29: memref<16x128xf32, #tpu.memory_space<vmem>>) attributes {dimension_semantics = [], scalar_prefetch = 0 : i64, scratch_operands = 0 : i64, tpu.core_type = #tpu.core_type<tc>} {
    %c0 = arith.constant 0 : index
    %c0_0 = arith.constant 0 : index
    %0 = vector.load %arg0[%c0, %c0_0] : memref<16x1xi32, #tpu.memory_space<vmem>>, vector<16x1xi32>
    %1 = tpu.iota {dimensions = array<i32: 1>} : vector<16x16xi32>
    %2 = vector.broadcast %0 : vector<16x1xi32> to vector<16x16xi32>
    %3 = arith.cmpi eq, %2, %1 : vector<16x16xi32>
    %4 = arith.extui %3 : vector<16x16xi1> to vector<16x16xi32>
    %5 = arith.sitofp %4 : vector<16x16xi32> to vector<16x16xf32>
    %6 = arith.truncf %5 : vector<16x16xf32> to vector<16x16xbf16>
    %c0_1 = arith.constant 0 : index
    %c0_2 = arith.constant 0 : index
    %7 = vector.load %arg2[%c0_1, %c0_2] : memref<16x32xbf16, #tpu.memory_space<vmem>>, vector<16x32xbf16>
    %cst = arith.constant dense<0.000000e+00> : vector<16x32xf32>
    %8 = tpu.matmul %6, %7, %cst {dimension_numbers = #tpu.dot_dimension_numbers<[1], [0], [0], [1], [0, 0, 1, 1], [], []>} : vector<16x16xbf16>, vector<16x32xbf16>, vector<16x32xf32> -> vector<16x32xf32>
    %9 = vector.shape_cast %8 : vector<16x32xf32> to vector<2x8x32xf32>
    %c0_3 = arith.constant 0 : index
    %c0_4 = arith.constant 0 : index
    %10 = vector.load %arg3[%c0_3, %c0_4] : memref<8x32xf32, #tpu.memory_space<vmem>>, vector<8x32xf32>
    %11 = vector.shape_cast %10 : vector<8x32xf32> to vector<1x8x32xf32>
    %12 = vector.broadcast %11 : vector<1x8x32xf32> to vector<2x8x32xf32>
    %13 = arith.addf %9, %12 : vector<2x8x32xf32>
    %14 = vector.shape_cast %13 : vector<2x8x32xf32> to vector<16x32xf32>
    %c0_5 = arith.constant 0 : index
    %c0_6 = arith.constant 0 : index
    %15 = vector.load %arg1[%c0_5, %c0_6] : memref<2x32xf32, #tpu.memory_space<vmem>>, vector<2x32xf32>
    %c0_7 = arith.constant 0 : index
    %c0_8 = arith.constant 0 : index
    %16 = vector.load %arg4[%c0_7, %c0_8] : memref<8x8xf32, #tpu.memory_space<vmem>>, vector<8x8xf32>
    %17 = vector.shape_cast %16 : vector<8x8xf32> to vector<1x8x8xf32>
    %18 = vector.shape_cast %17 : vector<1x8x8xf32> to vector<1x8x8xf32>
    %19 = vector.broadcast %18 : vector<1x8x8xf32> to vector<2x8x8xf32>
    %c0_9 = arith.constant 0 : index
    %c0_10 = arith.constant 0 : index
    %c0_11 = arith.constant 0 : index
    %20 = vector.load %arg5[%c0_9, %c0_10, %c0_11] : memref<2x32x32xbf16, #tpu.memory_space<vmem>>, vector<1x32x32xbf16>
    %21 = vector.shape_cast %20 : vector<1x32x32xbf16> to vector<32x32xbf16>
    %22 = arith.truncf %14 : vector<16x32xf32> to vector<16x32xbf16>
    %cst_12 = arith.constant dense<0.000000e+00> : vector<16x32xf32>
    %23 = tpu.matmul %22, %21, %cst_12 {dimension_numbers = #tpu.dot_dimension_numbers<[1], [0], [0], [1], [0, 0, 1, 1], [], []>} : vector<16x32xbf16>, vector<32x32xbf16>, vector<16x32xf32> -> vector<16x32xf32>
    %c0_13 = arith.constant 0 : index
    %c0_14 = arith.constant 0 : index
    %c0_15 = arith.constant 0 : index
    %24 = vector.load %arg8[%c0_13, %c0_14, %c0_15] : memref<2x1x32xf32, #tpu.memory_space<vmem>>, vector<1x1x32xf32>
    %25 = vector.shape_cast %24 : vector<1x1x32xf32> to vector<1x32xf32>
    %26 = vector.broadcast %25 : vector<1x32xf32> to vector<16x32xf32>
    %27 = arith.addf %23, %26 : vector<16x32xf32>
    %28 = vector.shape_cast %27 : vector<16x32xf32> to vector<2x8x32xf32>
    %c0_16 = arith.constant 0 : index
    %c0_17 = arith.constant 0 : index
    %c0_18 = arith.constant 0 : index
    %29 = vector.load %arg6[%c0_16, %c0_17, %c0_18] : memref<2x32x32xbf16, #tpu.memory_space<vmem>>, vector<1x32x32xbf16>
    %30 = vector.shape_cast %29 : vector<1x32x32xbf16> to vector<32x32xbf16>
    %31 = arith.truncf %14 : vector<16x32xf32> to vector<16x32xbf16>
    %cst_19 = arith.constant dense<0.000000e+00> : vector<16x32xf32>
    %32 = tpu.matmul %31, %30, %cst_19 {dimension_numbers = #tpu.dot_dimension_numbers<[1], [0], [0], [1], [0, 0, 1, 1], [], []>} : vector<16x32xbf16>, vector<32x32xbf16>, vector<16x32xf32> -> vector<16x32xf32>
    %c0_20 = arith.constant 0 : index
    %c0_21 = arith.constant 0 : index
    %c0_22 = arith.constant 0 : index
    %33 = vector.load %arg9[%c0_20, %c0_21, %c0_22] : memref<2x1x32xf32, #tpu.memory_space<vmem>>, vector<1x1x32xf32>
    %34 = vector.shape_cast %33 : vector<1x1x32xf32> to vector<1x32xf32>
    %35 = vector.broadcast %34 : vector<1x32xf32> to vector<16x32xf32>
    %36 = arith.addf %32, %35 : vector<16x32xf32>
    %37 = vector.shape_cast %36 : vector<16x32xf32> to vector<2x8x32xf32>
    %c0_23 = arith.constant 0 : index
    %c0_24 = arith.constant 0 : index
    %c0_25 = arith.constant 0 : index
    %38 = vector.load %arg7[%c0_23, %c0_24, %c0_25] : memref<2x32x32xbf16, #tpu.memory_space<vmem>>, vector<1x32x32xbf16>
    %39 = vector.shape_cast %38 : vector<1x32x32xbf16> to vector<32x32xbf16>
    %40 = arith.truncf %14 : vector<16x32xf32> to vector<16x32xbf16>
    %cst_26 = arith.constant dense<0.000000e+00> : vector<16x32xf32>
    %41 = tpu.matmul %40, %39, %cst_26 {dimension_numbers = #tpu.dot_dimension_numbers<[1], [0], [0], [1], [0, 0, 1, 1], [], []>} : vector<16x32xbf16>, vector<32x32xbf16>, vector<16x32xf32> -> vector<16x32xf32>
    %c0_27 = arith.constant 0 : index
    %c0_28 = arith.constant 0 : index
    %c0_29 = arith.constant 0 : index
    %42 = vector.load %arg10[%c0_27, %c0_28, %c0_29] : memref<2x1x32xf32, #tpu.memory_space<vmem>>, vector<1x1x32xf32>
    %43 = vector.shape_cast %42 : vector<1x1x32xf32> to vector<1x32xf32>
    %44 = vector.broadcast %43 : vector<1x32xf32> to vector<16x32xf32>
    %45 = arith.addf %41, %44 : vector<16x32xf32>
    %46 = vector.shape_cast %45 : vector<16x32xf32> to vector<2x8x32xf32>
    %c0_30 = arith.constant 0 : index
    %c0_31 = arith.constant 0 : index
    %c0_32 = arith.constant 0 : index
    %47 = vector.load %arg11[%c0_30, %c0_31, %c0_32] : memref<2x32x32xbf16, #tpu.memory_space<vmem>>, vector<1x32x32xbf16>
    %48 = vector.shape_cast %47 : vector<1x32x32xbf16> to vector<32x32xbf16>
    %cst_33 = arith.constant 0.000000e+00 : f32
    %49 = vector.broadcast %cst_33 : f32 to vector<16x32xf32>
    %50 = vector.extract_strided_slice %28 {offsets = [0, 0, 0], sizes = [2, 8, 8], strides = [1, 1, 1]} : vector<2x8x32xf32> to vector<2x8x8xf32>
    %51 = vector.extract_strided_slice %37 {offsets = [0, 0, 0], sizes = [2, 8, 8], strides = [1, 1, 1]} : vector<2x8x32xf32> to vector<2x8x8xf32>
    %52 = vector.extract_strided_slice %46 {offsets = [0, 0, 0], sizes = [2, 8, 8], strides = [1, 1, 1]} : vector<2x8x32xf32> to vector<2x8x8xf32>
    "tpu.trace_start"() <{level = 10 : i32, message = "bqd,bkd->bqk"}> : () -> ()
    %cst_34 = arith.constant dense<0.000000e+00> : vector<2x8x8xf32>
    %53 = tpu.matmul %50, %51, %cst_34 {dimension_numbers = #tpu.dot_dimension_numbers<[2], [2], [1], [1], [0, 0, 0, 1, 1, 1], [0], [0]>} : vector<2x8x8xf32>, vector<2x8x8xf32>, vector<2x8x8xf32> -> vector<2x8x8xf32>
    "tpu.trace_stop"() : () -> ()
    %54 = arith.addf %53, %19 : vector<2x8x8xf32>
    %cst_35 = arith.constant dense<0xFF800000> : vector<2x8xf32>
    %55 = vector.multi_reduction <maximumf>, %54, %cst_35 [2] : vector<2x8x8xf32> to vector<2x8xf32>
    %56 = vector.shape_cast %55 : vector<2x8xf32> to vector<2x8x1xf32>
    %57 = vector.broadcast %56 : vector<2x8x1xf32> to vector<2x8x8xf32>
    %58 = arith.subf %54, %57 : vector<2x8x8xf32>
    %59 = math.exp %58 : vector<2x8x8xf32>
    %cst_36 = arith.constant dense<0.000000e+00> : vector<2x8xf32>
    %60 = vector.multi_reduction <add>, %59, %cst_36 [2] : vector<2x8x8xf32> to vector<2x8xf32>
    %61 = vector.shape_cast %60 : vector<2x8xf32> to vector<2x8x1xf32>
    %62 = tpu.reciprocal %61 {approx = true} : vector<2x8x1xf32> -> vector<2x8x1xf32>
    %63 = vector.broadcast %62 : vector<2x8x1xf32> to vector<2x8x8xf32>
    %64 = arith.mulf %59, %63 : vector<2x8x8xf32>
    "tpu.trace_start"() <{level = 10 : i32, message = "bqk,bkd->bqd"}> : () -> ()
    %cst_37 = arith.constant dense<0.000000e+00> : vector<2x8x8xf32>
    %65 = tpu.matmul %64, %52, %cst_37 {dimension_numbers = #tpu.dot_dimension_numbers<[2], [1], [1], [2], [0, 0, 0, 1, 1, 2], [0], [0]>} : vector<2x8x8xf32>, vector<2x8x8xf32>, vector<2x8x8xf32> -> vector<2x8x8xf32>
    "tpu.trace_stop"() : () -> ()
    %66 = vector.shape_cast %65 : vector<2x8x8xf32> to vector<16x8xf32>
    %67 = vector.extract_strided_slice %48 {offsets = [0, 0], sizes = [8, 32], strides = [1, 1]} : vector<32x32xbf16> to vector<8x32xbf16>
    %68 = arith.truncf %66 : vector<16x8xf32> to vector<16x8xbf16>
    %cst_38 = arith.constant dense<0.000000e+00> : vector<16x32xf32>
    %69 = tpu.matmul %68, %67, %cst_38 {dimension_numbers = #tpu.dot_dimension_numbers<[1], [0], [0], [1], [0, 0, 1, 1], [], []>} : vector<16x8xbf16>, vector<8x32xbf16>, vector<16x32xf32> -> vector<16x32xf32>
    %70 = arith.addf %49, %69 : vector<16x32xf32>
    %71 = vector.extract_strided_slice %28 {offsets = [0, 0, 8], sizes = [2, 8, 8], strides = [1, 1, 1]} : vector<2x8x32xf32> to vector<2x8x8xf32>
    %72 = vector.extract_strided_slice %37 {offsets = [0, 0, 8], sizes = [2, 8, 8], strides = [1, 1, 1]} : vector<2x8x32xf32> to vector<2x8x8xf32>
    %73 = vector.extract_strided_slice %46 {offsets = [0, 0, 8], sizes = [2, 8, 8], strides = [1, 1, 1]} : vector<2x8x32xf32> to vector<2x8x8xf32>
    "tpu.trace_start"() <{level = 10 : i32, message = "bqd,bkd->bqk"}> : () -> ()
    %cst_39 = arith.constant dense<0.000000e+00> : vector<2x8x8xf32>
    %74 = tpu.matmul %71, %72, %cst_39 {dimension_numbers = #tpu.dot_dimension_numbers<[2], [2], [1], [1], [0, 0, 0, 1, 1, 1], [0], [0]>} : vector<2x8x8xf32>, vector<2x8x8xf32>, vector<2x8x8xf32> -> vector<2x8x8xf32>
    "tpu.trace_stop"() : () -> ()
    %75 = arith.addf %74, %19 : vector<2x8x8xf32>
    %cst_40 = arith.constant dense<0xFF800000> : vector<2x8xf32>
    %76 = vector.multi_reduction <maximumf>, %75, %cst_40 [2] : vector<2x8x8xf32> to vector<2x8xf32>
    %77 = vector.shape_cast %76 : vector<2x8xf32> to vector<2x8x1xf32>
    %78 = vector.broadcast %77 : vector<2x8x1xf32> to vector<2x8x8xf32>
    %79 = arith.subf %75, %78 : vector<2x8x8xf32>
    %80 = math.exp %79 : vector<2x8x8xf32>
    %cst_41 = arith.constant dense<0.000000e+00> : vector<2x8xf32>
    %81 = vector.multi_reduction <add>, %80, %cst_41 [2] : vector<2x8x8xf32> to vector<2x8xf32>
    %82 = vector.shape_cast %81 : vector<2x8xf32> to vector<2x8x1xf32>
    %83 = tpu.reciprocal %82 {approx = true} : vector<2x8x1xf32> -> vector<2x8x1xf32>
    %84 = vector.broadcast %83 : vector<2x8x1xf32> to vector<2x8x8xf32>
    %85 = arith.mulf %80, %84 : vector<2x8x8xf32>
    "tpu.trace_start"() <{level = 10 : i32, message = "bqk,bkd->bqd"}> : () -> ()
    %cst_42 = arith.constant dense<0.000000e+00> : vector<2x8x8xf32>
    %86 = tpu.matmul %85, %73, %cst_42 {dimension_numbers = #tpu.dot_dimension_numbers<[2], [1], [1], [2], [0, 0, 0, 1, 1, 2], [0], [0]>} : vector<2x8x8xf32>, vector<2x8x8xf32>, vector<2x8x8xf32> -> vector<2x8x8xf32>
    "tpu.trace_stop"() : () -> ()
    %87 = vector.shape_cast %86 : vector<2x8x8xf32> to vector<16x8xf32>
    %88 = vector.extract_strided_slice %48 {offsets = [8, 0], sizes = [8, 32], strides = [1, 1]} : vector<32x32xbf16> to vector<8x32xbf16>
    %89 = arith.truncf %87 : vector<16x8xf32> to vector<16x8xbf16>
    %cst_43 = arith.constant dense<0.000000e+00> : vector<16x32xf32>
    %90 = tpu.matmul %89, %88, %cst_43 {dimension_numbers = #tpu.dot_dimension_numbers<[1], [0], [0], [1], [0, 0, 1, 1], [], []>} : vector<16x8xbf16>, vector<8x32xbf16>, vector<16x32xf32> -> vector<16x32xf32>
    %91 = arith.addf %70, %90 : vector<16x32xf32>
    %92 = vector.extract_strided_slice %28 {offsets = [0, 0, 16], sizes = [2, 8, 8], strides = [1, 1, 1]} : vector<2x8x32xf32> to vector<2x8x8xf32>
    %93 = vector.extract_strided_slice %37 {offsets = [0, 0, 16], sizes = [2, 8, 8], strides = [1, 1, 1]} : vector<2x8x32xf32> to vector<2x8x8xf32>
    %94 = vector.extract_strided_slice %46 {offsets = [0, 0, 16], sizes = [2, 8, 8], strides = [1, 1, 1]} : vector<2x8x32xf32> to vector<2x8x8xf32>
    "tpu.trace_start"() <{level = 10 : i32, message = "bqd,bkd->bqk"}> : () -> ()
    %cst_44 = arith.constant dense<0.000000e+00> : vector<2x8x8xf32>
    %95 = tpu.matmul %92, %93, %cst_44 {dimension_numbers = #tpu.dot_dimension_numbers<[2], [2], [1], [1], [0, 0, 0, 1, 1, 1], [0], [0]>} : vector<2x8x8xf32>, vector<2x8x8xf32>, vector<2x8x8xf32> -> vector<2x8x8xf32>
    "tpu.trace_stop"() : () -> ()
    %96 = arith.addf %95, %19 : vector<2x8x8xf32>
    %cst_45 = arith.constant dense<0xFF800000> : vector<2x8xf32>
    %97 = vector.multi_reduction <maximumf>, %96, %cst_45 [2] : vector<2x8x8xf32> to vector<2x8xf32>
    %98 = vector.shape_cast %97 : vector<2x8xf32> to vector<2x8x1xf32>
    %99 = vector.broadcast %98 : vector<2x8x1xf32> to vector<2x8x8xf32>
    %100 = arith.subf %96, %99 : vector<2x8x8xf32>
    %101 = math.exp %100 : vector<2x8x8xf32>
    %cst_46 = arith.constant dense<0.000000e+00> : vector<2x8xf32>
    %102 = vector.multi_reduction <add>, %101, %cst_46 [2] : vector<2x8x8xf32> to vector<2x8xf32>
    %103 = vector.shape_cast %102 : vector<2x8xf32> to vector<2x8x1xf32>
    %104 = tpu.reciprocal %103 {approx = true} : vector<2x8x1xf32> -> vector<2x8x1xf32>
    %105 = vector.broadcast %104 : vector<2x8x1xf32> to vector<2x8x8xf32>
    %106 = arith.mulf %101, %105 : vector<2x8x8xf32>
    "tpu.trace_start"() <{level = 10 : i32, message = "bqk,bkd->bqd"}> : () -> ()
    %cst_47 = arith.constant dense<0.000000e+00> : vector<2x8x8xf32>
    %107 = tpu.matmul %106, %94, %cst_47 {dimension_numbers = #tpu.dot_dimension_numbers<[2], [1], [1], [2], [0, 0, 0, 1, 1, 2], [0], [0]>} : vector<2x8x8xf32>, vector<2x8x8xf32>, vector<2x8x8xf32> -> vector<2x8x8xf32>
    "tpu.trace_stop"() : () -> ()
    %108 = vector.shape_cast %107 : vector<2x8x8xf32> to vector<16x8xf32>
    %109 = vector.extract_strided_slice %48 {offsets = [16, 0], sizes = [8, 32], strides = [1, 1]} : vector<32x32xbf16> to vector<8x32xbf16>
    %110 = arith.truncf %108 : vector<16x8xf32> to vector<16x8xbf16>
    %cst_48 = arith.constant dense<0.000000e+00> : vector<16x32xf32>
    %111 = tpu.matmul %110, %109, %cst_48 {dimension_numbers = #tpu.dot_dimension_numbers<[1], [0], [0], [1], [0, 0, 1, 1], [], []>} : vector<16x8xbf16>, vector<8x32xbf16>, vector<16x32xf32> -> vector<16x32xf32>
    %112 = arith.addf %91, %111 : vector<16x32xf32>
    %113 = vector.extract_strided_slice %28 {offsets = [0, 0, 24], sizes = [2, 8, 8], strides = [1, 1, 1]} : vector<2x8x32xf32> to vector<2x8x8xf32>
    %114 = vector.extract_strided_slice %37 {offsets = [0, 0, 24], sizes = [2, 8, 8], strides = [1, 1, 1]} : vector<2x8x32xf32> to vector<2x8x8xf32>
    %115 = vector.extract_strided_slice %46 {offsets = [0, 0, 24], sizes = [2, 8, 8], strides = [1, 1, 1]} : vector<2x8x32xf32> to vector<2x8x8xf32>
    "tpu.trace_start"() <{level = 10 : i32, message = "bqd,bkd->bqk"}> : () -> ()
    %cst_49 = arith.constant dense<0.000000e+00> : vector<2x8x8xf32>
    %116 = tpu.matmul %113, %114, %cst_49 {dimension_numbers = #tpu.dot_dimension_numbers<[2], [2], [1], [1], [0, 0, 0, 1, 1, 1], [0], [0]>} : vector<2x8x8xf32>, vector<2x8x8xf32>, vector<2x8x8xf32> -> vector<2x8x8xf32>
    "tpu.trace_stop"() : () -> ()
    %117 = arith.addf %116, %19 : vector<2x8x8xf32>
    %cst_50 = arith.constant dense<0xFF800000> : vector<2x8xf32>
    %118 = vector.multi_reduction <maximumf>, %117, %cst_50 [2] : vector<2x8x8xf32> to vector<2x8xf32>
    %119 = vector.shape_cast %118 : vector<2x8xf32> to vector<2x8x1xf32>
    %120 = vector.broadcast %119 : vector<2x8x1xf32> to vector<2x8x8xf32>
    %121 = arith.subf %117, %120 : vector<2x8x8xf32>
    %122 = math.exp %121 : vector<2x8x8xf32>
    %cst_51 = arith.constant dense<0.000000e+00> : vector<2x8xf32>
    %123 = vector.multi_reduction <add>, %122, %cst_51 [2] : vector<2x8x8xf32> to vector<2x8xf32>
    %124 = vector.shape_cast %123 : vector<2x8xf32> to vector<2x8x1xf32>
    %125 = tpu.reciprocal %124 {approx = true} : vector<2x8x1xf32> -> vector<2x8x1xf32>
    %126 = vector.broadcast %125 : vector<2x8x1xf32> to vector<2x8x8xf32>
    %127 = arith.mulf %122, %126 : vector<2x8x8xf32>
    "tpu.trace_start"() <{level = 10 : i32, message = "bqk,bkd->bqd"}> : () -> ()
    %cst_52 = arith.constant dense<0.000000e+00> : vector<2x8x8xf32>
    %128 = tpu.matmul %127, %115, %cst_52 {dimension_numbers = #tpu.dot_dimension_numbers<[2], [1], [1], [2], [0, 0, 0, 1, 1, 2], [0], [0]>} : vector<2x8x8xf32>, vector<2x8x8xf32>, vector<2x8x8xf32> -> vector<2x8x8xf32>
    "tpu.trace_stop"() : () -> ()
    %129 = vector.shape_cast %128 : vector<2x8x8xf32> to vector<16x8xf32>
    %130 = vector.extract_strided_slice %48 {offsets = [24, 0], sizes = [8, 32], strides = [1, 1]} : vector<32x32xbf16> to vector<8x32xbf16>
    %131 = arith.truncf %129 : vector<16x8xf32> to vector<16x8xbf16>
    %cst_53 = arith.constant dense<0.000000e+00> : vector<16x32xf32>
    %132 = tpu.matmul %131, %130, %cst_53 {dimension_numbers = #tpu.dot_dimension_numbers<[1], [0], [0], [1], [0, 0, 1, 1], [], []>} : vector<16x8xbf16>, vector<8x32xbf16>, vector<16x32xf32> -> vector<16x32xf32>
    %133 = arith.addf %112, %132 : vector<16x32xf32>
    %c0_54 = arith.constant 0 : index
    %c0_55 = arith.constant 0 : index
    %c0_56 = arith.constant 0 : index
    %134 = vector.load %arg12[%c0_54, %c0_55, %c0_56] : memref<2x1x32xf32, #tpu.memory_space<vmem>>, vector<1x1x32xf32>
    %135 = vector.shape_cast %134 : vector<1x1x32xf32> to vector<1x32xf32>
    %136 = vector.broadcast %135 : vector<1x32xf32> to vector<16x32xf32>
    %137 = arith.addf %133, %136 : vector<16x32xf32>
    %138 = arith.addf %14, %137 : vector<16x32xf32>
    %c0_57 = arith.constant 0 : index
    %c0_58 = arith.constant 0 : index
    %c0_59 = arith.constant 0 : index
    %139 = vector.load %arg21[%c0_57, %c0_58, %c0_59] : memref<2x1x32xf32, #tpu.memory_space<vmem>>, vector<1x1x32xf32>
    %140 = vector.shape_cast %139 : vector<1x1x32xf32> to vector<1x32xf32>
    %c0_60 = arith.constant 0 : index
    %c0_61 = arith.constant 0 : index
    %c0_62 = arith.constant 0 : index
    %141 = vector.load %arg22[%c0_60, %c0_61, %c0_62] : memref<2x1x32xf32, #tpu.memory_space<vmem>>, vector<1x1x32xf32>
    %142 = vector.shape_cast %141 : vector<1x1x32xf32> to vector<1x32xf32>
    %cst_63 = arith.constant dense<0.000000e+00> : vector<16xf32>
    %143 = vector.multi_reduction <add>, %138, %cst_63 [1] : vector<16x32xf32> to vector<16xf32>
    %144 = vector.shape_cast %143 : vector<16xf32> to vector<16x1xf32>
    %cst_64 = arith.constant 3.200000e+01 : f32
    %145 = vector.broadcast %cst_64 : f32 to vector<16x1xf32>
    %146 = arith.divf %144, %145 : vector<16x1xf32>
    %147 = vector.broadcast %146 : vector<16x1xf32> to vector<16x32xf32>
    %148 = arith.subf %138, %147 : vector<16x32xf32>
    %149 = arith.mulf %148, %148 : vector<16x32xf32>
    %cst_65 = arith.constant dense<0.000000e+00> : vector<16xf32>
    %150 = vector.multi_reduction <add>, %149, %cst_65 [1] : vector<16x32xf32> to vector<16xf32>
    %151 = vector.shape_cast %150 : vector<16xf32> to vector<16x1xf32>
    %cst_66 = arith.constant 3.200000e+01 : f32
    %152 = vector.broadcast %cst_66 : f32 to vector<16x1xf32>
    %153 = arith.divf %151, %152 : vector<16x1xf32>
    %154 = vector.broadcast %146 : vector<16x1xf32> to vector<16x32xf32>
    %155 = arith.subf %138, %154 : vector<16x32xf32>
    %cst_67 = arith.constant 9.99999974E-6 : f32
    %156 = vector.broadcast %cst_67 : f32 to vector<16x1xf32>
    %157 = arith.addf %153, %156 : vector<16x1xf32>
    %158 = math.rsqrt %157 : vector<16x1xf32>
    %159 = vector.broadcast %158 : vector<16x1xf32> to vector<16x32xf32>
    %160 = arith.mulf %155, %159 : vector<16x32xf32>
    %161 = vector.broadcast %140 : vector<1x32xf32> to vector<16x32xf32>
    %162 = arith.mulf %160, %161 : vector<16x32xf32>
    %163 = vector.broadcast %142 : vector<1x32xf32> to vector<16x32xf32>
    %164 = arith.addf %162, %163 : vector<16x32xf32>
    %c0_68 = arith.constant 0 : index
    %c0_69 = arith.constant 0 : index
    %c0_70 = arith.constant 0 : index
    %165 = vector.load %arg13[%c0_68, %c0_69, %c0_70] : memref<2x32x32xbf16, #tpu.memory_space<vmem>>, vector<1x32x32xbf16>
    %166 = vector.shape_cast %165 : vector<1x32x32xbf16> to vector<32x32xbf16>
    %167 = arith.truncf %15 : vector<2x32xf32> to vector<2x32xbf16>
    %cst_71 = arith.constant dense<0.000000e+00> : vector<2x32xf32>
    %168 = tpu.matmul %167, %166, %cst_71 {dimension_numbers = #tpu.dot_dimension_numbers<[1], [0], [0], [1], [0, 0, 1, 1], [], []>} : vector<2x32xbf16>, vector<32x32xbf16>, vector<2x32xf32> -> vector<2x32xf32>
    %c0_72 = arith.constant 0 : index
    %c0_73 = arith.constant 0 : index
    %c0_74 = arith.constant 0 : index
    %169 = vector.load %arg14[%c0_72, %c0_73, %c0_74] : memref<2x1x32xf32, #tpu.memory_space<vmem>>, vector<1x1x32xf32>
    %170 = vector.shape_cast %169 : vector<1x1x32xf32> to vector<1x32xf32>
    %171 = vector.broadcast %170 : vector<1x32xf32> to vector<2x32xf32>
    %172 = arith.addf %168, %171 : vector<2x32xf32>
    %c0_75 = arith.constant 0 : index
    %c0_76 = arith.constant 0 : index
    %c0_77 = arith.constant 0 : index
    %173 = vector.load %arg15[%c0_75, %c0_76, %c0_77] : memref<2x32x32xbf16, #tpu.memory_space<vmem>>, vector<1x32x32xbf16>
    %174 = vector.shape_cast %173 : vector<1x32x32xbf16> to vector<32x32xbf16>
    %175 = arith.truncf %172 : vector<2x32xf32> to vector<2x32xbf16>
    %cst_78 = arith.constant dense<0.000000e+00> : vector<2x32xf32>
    %176 = tpu.matmul %175, %174, %cst_78 {dimension_numbers = #tpu.dot_dimension_numbers<[1], [0], [0], [1], [0, 0, 1, 1], [], []>} : vector<2x32xbf16>, vector<32x32xbf16>, vector<2x32xf32> -> vector<2x32xf32>
    %c0_79 = arith.constant 0 : index
    %c0_80 = arith.constant 0 : index
    %c0_81 = arith.constant 0 : index
    %177 = vector.load %arg16[%c0_79, %c0_80, %c0_81] : memref<2x1x32xf32, #tpu.memory_space<vmem>>, vector<1x1x32xf32>
    %178 = vector.shape_cast %177 : vector<1x1x32xf32> to vector<1x32xf32>
    %179 = vector.broadcast %178 : vector<1x32xf32> to vector<2x32xf32>
    %180 = arith.addf %176, %179 : vector<2x32xf32>
    %181 = vector.shape_cast %180 : vector<2x32xf32> to vector<2x1x32xf32>
    %182 = vector.shape_cast %181 : vector<2x1x32xf32> to vector<2x1x32xf32>
    %183 = vector.broadcast %182 : vector<2x1x32xf32> to vector<2x8x32xf32>
    %184 = vector.shape_cast %183 : vector<2x8x32xf32> to vector<16x32xf32>
    %185 = arith.addf %164, %184 : vector<16x32xf32>
    %c0_82 = arith.constant 0 : index
    %c0_83 = arith.constant 0 : index
    %c0_84 = arith.constant 0 : index
    %186 = vector.load %arg23[%c0_82, %c0_83, %c0_84] : memref<2x1x32xf32, #tpu.memory_space<vmem>>, vector<1x1x32xf32>
    %187 = vector.shape_cast %186 : vector<1x1x32xf32> to vector<1x32xf32>
    %c0_85 = arith.constant 0 : index
    %c0_86 = arith.constant 0 : index
    %c0_87 = arith.constant 0 : index
    %188 = vector.load %arg24[%c0_85, %c0_86, %c0_87] : memref<2x1x32xf32, #tpu.memory_space<vmem>>, vector<1x1x32xf32>
    %189 = vector.shape_cast %188 : vector<1x1x32xf32> to vector<1x32xf32>
    %cst_88 = arith.constant dense<0.000000e+00> : vector<16xf32>
    %190 = vector.multi_reduction <add>, %185, %cst_88 [1] : vector<16x32xf32> to vector<16xf32>
    %191 = vector.shape_cast %190 : vector<16xf32> to vector<16x1xf32>
    %cst_89 = arith.constant 3.200000e+01 : f32
    %192 = vector.broadcast %cst_89 : f32 to vector<16x1xf32>
    %193 = arith.divf %191, %192 : vector<16x1xf32>
    %194 = vector.broadcast %193 : vector<16x1xf32> to vector<16x32xf32>
    %195 = arith.subf %185, %194 : vector<16x32xf32>
    %196 = arith.mulf %195, %195 : vector<16x32xf32>
    %cst_90 = arith.constant dense<0.000000e+00> : vector<16xf32>
    %197 = vector.multi_reduction <add>, %196, %cst_90 [1] : vector<16x32xf32> to vector<16xf32>
    %198 = vector.shape_cast %197 : vector<16xf32> to vector<16x1xf32>
    %cst_91 = arith.constant 3.200000e+01 : f32
    %199 = vector.broadcast %cst_91 : f32 to vector<16x1xf32>
    %200 = arith.divf %198, %199 : vector<16x1xf32>
    %201 = vector.broadcast %193 : vector<16x1xf32> to vector<16x32xf32>
    %202 = arith.subf %185, %201 : vector<16x32xf32>
    %cst_92 = arith.constant 9.99999974E-6 : f32
    %203 = vector.broadcast %cst_92 : f32 to vector<16x1xf32>
    %204 = arith.addf %200, %203 : vector<16x1xf32>
    %205 = math.rsqrt %204 : vector<16x1xf32>
    %206 = vector.broadcast %205 : vector<16x1xf32> to vector<16x32xf32>
    %207 = arith.mulf %202, %206 : vector<16x32xf32>
    %208 = vector.broadcast %187 : vector<1x32xf32> to vector<16x32xf32>
    %209 = arith.mulf %207, %208 : vector<16x32xf32>
    %210 = vector.broadcast %189 : vector<1x32xf32> to vector<16x32xf32>
    %211 = arith.addf %209, %210 : vector<16x32xf32>
    %c0_93 = arith.constant 0 : index
    %c0_94 = arith.constant 0 : index
    %c0_95 = arith.constant 0 : index
    %212 = vector.load %arg17[%c0_93, %c0_94, %c0_95] : memref<2x32x64xbf16, #tpu.memory_space<vmem>>, vector<1x32x64xbf16>
    %213 = vector.shape_cast %212 : vector<1x32x64xbf16> to vector<32x64xbf16>
    %214 = arith.truncf %211 : vector<16x32xf32> to vector<16x32xbf16>
    %cst_96 = arith.constant dense<0.000000e+00> : vector<16x64xf32>
    %215 = tpu.matmul %214, %213, %cst_96 {dimension_numbers = #tpu.dot_dimension_numbers<[1], [0], [0], [1], [0, 0, 1, 1], [], []>} : vector<16x32xbf16>, vector<32x64xbf16>, vector<16x64xf32> -> vector<16x64xf32>
    %c0_97 = arith.constant 0 : index
    %c0_98 = arith.constant 0 : index
    %c0_99 = arith.constant 0 : index
    %216 = vector.load %arg18[%c0_97, %c0_98, %c0_99] : memref<2x1x64xf32, #tpu.memory_space<vmem>>, vector<1x1x64xf32>
    %217 = vector.shape_cast %216 : vector<1x1x64xf32> to vector<1x64xf32>
    %218 = vector.broadcast %217 : vector<1x64xf32> to vector<16x64xf32>
    %219 = arith.addf %215, %218 : vector<16x64xf32>
    %cst_100 = arith.constant 0.000000e+00 : f32
    %220 = vector.broadcast %cst_100 : f32 to vector<16x64xf32>
    %221 = arith.maximumf %219, %220 : vector<16x64xf32>
    %c0_101 = arith.constant 0 : index
    %c0_102 = arith.constant 0 : index
    %c0_103 = arith.constant 0 : index
    %222 = vector.load %arg19[%c0_101, %c0_102, %c0_103] : memref<2x64x32xbf16, #tpu.memory_space<vmem>>, vector<1x64x32xbf16>
    %223 = vector.shape_cast %222 : vector<1x64x32xbf16> to vector<64x32xbf16>
    %224 = arith.truncf %221 : vector<16x64xf32> to vector<16x64xbf16>
    %cst_104 = arith.constant dense<0.000000e+00> : vector<16x32xf32>
    %225 = tpu.matmul %224, %223, %cst_104 {dimension_numbers = #tpu.dot_dimension_numbers<[1], [0], [0], [1], [0, 0, 1, 1], [], []>} : vector<16x64xbf16>, vector<64x32xbf16>, vector<16x32xf32> -> vector<16x32xf32>
    %c0_105 = arith.constant 0 : index
    %c0_106 = arith.constant 0 : index
    %c0_107 = arith.constant 0 : index
    %226 = vector.load %arg20[%c0_105, %c0_106, %c0_107] : memref<2x1x32xf32, #tpu.memory_space<vmem>>, vector<1x1x32xf32>
    %227 = vector.shape_cast %226 : vector<1x1x32xf32> to vector<1x32xf32>
    %228 = vector.broadcast %227 : vector<1x32xf32> to vector<16x32xf32>
    %229 = arith.addf %225, %228 : vector<16x32xf32>
    %230 = arith.addf %211, %229 : vector<16x32xf32>
    %c0_108 = arith.constant 0 : index
    %c0_109 = arith.constant 0 : index
    %c0_110 = arith.constant 0 : index
    %231 = vector.load %arg25[%c0_108, %c0_109, %c0_110] : memref<2x1x32xf32, #tpu.memory_space<vmem>>, vector<1x1x32xf32>
    %232 = vector.shape_cast %231 : vector<1x1x32xf32> to vector<1x32xf32>
    %c0_111 = arith.constant 0 : index
    %c0_112 = arith.constant 0 : index
    %c0_113 = arith.constant 0 : index
    %233 = vector.load %arg26[%c0_111, %c0_112, %c0_113] : memref<2x1x32xf32, #tpu.memory_space<vmem>>, vector<1x1x32xf32>
    %234 = vector.shape_cast %233 : vector<1x1x32xf32> to vector<1x32xf32>
    %cst_114 = arith.constant dense<0.000000e+00> : vector<16xf32>
    %235 = vector.multi_reduction <add>, %230, %cst_114 [1] : vector<16x32xf32> to vector<16xf32>
    %236 = vector.shape_cast %235 : vector<16xf32> to vector<16x1xf32>
    %cst_115 = arith.constant 3.200000e+01 : f32
    %237 = vector.broadcast %cst_115 : f32 to vector<16x1xf32>
    %238 = arith.divf %236, %237 : vector<16x1xf32>
    %239 = vector.broadcast %238 : vector<16x1xf32> to vector<16x32xf32>
    %240 = arith.subf %230, %239 : vector<16x32xf32>
    %241 = arith.mulf %240, %240 : vector<16x32xf32>
    %cst_116 = arith.constant dense<0.000000e+00> : vector<16xf32>
    %242 = vector.multi_reduction <add>, %241, %cst_116 [1] : vector<16x32xf32> to vector<16xf32>
    %243 = vector.shape_cast %242 : vector<16xf32> to vector<16x1xf32>
    %cst_117 = arith.constant 3.200000e+01 : f32
    %244 = vector.broadcast %cst_117 : f32 to vector<16x1xf32>
    %245 = arith.divf %243, %244 : vector<16x1xf32>
    %246 = vector.broadcast %238 : vector<16x1xf32> to vector<16x32xf32>
    %247 = arith.subf %230, %246 : vector<16x32xf32>
    %cst_118 = arith.constant 9.99999974E-6 : f32
    %248 = vector.broadcast %cst_118 : f32 to vector<16x1xf32>
    %249 = arith.addf %245, %248 : vector<16x1xf32>
    %250 = math.rsqrt %249 : vector<16x1xf32>
    %251 = vector.broadcast %250 : vector<16x1xf32> to vector<16x32xf32>
    %252 = arith.mulf %247, %251 : vector<16x32xf32>
    %253 = vector.broadcast %232 : vector<1x32xf32> to vector<16x32xf32>
    %254 = arith.mulf %252, %253 : vector<16x32xf32>
    %255 = vector.broadcast %234 : vector<1x32xf32> to vector<16x32xf32>
    %256 = arith.addf %254, %255 : vector<16x32xf32>
    %c1 = arith.constant 1 : index
    %c0_119 = arith.constant 0 : index
    %c0_120 = arith.constant 0 : index
    %257 = vector.load %arg5[%c1, %c0_119, %c0_120] : memref<2x32x32xbf16, #tpu.memory_space<vmem>>, vector<1x32x32xbf16>
    %258 = vector.shape_cast %257 : vector<1x32x32xbf16> to vector<32x32xbf16>
    %259 = arith.truncf %256 : vector<16x32xf32> to vector<16x32xbf16>
    %cst_121 = arith.constant dense<0.000000e+00> : vector<16x32xf32>
    %260 = tpu.matmul %259, %258, %cst_121 {dimension_numbers = #tpu.dot_dimension_numbers<[1], [0], [0], [1], [0, 0, 1, 1], [], []>} : vector<16x32xbf16>, vector<32x32xbf16>, vector<16x32xf32> -> vector<16x32xf32>
    %c1_122 = arith.constant 1 : index
    %c0_123 = arith.constant 0 : index
    %c0_124 = arith.constant 0 : index
    %261 = vector.load %arg8[%c1_122, %c0_123, %c0_124] : memref<2x1x32xf32, #tpu.memory_space<vmem>>, vector<1x1x32xf32>
    %262 = vector.shape_cast %261 : vector<1x1x32xf32> to vector<1x32xf32>
    %263 = vector.broadcast %262 : vector<1x32xf32> to vector<16x32xf32>
    %264 = arith.addf %260, %263 : vector<16x32xf32>
    %265 = vector.shape_cast %264 : vector<16x32xf32> to vector<2x8x32xf32>
    %c1_125 = arith.constant 1 : index
    %c0_126 = arith.constant 0 : index
    %c0_127 = arith.constant 0 : index
    %266 = vector.load %arg6[%c1_125, %c0_126, %c0_127] : memref<2x32x32xbf16, #tpu.memory_space<vmem>>, vector<1x32x32xbf16>
    %267 = vector.shape_cast %266 : vector<1x32x32xbf16> to vector<32x32xbf16>
    %268 = arith.truncf %256 : vector<16x32xf32> to vector<16x32xbf16>
    %cst_128 = arith.constant dense<0.000000e+00> : vector<16x32xf32>
    %269 = tpu.matmul %268, %267, %cst_128 {dimension_numbers = #tpu.dot_dimension_numbers<[1], [0], [0], [1], [0, 0, 1, 1], [], []>} : vector<16x32xbf16>, vector<32x32xbf16>, vector<16x32xf32> -> vector<16x32xf32>
    %c1_129 = arith.constant 1 : index
    %c0_130 = arith.constant 0 : index
    %c0_131 = arith.constant 0 : index
    %270 = vector.load %arg9[%c1_129, %c0_130, %c0_131] : memref<2x1x32xf32, #tpu.memory_space<vmem>>, vector<1x1x32xf32>
    %271 = vector.shape_cast %270 : vector<1x1x32xf32> to vector<1x32xf32>
    %272 = vector.broadcast %271 : vector<1x32xf32> to vector<16x32xf32>
    %273 = arith.addf %269, %272 : vector<16x32xf32>
    %274 = vector.shape_cast %273 : vector<16x32xf32> to vector<2x8x32xf32>
    %c1_132 = arith.constant 1 : index
    %c0_133 = arith.constant 0 : index
    %c0_134 = arith.constant 0 : index
    %275 = vector.load %arg7[%c1_132, %c0_133, %c0_134] : memref<2x32x32xbf16, #tpu.memory_space<vmem>>, vector<1x32x32xbf16>
    %276 = vector.shape_cast %275 : vector<1x32x32xbf16> to vector<32x32xbf16>
    %277 = arith.truncf %256 : vector<16x32xf32> to vector<16x32xbf16>
    %cst_135 = arith.constant dense<0.000000e+00> : vector<16x32xf32>
    %278 = tpu.matmul %277, %276, %cst_135 {dimension_numbers = #tpu.dot_dimension_numbers<[1], [0], [0], [1], [0, 0, 1, 1], [], []>} : vector<16x32xbf16>, vector<32x32xbf16>, vector<16x32xf32> -> vector<16x32xf32>
    %c1_136 = arith.constant 1 : index
    %c0_137 = arith.constant 0 : index
    %c0_138 = arith.constant 0 : index
    %279 = vector.load %arg10[%c1_136, %c0_137, %c0_138] : memref<2x1x32xf32, #tpu.memory_space<vmem>>, vector<1x1x32xf32>
    %280 = vector.shape_cast %279 : vector<1x1x32xf32> to vector<1x32xf32>
    %281 = vector.broadcast %280 : vector<1x32xf32> to vector<16x32xf32>
    %282 = arith.addf %278, %281 : vector<16x32xf32>
    %283 = vector.shape_cast %282 : vector<16x32xf32> to vector<2x8x32xf32>
    %c1_139 = arith.constant 1 : index
    %c0_140 = arith.constant 0 : index
    %c0_141 = arith.constant 0 : index
    %284 = vector.load %arg11[%c1_139, %c0_140, %c0_141] : memref<2x32x32xbf16, #tpu.memory_space<vmem>>, vector<1x32x32xbf16>
    %285 = vector.shape_cast %284 : vector<1x32x32xbf16> to vector<32x32xbf16>
    %cst_142 = arith.constant 0.000000e+00 : f32
    %286 = vector.broadcast %cst_142 : f32 to vector<16x32xf32>
    %287 = vector.extract_strided_slice %265 {offsets = [0, 0, 0], sizes = [2, 8, 8], strides = [1, 1, 1]} : vector<2x8x32xf32> to vector<2x8x8xf32>
    %288 = vector.extract_strided_slice %274 {offsets = [0, 0, 0], sizes = [2, 8, 8], strides = [1, 1, 1]} : vector<2x8x32xf32> to vector<2x8x8xf32>
    %289 = vector.extract_strided_slice %283 {offsets = [0, 0, 0], sizes = [2, 8, 8], strides = [1, 1, 1]} : vector<2x8x32xf32> to vector<2x8x8xf32>
    "tpu.trace_start"() <{level = 10 : i32, message = "bqd,bkd->bqk"}> : () -> ()
    %cst_143 = arith.constant dense<0.000000e+00> : vector<2x8x8xf32>
    %290 = tpu.matmul %287, %288, %cst_143 {dimension_numbers = #tpu.dot_dimension_numbers<[2], [2], [1], [1], [0, 0, 0, 1, 1, 1], [0], [0]>} : vector<2x8x8xf32>, vector<2x8x8xf32>, vector<2x8x8xf32> -> vector<2x8x8xf32>
    "tpu.trace_stop"() : () -> ()
    %291 = arith.addf %290, %19 : vector<2x8x8xf32>
    %cst_144 = arith.constant dense<0xFF800000> : vector<2x8xf32>
    %292 = vector.multi_reduction <maximumf>, %291, %cst_144 [2] : vector<2x8x8xf32> to vector<2x8xf32>
    %293 = vector.shape_cast %292 : vector<2x8xf32> to vector<2x8x1xf32>
    %294 = vector.broadcast %293 : vector<2x8x1xf32> to vector<2x8x8xf32>
    %295 = arith.subf %291, %294 : vector<2x8x8xf32>
    %296 = math.exp %295 : vector<2x8x8xf32>
    %cst_145 = arith.constant dense<0.000000e+00> : vector<2x8xf32>
    %297 = vector.multi_reduction <add>, %296, %cst_145 [2] : vector<2x8x8xf32> to vector<2x8xf32>
    %298 = vector.shape_cast %297 : vector<2x8xf32> to vector<2x8x1xf32>
    %299 = tpu.reciprocal %298 {approx = true} : vector<2x8x1xf32> -> vector<2x8x1xf32>
    %300 = vector.broadcast %299 : vector<2x8x1xf32> to vector<2x8x8xf32>
    %301 = arith.mulf %296, %300 : vector<2x8x8xf32>
    "tpu.trace_start"() <{level = 10 : i32, message = "bqk,bkd->bqd"}> : () -> ()
    %cst_146 = arith.constant dense<0.000000e+00> : vector<2x8x8xf32>
    %302 = tpu.matmul %301, %289, %cst_146 {dimension_numbers = #tpu.dot_dimension_numbers<[2], [1], [1], [2], [0, 0, 0, 1, 1, 2], [0], [0]>} : vector<2x8x8xf32>, vector<2x8x8xf32>, vector<2x8x8xf32> -> vector<2x8x8xf32>
    "tpu.trace_stop"() : () -> ()
    %303 = vector.shape_cast %302 : vector<2x8x8xf32> to vector<16x8xf32>
    %304 = vector.extract_strided_slice %285 {offsets = [0, 0], sizes = [8, 32], strides = [1, 1]} : vector<32x32xbf16> to vector<8x32xbf16>
    %305 = arith.truncf %303 : vector<16x8xf32> to vector<16x8xbf16>
    %cst_147 = arith.constant dense<0.000000e+00> : vector<16x32xf32>
    %306 = tpu.matmul %305, %304, %cst_147 {dimension_numbers = #tpu.dot_dimension_numbers<[1], [0], [0], [1], [0, 0, 1, 1], [], []>} : vector<16x8xbf16>, vector<8x32xbf16>, vector<16x32xf32> -> vector<16x32xf32>
    %307 = arith.addf %286, %306 : vector<16x32xf32>
    %308 = vector.extract_strided_slice %265 {offsets = [0, 0, 8], sizes = [2, 8, 8], strides = [1, 1, 1]} : vector<2x8x32xf32> to vector<2x8x8xf32>
    %309 = vector.extract_strided_slice %274 {offsets = [0, 0, 8], sizes = [2, 8, 8], strides = [1, 1, 1]} : vector<2x8x32xf32> to vector<2x8x8xf32>
    %310 = vector.extract_strided_slice %283 {offsets = [0, 0, 8], sizes = [2, 8, 8], strides = [1, 1, 1]} : vector<2x8x32xf32> to vector<2x8x8xf32>
    "tpu.trace_start"() <{level = 10 : i32, message = "bqd,bkd->bqk"}> : () -> ()
    %cst_148 = arith.constant dense<0.000000e+00> : vector<2x8x8xf32>
    %311 = tpu.matmul %308, %309, %cst_148 {dimension_numbers = #tpu.dot_dimension_numbers<[2], [2], [1], [1], [0, 0, 0, 1, 1, 1], [0], [0]>} : vector<2x8x8xf32>, vector<2x8x8xf32>, vector<2x8x8xf32> -> vector<2x8x8xf32>
    "tpu.trace_stop"() : () -> ()
    %312 = arith.addf %311, %19 : vector<2x8x8xf32>
    %cst_149 = arith.constant dense<0xFF800000> : vector<2x8xf32>
    %313 = vector.multi_reduction <maximumf>, %312, %cst_149 [2] : vector<2x8x8xf32> to vector<2x8xf32>
    %314 = vector.shape_cast %313 : vector<2x8xf32> to vector<2x8x1xf32>
    %315 = vector.broadcast %314 : vector<2x8x1xf32> to vector<2x8x8xf32>
    %316 = arith.subf %312, %315 : vector<2x8x8xf32>
    %317 = math.exp %316 : vector<2x8x8xf32>
    %cst_150 = arith.constant dense<0.000000e+00> : vector<2x8xf32>
    %318 = vector.multi_reduction <add>, %317, %cst_150 [2] : vector<2x8x8xf32> to vector<2x8xf32>
    %319 = vector.shape_cast %318 : vector<2x8xf32> to vector<2x8x1xf32>
    %320 = tpu.reciprocal %319 {approx = true} : vector<2x8x1xf32> -> vector<2x8x1xf32>
    %321 = vector.broadcast %320 : vector<2x8x1xf32> to vector<2x8x8xf32>
    %322 = arith.mulf %317, %321 : vector<2x8x8xf32>
    "tpu.trace_start"() <{level = 10 : i32, message = "bqk,bkd->bqd"}> : () -> ()
    %cst_151 = arith.constant dense<0.000000e+00> : vector<2x8x8xf32>
    %323 = tpu.matmul %322, %310, %cst_151 {dimension_numbers = #tpu.dot_dimension_numbers<[2], [1], [1], [2], [0, 0, 0, 1, 1, 2], [0], [0]>} : vector<2x8x8xf32>, vector<2x8x8xf32>, vector<2x8x8xf32> -> vector<2x8x8xf32>
    "tpu.trace_stop"() : () -> ()
    %324 = vector.shape_cast %323 : vector<2x8x8xf32> to vector<16x8xf32>
    %325 = vector.extract_strided_slice %285 {offsets = [8, 0], sizes = [8, 32], strides = [1, 1]} : vector<32x32xbf16> to vector<8x32xbf16>
    %326 = arith.truncf %324 : vector<16x8xf32> to vector<16x8xbf16>
    %cst_152 = arith.constant dense<0.000000e+00> : vector<16x32xf32>
    %327 = tpu.matmul %326, %325, %cst_152 {dimension_numbers = #tpu.dot_dimension_numbers<[1], [0], [0], [1], [0, 0, 1, 1], [], []>} : vector<16x8xbf16>, vector<8x32xbf16>, vector<16x32xf32> -> vector<16x32xf32>
    %328 = arith.addf %307, %327 : vector<16x32xf32>
    %329 = vector.extract_strided_slice %265 {offsets = [0, 0, 16], sizes = [2, 8, 8], strides = [1, 1, 1]} : vector<2x8x32xf32> to vector<2x8x8xf32>
    %330 = vector.extract_strided_slice %274 {offsets = [0, 0, 16], sizes = [2, 8, 8], strides = [1, 1, 1]} : vector<2x8x32xf32> to vector<2x8x8xf32>
    %331 = vector.extract_strided_slice %283 {offsets = [0, 0, 16], sizes = [2, 8, 8], strides = [1, 1, 1]} : vector<2x8x32xf32> to vector<2x8x8xf32>
    "tpu.trace_start"() <{level = 10 : i32, message = "bqd,bkd->bqk"}> : () -> ()
    %cst_153 = arith.constant dense<0.000000e+00> : vector<2x8x8xf32>
    %332 = tpu.matmul %329, %330, %cst_153 {dimension_numbers = #tpu.dot_dimension_numbers<[2], [2], [1], [1], [0, 0, 0, 1, 1, 1], [0], [0]>} : vector<2x8x8xf32>, vector<2x8x8xf32>, vector<2x8x8xf32> -> vector<2x8x8xf32>
    "tpu.trace_stop"() : () -> ()
    %333 = arith.addf %332, %19 : vector<2x8x8xf32>
    %cst_154 = arith.constant dense<0xFF800000> : vector<2x8xf32>
    %334 = vector.multi_reduction <maximumf>, %333, %cst_154 [2] : vector<2x8x8xf32> to vector<2x8xf32>
    %335 = vector.shape_cast %334 : vector<2x8xf32> to vector<2x8x1xf32>
    %336 = vector.broadcast %335 : vector<2x8x1xf32> to vector<2x8x8xf32>
    %337 = arith.subf %333, %336 : vector<2x8x8xf32>
    %338 = math.exp %337 : vector<2x8x8xf32>
    %cst_155 = arith.constant dense<0.000000e+00> : vector<2x8xf32>
    %339 = vector.multi_reduction <add>, %338, %cst_155 [2] : vector<2x8x8xf32> to vector<2x8xf32>
    %340 = vector.shape_cast %339 : vector<2x8xf32> to vector<2x8x1xf32>
    %341 = tpu.reciprocal %340 {approx = true} : vector<2x8x1xf32> -> vector<2x8x1xf32>
    %342 = vector.broadcast %341 : vector<2x8x1xf32> to vector<2x8x8xf32>
    %343 = arith.mulf %338, %342 : vector<2x8x8xf32>
    "tpu.trace_start"() <{level = 10 : i32, message = "bqk,bkd->bqd"}> : () -> ()
    %cst_156 = arith.constant dense<0.000000e+00> : vector<2x8x8xf32>
    %344 = tpu.matmul %343, %331, %cst_156 {dimension_numbers = #tpu.dot_dimension_numbers<[2], [1], [1], [2], [0, 0, 0, 1, 1, 2], [0], [0]>} : vector<2x8x8xf32>, vector<2x8x8xf32>, vector<2x8x8xf32> -> vector<2x8x8xf32>
    "tpu.trace_stop"() : () -> ()
    %345 = vector.shape_cast %344 : vector<2x8x8xf32> to vector<16x8xf32>
    %346 = vector.extract_strided_slice %285 {offsets = [16, 0], sizes = [8, 32], strides = [1, 1]} : vector<32x32xbf16> to vector<8x32xbf16>
    %347 = arith.truncf %345 : vector<16x8xf32> to vector<16x8xbf16>
    %cst_157 = arith.constant dense<0.000000e+00> : vector<16x32xf32>
    %348 = tpu.matmul %347, %346, %cst_157 {dimension_numbers = #tpu.dot_dimension_numbers<[1], [0], [0], [1], [0, 0, 1, 1], [], []>} : vector<16x8xbf16>, vector<8x32xbf16>, vector<16x32xf32> -> vector<16x32xf32>
    %349 = arith.addf %328, %348 : vector<16x32xf32>
    %350 = vector.extract_strided_slice %265 {offsets = [0, 0, 24], sizes = [2, 8, 8], strides = [1, 1, 1]} : vector<2x8x32xf32> to vector<2x8x8xf32>
    %351 = vector.extract_strided_slice %274 {offsets = [0, 0, 24], sizes = [2, 8, 8], strides = [1, 1, 1]} : vector<2x8x32xf32> to vector<2x8x8xf32>
    %352 = vector.extract_strided_slice %283 {offsets = [0, 0, 24], sizes = [2, 8, 8], strides = [1, 1, 1]} : vector<2x8x32xf32> to vector<2x8x8xf32>
    "tpu.trace_start"() <{level = 10 : i32, message = "bqd,bkd->bqk"}> : () -> ()
    %cst_158 = arith.constant dense<0.000000e+00> : vector<2x8x8xf32>
    %353 = tpu.matmul %350, %351, %cst_158 {dimension_numbers = #tpu.dot_dimension_numbers<[2], [2], [1], [1], [0, 0, 0, 1, 1, 1], [0], [0]>} : vector<2x8x8xf32>, vector<2x8x8xf32>, vector<2x8x8xf32> -> vector<2x8x8xf32>
    "tpu.trace_stop"() : () -> ()
    %354 = arith.addf %353, %19 : vector<2x8x8xf32>
    %cst_159 = arith.constant dense<0xFF800000> : vector<2x8xf32>
    %355 = vector.multi_reduction <maximumf>, %354, %cst_159 [2] : vector<2x8x8xf32> to vector<2x8xf32>
    %356 = vector.shape_cast %355 : vector<2x8xf32> to vector<2x8x1xf32>
    %357 = vector.broadcast %356 : vector<2x8x1xf32> to vector<2x8x8xf32>
    %358 = arith.subf %354, %357 : vector<2x8x8xf32>
    %359 = math.exp %358 : vector<2x8x8xf32>
    %cst_160 = arith.constant dense<0.000000e+00> : vector<2x8xf32>
    %360 = vector.multi_reduction <add>, %359, %cst_160 [2] : vector<2x8x8xf32> to vector<2x8xf32>
    %361 = vector.shape_cast %360 : vector<2x8xf32> to vector<2x8x1xf32>
    %362 = tpu.reciprocal %361 {approx = true} : vector<2x8x1xf32> -> vector<2x8x1xf32>
    %363 = vector.broadcast %362 : vector<2x8x1xf32> to vector<2x8x8xf32>
    %364 = arith.mulf %359, %363 : vector<2x8x8xf32>
    "tpu.trace_start"() <{level = 10 : i32, message = "bqk,bkd->bqd"}> : () -> ()
    %cst_161 = arith.constant dense<0.000000e+00> : vector<2x8x8xf32>
    %365 = tpu.matmul %364, %352, %cst_161 {dimension_numbers = #tpu.dot_dimension_numbers<[2], [1], [1], [2], [0, 0, 0, 1, 1, 2], [0], [0]>} : vector<2x8x8xf32>, vector<2x8x8xf32>, vector<2x8x8xf32> -> vector<2x8x8xf32>
    "tpu.trace_stop"() : () -> ()
    %366 = vector.shape_cast %365 : vector<2x8x8xf32> to vector<16x8xf32>
    %367 = vector.extract_strided_slice %285 {offsets = [24, 0], sizes = [8, 32], strides = [1, 1]} : vector<32x32xbf16> to vector<8x32xbf16>
    %368 = arith.truncf %366 : vector<16x8xf32> to vector<16x8xbf16>
    %cst_162 = arith.constant dense<0.000000e+00> : vector<16x32xf32>
    %369 = tpu.matmul %368, %367, %cst_162 {dimension_numbers = #tpu.dot_dimension_numbers<[1], [0], [0], [1], [0, 0, 1, 1], [], []>} : vector<16x8xbf16>, vector<8x32xbf16>, vector<16x32xf32> -> vector<16x32xf32>
    %370 = arith.addf %349, %369 : vector<16x32xf32>
    %c1_163 = arith.constant 1 : index
    %c0_164 = arith.constant 0 : index
    %c0_165 = arith.constant 0 : index
    %371 = vector.load %arg12[%c1_163, %c0_164, %c0_165] : memref<2x1x32xf32, #tpu.memory_space<vmem>>, vector<1x1x32xf32>
    %372 = vector.shape_cast %371 : vector<1x1x32xf32> to vector<1x32xf32>
    %373 = vector.broadcast %372 : vector<1x32xf32> to vector<16x32xf32>
    %374 = arith.addf %370, %373 : vector<16x32xf32>
    %375 = arith.addf %256, %374 : vector<16x32xf32>
    %c1_166 = arith.constant 1 : index
    %c0_167 = arith.constant 0 : index
    %c0_168 = arith.constant 0 : index
    %376 = vector.load %arg21[%c1_166, %c0_167, %c0_168] : memref<2x1x32xf32, #tpu.memory_space<vmem>>, vector<1x1x32xf32>
    %377 = vector.shape_cast %376 : vector<1x1x32xf32> to vector<1x32xf32>
    %c1_169 = arith.constant 1 : index
    %c0_170 = arith.constant 0 : index
    %c0_171 = arith.constant 0 : index
    %378 = vector.load %arg22[%c1_169, %c0_170, %c0_171] : memref<2x1x32xf32, #tpu.memory_space<vmem>>, vector<1x1x32xf32>
    %379 = vector.shape_cast %378 : vector<1x1x32xf32> to vector<1x32xf32>
    %cst_172 = arith.constant dense<0.000000e+00> : vector<16xf32>
    %380 = vector.multi_reduction <add>, %375, %cst_172 [1] : vector<16x32xf32> to vector<16xf32>
    %381 = vector.shape_cast %380 : vector<16xf32> to vector<16x1xf32>
    %cst_173 = arith.constant 3.200000e+01 : f32
    %382 = vector.broadcast %cst_173 : f32 to vector<16x1xf32>
    %383 = arith.divf %381, %382 : vector<16x1xf32>
    %384 = vector.broadcast %383 : vector<16x1xf32> to vector<16x32xf32>
    %385 = arith.subf %375, %384 : vector<16x32xf32>
    %386 = arith.mulf %385, %385 : vector<16x32xf32>
    %cst_174 = arith.constant dense<0.000000e+00> : vector<16xf32>
    %387 = vector.multi_reduction <add>, %386, %cst_174 [1] : vector<16x32xf32> to vector<16xf32>
    %388 = vector.shape_cast %387 : vector<16xf32> to vector<16x1xf32>
    %cst_175 = arith.constant 3.200000e+01 : f32
    %389 = vector.broadcast %cst_175 : f32 to vector<16x1xf32>
    %390 = arith.divf %388, %389 : vector<16x1xf32>
    %391 = vector.broadcast %383 : vector<16x1xf32> to vector<16x32xf32>
    %392 = arith.subf %375, %391 : vector<16x32xf32>
    %cst_176 = arith.constant 9.99999974E-6 : f32
    %393 = vector.broadcast %cst_176 : f32 to vector<16x1xf32>
    %394 = arith.addf %390, %393 : vector<16x1xf32>
    %395 = math.rsqrt %394 : vector<16x1xf32>
    %396 = vector.broadcast %395 : vector<16x1xf32> to vector<16x32xf32>
    %397 = arith.mulf %392, %396 : vector<16x32xf32>
    %398 = vector.broadcast %377 : vector<1x32xf32> to vector<16x32xf32>
    %399 = arith.mulf %397, %398 : vector<16x32xf32>
    %400 = vector.broadcast %379 : vector<1x32xf32> to vector<16x32xf32>
    %401 = arith.addf %399, %400 : vector<16x32xf32>
    %c1_177 = arith.constant 1 : index
    %c0_178 = arith.constant 0 : index
    %c0_179 = arith.constant 0 : index
    %402 = vector.load %arg13[%c1_177, %c0_178, %c0_179] : memref<2x32x32xbf16, #tpu.memory_space<vmem>>, vector<1x32x32xbf16>
    %403 = vector.shape_cast %402 : vector<1x32x32xbf16> to vector<32x32xbf16>
    %404 = arith.truncf %15 : vector<2x32xf32> to vector<2x32xbf16>
    %cst_180 = arith.constant dense<0.000000e+00> : vector<2x32xf32>
    %405 = tpu.matmul %404, %403, %cst_180 {dimension_numbers = #tpu.dot_dimension_numbers<[1], [0], [0], [1], [0, 0, 1, 1], [], []>} : vector<2x32xbf16>, vector<32x32xbf16>, vector<2x32xf32> -> vector<2x32xf32>
    %c1_181 = arith.constant 1 : index
    %c0_182 = arith.constant 0 : index
    %c0_183 = arith.constant 0 : index
    %406 = vector.load %arg14[%c1_181, %c0_182, %c0_183] : memref<2x1x32xf32, #tpu.memory_space<vmem>>, vector<1x1x32xf32>
    %407 = vector.shape_cast %406 : vector<1x1x32xf32> to vector<1x32xf32>
    %408 = vector.broadcast %407 : vector<1x32xf32> to vector<2x32xf32>
    %409 = arith.addf %405, %408 : vector<2x32xf32>
    %c1_184 = arith.constant 1 : index
    %c0_185 = arith.constant 0 : index
    %c0_186 = arith.constant 0 : index
    %410 = vector.load %arg15[%c1_184, %c0_185, %c0_186] : memref<2x32x32xbf16, #tpu.memory_space<vmem>>, vector<1x32x32xbf16>
    %411 = vector.shape_cast %410 : vector<1x32x32xbf16> to vector<32x32xbf16>
    %412 = arith.truncf %409 : vector<2x32xf32> to vector<2x32xbf16>
    %cst_187 = arith.constant dense<0.000000e+00> : vector<2x32xf32>
    %413 = tpu.matmul %412, %411, %cst_187 {dimension_numbers = #tpu.dot_dimension_numbers<[1], [0], [0], [1], [0, 0, 1, 1], [], []>} : vector<2x32xbf16>, vector<32x32xbf16>, vector<2x32xf32> -> vector<2x32xf32>
    %c1_188 = arith.constant 1 : index
    %c0_189 = arith.constant 0 : index
    %c0_190 = arith.constant 0 : index
    %414 = vector.load %arg16[%c1_188, %c0_189, %c0_190] : memref<2x1x32xf32, #tpu.memory_space<vmem>>, vector<1x1x32xf32>
    %415 = vector.shape_cast %414 : vector<1x1x32xf32> to vector<1x32xf32>
    %416 = vector.broadcast %415 : vector<1x32xf32> to vector<2x32xf32>
    %417 = arith.addf %413, %416 : vector<2x32xf32>
    %418 = vector.shape_cast %417 : vector<2x32xf32> to vector<2x1x32xf32>
    %419 = vector.shape_cast %418 : vector<2x1x32xf32> to vector<2x1x32xf32>
    %420 = vector.broadcast %419 : vector<2x1x32xf32> to vector<2x8x32xf32>
    %421 = vector.shape_cast %420 : vector<2x8x32xf32> to vector<16x32xf32>
    %422 = arith.addf %401, %421 : vector<16x32xf32>
    %c1_191 = arith.constant 1 : index
    %c0_192 = arith.constant 0 : index
    %c0_193 = arith.constant 0 : index
    %423 = vector.load %arg23[%c1_191, %c0_192, %c0_193] : memref<2x1x32xf32, #tpu.memory_space<vmem>>, vector<1x1x32xf32>
    %424 = vector.shape_cast %423 : vector<1x1x32xf32> to vector<1x32xf32>
    %c1_194 = arith.constant 1 : index
    %c0_195 = arith.constant 0 : index
    %c0_196 = arith.constant 0 : index
    %425 = vector.load %arg24[%c1_194, %c0_195, %c0_196] : memref<2x1x32xf32, #tpu.memory_space<vmem>>, vector<1x1x32xf32>
    %426 = vector.shape_cast %425 : vector<1x1x32xf32> to vector<1x32xf32>
    %cst_197 = arith.constant dense<0.000000e+00> : vector<16xf32>
    %427 = vector.multi_reduction <add>, %422, %cst_197 [1] : vector<16x32xf32> to vector<16xf32>
    %428 = vector.shape_cast %427 : vector<16xf32> to vector<16x1xf32>
    %cst_198 = arith.constant 3.200000e+01 : f32
    %429 = vector.broadcast %cst_198 : f32 to vector<16x1xf32>
    %430 = arith.divf %428, %429 : vector<16x1xf32>
    %431 = vector.broadcast %430 : vector<16x1xf32> to vector<16x32xf32>
    %432 = arith.subf %422, %431 : vector<16x32xf32>
    %433 = arith.mulf %432, %432 : vector<16x32xf32>
    %cst_199 = arith.constant dense<0.000000e+00> : vector<16xf32>
    %434 = vector.multi_reduction <add>, %433, %cst_199 [1] : vector<16x32xf32> to vector<16xf32>
    %435 = vector.shape_cast %434 : vector<16xf32> to vector<16x1xf32>
    %cst_200 = arith.constant 3.200000e+01 : f32
    %436 = vector.broadcast %cst_200 : f32 to vector<16x1xf32>
    %437 = arith.divf %435, %436 : vector<16x1xf32>
    %438 = vector.broadcast %430 : vector<16x1xf32> to vector<16x32xf32>
    %439 = arith.subf %422, %438 : vector<16x32xf32>
    %cst_201 = arith.constant 9.99999974E-6 : f32
    %440 = vector.broadcast %cst_201 : f32 to vector<16x1xf32>
    %441 = arith.addf %437, %440 : vector<16x1xf32>
    %442 = math.rsqrt %441 : vector<16x1xf32>
    %443 = vector.broadcast %442 : vector<16x1xf32> to vector<16x32xf32>
    %444 = arith.mulf %439, %443 : vector<16x32xf32>
    %445 = vector.broadcast %424 : vector<1x32xf32> to vector<16x32xf32>
    %446 = arith.mulf %444, %445 : vector<16x32xf32>
    %447 = vector.broadcast %426 : vector<1x32xf32> to vector<16x32xf32>
    %448 = arith.addf %446, %447 : vector<16x32xf32>
    %c1_202 = arith.constant 1 : index
    %c0_203 = arith.constant 0 : index
    %c0_204 = arith.constant 0 : index
    %449 = vector.load %arg17[%c1_202, %c0_203, %c0_204] : memref<2x32x64xbf16, #tpu.memory_space<vmem>>, vector<1x32x64xbf16>
    %450 = vector.shape_cast %449 : vector<1x32x64xbf16> to vector<32x64xbf16>
    %451 = arith.truncf %448 : vector<16x32xf32> to vector<16x32xbf16>
    %cst_205 = arith.constant dense<0.000000e+00> : vector<16x64xf32>
    %452 = tpu.matmul %451, %450, %cst_205 {dimension_numbers = #tpu.dot_dimension_numbers<[1], [0], [0], [1], [0, 0, 1, 1], [], []>} : vector<16x32xbf16>, vector<32x64xbf16>, vector<16x64xf32> -> vector<16x64xf32>
    %c1_206 = arith.constant 1 : index
    %c0_207 = arith.constant 0 : index
    %c0_208 = arith.constant 0 : index
    %453 = vector.load %arg18[%c1_206, %c0_207, %c0_208] : memref<2x1x64xf32, #tpu.memory_space<vmem>>, vector<1x1x64xf32>
    %454 = vector.shape_cast %453 : vector<1x1x64xf32> to vector<1x64xf32>
    %455 = vector.broadcast %454 : vector<1x64xf32> to vector<16x64xf32>
    %456 = arith.addf %452, %455 : vector<16x64xf32>
    %cst_209 = arith.constant 0.000000e+00 : f32
    %457 = vector.broadcast %cst_209 : f32 to vector<16x64xf32>
    %458 = arith.maximumf %456, %457 : vector<16x64xf32>
    %c1_210 = arith.constant 1 : index
    %c0_211 = arith.constant 0 : index
    %c0_212 = arith.constant 0 : index
    %459 = vector.load %arg19[%c1_210, %c0_211, %c0_212] : memref<2x64x32xbf16, #tpu.memory_space<vmem>>, vector<1x64x32xbf16>
    %460 = vector.shape_cast %459 : vector<1x64x32xbf16> to vector<64x32xbf16>
    %461 = arith.truncf %458 : vector<16x64xf32> to vector<16x64xbf16>
    %cst_213 = arith.constant dense<0.000000e+00> : vector<16x32xf32>
    %462 = tpu.matmul %461, %460, %cst_213 {dimension_numbers = #tpu.dot_dimension_numbers<[1], [0], [0], [1], [0, 0, 1, 1], [], []>} : vector<16x64xbf16>, vector<64x32xbf16>, vector<16x32xf32> -> vector<16x32xf32>
    %c1_214 = arith.constant 1 : index
    %c0_215 = arith.constant 0 : index
    %c0_216 = arith.constant 0 : index
    %463 = vector.load %arg20[%c1_214, %c0_215, %c0_216] : memref<2x1x32xf32, #tpu.memory_space<vmem>>, vector<1x1x32xf32>
    %464 = vector.shape_cast %463 : vector<1x1x32xf32> to vector<1x32xf32>
    %465 = vector.broadcast %464 : vector<1x32xf32> to vector<16x32xf32>
    %466 = arith.addf %462, %465 : vector<16x32xf32>
    %467 = arith.addf %448, %466 : vector<16x32xf32>
    %c1_217 = arith.constant 1 : index
    %c0_218 = arith.constant 0 : index
    %c0_219 = arith.constant 0 : index
    %468 = vector.load %arg25[%c1_217, %c0_218, %c0_219] : memref<2x1x32xf32, #tpu.memory_space<vmem>>, vector<1x1x32xf32>
    %469 = vector.shape_cast %468 : vector<1x1x32xf32> to vector<1x32xf32>
    %c1_220 = arith.constant 1 : index
    %c0_221 = arith.constant 0 : index
    %c0_222 = arith.constant 0 : index
    %470 = vector.load %arg26[%c1_220, %c0_221, %c0_222] : memref<2x1x32xf32, #tpu.memory_space<vmem>>, vector<1x1x32xf32>
    %471 = vector.shape_cast %470 : vector<1x1x32xf32> to vector<1x32xf32>
    %cst_223 = arith.constant dense<0.000000e+00> : vector<16xf32>
    %472 = vector.multi_reduction <add>, %467, %cst_223 [1] : vector<16x32xf32> to vector<16xf32>
    %473 = vector.shape_cast %472 : vector<16xf32> to vector<16x1xf32>
    %cst_224 = arith.constant 3.200000e+01 : f32
    %474 = vector.broadcast %cst_224 : f32 to vector<16x1xf32>
    %475 = arith.divf %473, %474 : vector<16x1xf32>
    %476 = vector.broadcast %475 : vector<16x1xf32> to vector<16x32xf32>
    %477 = arith.subf %467, %476 : vector<16x32xf32>
    %478 = arith.mulf %477, %477 : vector<16x32xf32>
    %cst_225 = arith.constant dense<0.000000e+00> : vector<16xf32>
    %479 = vector.multi_reduction <add>, %478, %cst_225 [1] : vector<16x32xf32> to vector<16xf32>
    %480 = vector.shape_cast %479 : vector<16xf32> to vector<16x1xf32>
    %cst_226 = arith.constant 3.200000e+01 : f32
    %481 = vector.broadcast %cst_226 : f32 to vector<16x1xf32>
    %482 = arith.divf %480, %481 : vector<16x1xf32>
    %483 = vector.broadcast %475 : vector<16x1xf32> to vector<16x32xf32>
    %484 = arith.subf %467, %483 : vector<16x32xf32>
    %cst_227 = arith.constant 9.99999974E-6 : f32
    %485 = vector.broadcast %cst_227 : f32 to vector<16x1xf32>
    %486 = arith.addf %482, %485 : vector<16x1xf32>
    %487 = math.rsqrt %486 : vector<16x1xf32>
    %488 = vector.broadcast %487 : vector<16x1xf32> to vector<16x32xf32>
    %489 = arith.mulf %484, %488 : vector<16x32xf32>
    %490 = vector.broadcast %469 : vector<1x32xf32> to vector<16x32xf32>
    %491 = arith.mulf %489, %490 : vector<16x32xf32>
    %492 = vector.broadcast %471 : vector<1x32xf32> to vector<16x32xf32>
    %493 = arith.addf %491, %492 : vector<16x32xf32>
    %c0_228 = arith.constant 0 : index
    %c0_229 = arith.constant 0 : index
    %494 = vector.load %arg27[%c0_228, %c0_229] : memref<32x128xbf16, #tpu.memory_space<vmem>>, vector<32x128xbf16>
    %495 = arith.truncf %493 : vector<16x32xf32> to vector<16x32xbf16>
    %cst_230 = arith.constant dense<0.000000e+00> : vector<16x128xf32>
    %496 = tpu.matmul %495, %494, %cst_230 {dimension_numbers = #tpu.dot_dimension_numbers<[1], [0], [0], [1], [0, 0, 1, 1], [], []>} : vector<16x32xbf16>, vector<32x128xbf16>, vector<16x128xf32> -> vector<16x128xf32>
    %c0_231 = arith.constant 0 : index
    %c0_232 = arith.constant 0 : index
    %497 = vector.load %arg28[%c0_231, %c0_232] : memref<1x128xf32, #tpu.memory_space<vmem>>, vector<1x128xf32>
    %498 = vector.broadcast %497 : vector<1x128xf32> to vector<16x128xf32>
    %499 = arith.addf %496, %498 : vector<16x128xf32>
    %cst_233 = arith.constant dense<0xFF800000> : vector<16xf32>
    %500 = vector.multi_reduction <maximumf>, %499, %cst_233 [1] : vector<16x128xf32> to vector<16xf32>
    %501 = vector.shape_cast %500 : vector<16xf32> to vector<16x1xf32>
    %502 = vector.broadcast %501 : vector<16x1xf32> to vector<16x128xf32>
    %503 = arith.subf %499, %502 : vector<16x128xf32>
    %504 = math.exp %503 : vector<16x128xf32>
    %cst_234 = arith.constant dense<0.000000e+00> : vector<16xf32>
    %505 = vector.multi_reduction <add>, %504, %cst_234 [1] : vector<16x128xf32> to vector<16xf32>
    %506 = vector.shape_cast %505 : vector<16xf32> to vector<16x1xf32>
    %507 = math.log %506 : vector<16x1xf32>
    %508 = vector.broadcast %507 : vector<16x1xf32> to vector<16x128xf32>
    %509 = arith.subf %503, %508 : vector<16x128xf32>
    %c0_235 = arith.constant 0 : index
    %c0_236 = arith.constant 0 : index
    %510 = vector.load %arg29[%c0_235, %c0_236] : memref<16x128xf32, #tpu.memory_space<vmem>>, vector<16x128xf32>
    tpu.vector_store %arg29[%c0_235, %c0_236], %509 {strides = array<i32>} : memref<16x128xf32, #tpu.memory_space<vmem>>, vector<16x128xf32>,
    return
  }
}

</mosaic_0001>

<bundles_post_ra>
// kernel: sequence_decoder_forward.1
= control target key start
LH: loop header
LB: loop body
LE: loop exit
PB: predicated region body
PF: predicated region fallthrough
CT: control target
= control target key end

     0   :  { %s3744_s6 = smov 1   ;;  %s3745_s10 = smov 2   ;;  %s4489_s0 = inlined_call_operand.smem [shape: u32[30], index: -1, kind: input, shape index: {}] }
   0x1   :  { %s3814_s5 = sld [smem:[%s4489_s0]]   ;;  %s3746_s14 = smov 3  }
   0x2   :  { %s3819_s9 = sld [smem:[%s4489_s0 + %s3744_s6]]   ;;  %s3747_s18 = smov 4  }
   0x3   :  { %s3824_s13 = sld [smem:[%s4489_s0 + %s3745_s10]]   ;;  %s3748_s22 = smov 5  }
   0x4   :  { %s3829_s17 = sld [smem:[%s4489_s0 + %s3746_s14]]   ;;  %s3749_s26 = smov 6  }
   0x5   :  { %s3834_s21 = sld [smem:[%s4489_s0 + %s3747_s18]]   ;;  %s3750_s30 = smov 7  }
   0x6   :  { %s3839_s25 = sld [smem:[%s4489_s0 + %s3748_s22]]   ;;  %s3751_s4 = smov 8  }
   0x7   :  { %4501 = sst [smem:[#allocation47_spill]] %s3814_s5  ;;  %s3752_s10 = smov 9  }
   0x8   :  { %4502 = sst [smem:[#allocation48_spill]] %s3819_s9  ;;  %s3753_s15 = smov 10  }
   0x9   :  { %s3844_s29 = sld [smem:[%s4489_s0 + %s3749_s26]]   ;;  %s3754_s20 = smov 11  }
   0xa   :  { %s3849_s3 = sld [smem:[%s4489_s0 + %s3750_s30]]   ;;  %s3755_s26 = smov 12  }
   0xb   :  { %s3854_s8 = sld [smem:[%s4489_s0 + %s3751_s4]]   ;;  %s3756_s1 = smov 13  }
   0xc   :  { %4503 = sst [smem:[#allocation49_spill]] %s3839_s25  ;;  %s3757_s7 = smov 14  }
   0xd   :  { %s3859_s14 = sld [smem:[%s4489_s0 + %s3752_s10]]   ;;  %s3759_s22 = smov 16  }
   0xe   :  { %s3864_s19 = sld [smem:[%s4489_s0 + %s3753_s15]]   ;;  %s3758_s15 = smov 15  }
   0xf   :  { %4504 = sst [smem:[#allocation50_spill]] %s3844_s29  ;;  %s3760_s28 = smov 17  }
  0x10   :  { %4505 = sst [smem:[#allocation51_spill]] %s3849_s3 }
  0x11   :  { %s3869_s24 = sld [smem:[%s4489_s0 + %s3754_s20]]  }
  0x12   :  { %s3874_s30 = sld [smem:[%s4489_s0 + %s3755_s26]]  }
  0x13   :  { %s3879_s6 = sld [smem:[%s4489_s0 + %s3756_s1]]  }
  0x14   :  { %s3884_s12 = sld [smem:[%s4489_s0 + %s3757_s7]]   ;;  %s3761_s7 = smov 18  }
  0x15   :  { %s3889_s20 = sld [smem:[%s4489_s0 + %s3758_s15]]   ;;  %s3762_s15 = smov 19  }
  0x16   :  { %s3894_s27 = sld [smem:[%s4489_s0 + %s3759_s22]]   ;;  %s3763_s22 = smov 20  }
  0x17   :  { %s3899_s4 = sld [smem:[%s4489_s0 + %s3760_s28]]   ;;  %s3764_s28 = smov 21  }
  0x18   :  { %s3904_s9 = sld [smem:[%s4489_s0 + %s3761_s7]]   ;;  %s3765_s7 = smov 22  }
  0x19   :  { %s3909_s3 = sld [smem:[%s4489_s0 + %s3762_s15]]   ;;  %s3766_s15 = smov 23  }
  0x1a   :  { %s3914_s29 = sld [smem:[%s4489_s0 + %s3763_s22]]   ;;  %s3767_s22 = smov 24  }
  0x1b   :  { %4506 = sst [smem:[#allocation52_spill]] %s3889_s20 }
  0x1c   :  { %s3919_s25 = sld [smem:[%s4489_s0 + %s3764_s28]]   ;;  %s3768_s28 = smov 25  }
  0x1d   :  { %4507 = sst [smem:[#allocation53_spill]] %s3899_s4 }
  0x1e   :  { %s3924_s5 = sld [smem:[%s4489_s0 + %s3765_s7]]   ;;  %s3769_s7 = smov 26  }
  0x1f   :  { %4508 = sst [smem:[#allocation54_spill]] %s3909_s3 }
  0x20   :  { %4509 = sst [smem:[#allocation55_spill]] %s3914_s29 }
  0x21   :  { %s3929_s3 = sld [smem:[%s4489_s0 + %s3766_s15]]   ;;  %s3770_s15 = smov 27  }
  0x22   :  { %s3934_s29 = sld [smem:[%s4489_s0 + %s3767_s22]]   ;;  %s3771_s22 = smov 28  }
  0x23   :  { %s3939_s4 = sld [smem:[%s4489_s0 + %s3768_s28]]   ;;  %s3772_s28 = smov 29  }
  0x24   :  { %4510 = sst [smem:[#allocation56_spill]] %s3924_s5 }
  0x25   :  { %s3944_s5 = sld [smem:[%s4489_s0 + %s3769_s7]]  }
  0x26   :  { %s3949_s20 = sld [smem:[%s4489_s0 + %s3770_s15]]  }
  0x28   :  { %4511 = sst [smem:[#allocation57_spill]] %s3934_s29 }
  0x29   :  { %4512 = sst [smem:[#allocation58_spill]] %s3939_s4 }
  0x2a   :  { %s3954_s29 = sld [smem:[%s4489_s0 + %s3771_s22]]  }
  0x2b   :  { %s3959_s4 = sld [smem:[%s4489_s0 + %s3772_s28]]  }
  0x2c   :  { %64 = vsyncpa [#allocation3], 0 }
  0x2d   :  { %65 = vsyncpa [#allocation6], 0 }
  0x2e   :  { %66 = vsyncpa [#allocation9], 0 }
  0x2f   :  { %67 = vsyncpa [#allocation12], 0 }
  0x30   :  { %68 = vsyncpa [#allocation15], 0 }
  0x31   :  { %69 = vsyncpa [#allocation18], 0 }
  0x32   :  { %70 = vsyncpa [#allocation21], 0 }
  0x33   :  { %71 = vsyncpa [#allocation24], 0 }
  0x34   :  { %72 = vsyncpa [#allocation27], 0 }
  0x35   :  { %73 = vsyncpa [#allocation30], 0 }
  0x36   :  { %74 = vsyncpa [#allocation33], 0  ;;  %s98_s7 = sshll.u32 %s3829_s17, 4  ;;  %s99_s7 = int_to_ptr.hbm [resolvable:$true] %s98_s7 }
  0x37   :  { %75 = vsyncpa [#allocation4], 0  ;;  %s3773_s0 = smov [#allocation5]   ;;  %s125_s11 = sshll.u32 %s3854_s8, 4  ;;  %s126_s11 = int_to_ptr.hbm [resolvable:$true] %s125_s11 }
  0x38   :  { %s100_s10 = sshll.u32 %s3773_s0, 4  ;;  %s3216_s15 = sshra.s32 %s99_s7, 4  ;;  %s101_s10 = int_to_ptr.vmem [resolvable:$true] %s100_s10  ;;  %s3217_s15 = int_to_ptr.hbm [resolvable:$true] %s3216_s15 }
  0x39   :  { %s3218_s16 = scalar_lea.hbm %s3217_s15, 8  ;;  %s3220_s18 = scalar_lea.hbm %s3829_s17, 8 }
  0x3a   :  { %p3219_p0 = scmp.ne.s32.totalorder %s3217_s15, %s3218_s16  ;;  %p3221_p1 = scmp.lt.s32.totalorder %s3217_s15, %s3829_s17 }
  0x3b   :  { %p3222_p2 = scmp.lt.s32.totalorder %s3220_s18, %s3218_s16 }
  0x3d   :  { %p3223_p3 = por %p3222_p2, %p3221_p1 }
  0x3f   :  { %p3224_p4 = pnand %p3223_p3, %p3219_p0 }
  0x41   :  { %3227 = shalt.err (!%p3224_p4)
}
  0x42   :  { %103 = dma.hbm_to_vmem [thread:$0]  %s99_s7, 128, %s101_s10, [#allocation6]  }
  0x43   :  { %s3774_s22 = smov [#allocation8]   ;;  %s3240_s26 = sshra.s32 %s126_s11, 4  ;;  %s3241_s26 = int_to_ptr.hbm [resolvable:$true] %s3240_s26 }
  0x44   :  { %s127_s23 = sshll.u32 %s3774_s22, 4  ;;  %s3242_s28 = scalar_lea.hbm %s3241_s26, 2  ;;  %s128_s23 = int_to_ptr.vmem [resolvable:$true] %s127_s23 }
  0x45   :  { %p3243_p5 = scmp.ne.s32.totalorder %s3241_s26, %s3242_s28  ;;  %s3244_s1 = scalar_lea.hbm %s3854_s8, 2 }
  0x46   :  { %p3245_p6 = scmp.lt.s32.totalorder %s3241_s26, %s3854_s8  ;;  %p3246_p7 = scmp.lt.s32.totalorder %s3244_s1, %s3242_s28 }
  0x48   :  { %p3247_p8 = por %p3246_p7, %p3245_p6 }
  0x4a   :  { %p3248_p9 = pnand %p3247_p8, %p3243_p5 }
  0x4c   :  { %3251 = shalt.err (!%p3248_p9)
}
  0x4d   :  { %s3775_s17 = smov 16   ;;  %s3776_s2 = smov 1  }
  0x4e   :  { %133 = dma.hbm_to_vmem [thread:$0]  %s126_s11, 32, %s128_s23, [#allocation9], %s3775_s17, %s3775_s17, %s3776_s2  }
  0x4f   :  { %s151_s7 = sshll.u32 %s3864_s19, 4  ;;  %s3777_s0 = smov [#allocation11]   ;;  %s152_s7 = int_to_ptr.hbm [resolvable:$true] %s151_s7 }
  0x50   :  { %s153_s10 = sshll.u32 %s3777_s0, 4  ;;  %s177_s8 = sshll.u32 %s3874_s30, 4  ;;  %s154_s10 = int_to_ptr.vmem [resolvable:$true] %s153_s10  ;;  %s178_s8 = int_to_ptr.hbm [resolvable:$true] %s177_s8 }
  0x51   :  { %s3264_s15 = sshra.s32 %s152_s7, 4  ;;  %s3268_s18 = scalar_lea.hbm %s3864_s19, 2  ;;  %s3265_s15 = int_to_ptr.hbm [resolvable:$true] %s3264_s15 }
  0x52   :  { %s3266_s16 = scalar_lea.hbm %s3265_s15, 2  ;;  %p3269_p11 = scmp.lt.s32.totalorder %s3265_s15, %s3864_s19 }
  0x53   :  { %p3267_p10 = scmp.ne.s32.totalorder %s3265_s15, %s3266_s16  ;;  %p3270_p12 = scmp.lt.s32.totalorder %s3268_s18, %s3266_s16 }
  0x55   :  { %p3271_p13 = por %p3270_p12, %p3269_p11 }
  0x57   :  { %p3272_p0 = pnand %p3271_p13, %p3267_p10 }
  0x59   :  { %3275 = shalt.err (!%p3272_p0)
}
  0x5a   :  { %159 = dma.hbm_to_vmem [thread:$0]  %s152_s7, 32, %s154_s10, [#allocation12], %s3775_s17, %s3775_s17, %s3776_s2  }
  0x5b   :  { %s3778_s11 = smov [#allocation14]   ;;  %s203_s23 = sshll.u32 %s3884_s12, 4  ;;  %s3978_s23 = int_to_ptr.hbm [resolvable:$true] %s203_s23 }
  0x5c   :  { %s179_s22 = sshll.u32 %s3778_s11, 4  ;;  %s3288_s26 = sshra.s32 %s178_s8, 4  ;;  %s180_s22 = int_to_ptr.vmem [resolvable:$true] %s179_s22  ;;  %s3289_s26 = int_to_ptr.hbm [resolvable:$true] %s3288_s26 }
  0x5d   :  { %s3290_s19 = scalar_lea.hbm %s3289_s26, 2  ;;  %s3292_s28 = scalar_lea.hbm %s3874_s30, 2 }
  0x5e   :  { %p3291_p1 = scmp.ne.s32.totalorder %s3289_s26, %s3290_s19  ;;  %p3293_p2 = scmp.lt.s32.totalorder %s3289_s26, %s3874_s30 }
  0x5f   :  { %p3294_p3 = scmp.lt.s32.totalorder %s3292_s28, %s3290_s19 }
  0x61   :  { %p3295_p4 = por %p3294_p3, %p3293_p2 }
  0x63   :  { %p3296_p5 = pnand %p3295_p4, %p3291_p1 }
  0x65   :  { %3299 = shalt.err (!%p3296_p5)
}
  0x66   :  { %185 = dma.hbm_to_vmem [thread:$0]  %s178_s8, 32, %s180_s22, [#allocation15], %s3775_s17, %s3775_s17, %s3776_s2  }
  0x67   :  { %s229_s1 = sshll.u32 %s3894_s27, 4  ;;  %s3779_s7 = smov [#allocation17]   ;;  %s3986_s1 = int_to_ptr.hbm [resolvable:$true] %s229_s1 }
  0x68   :  { %s205_s0 = sshll.u32 %s3779_s7, 4  ;;  %s3312_s10 = sshra.s32 %s3978_s23, 4  ;;  %s206_s0 = int_to_ptr.vmem [resolvable:$true] %s205_s0  ;;  %s3313_s10 = int_to_ptr.hbm [resolvable:$true] %s3312_s10 }
  0x69   :  { %s3314_s30 = scalar_lea.hbm %s3313_s10, 2  ;;  %s3316_s15 = scalar_lea.hbm %s3884_s12, 2 }
  0x6a   :  { %p3315_p6 = scmp.ne.s32.totalorder %s3313_s10, %s3314_s30  ;;  %p3317_p7 = scmp.lt.s32.totalorder %s3313_s10, %s3884_s12 }
  0x6b   :  { %p3318_p8 = scmp.lt.s32.totalorder %s3316_s15, %s3314_s30 }
  0x6d   :  { %p3319_p9 = por %p3318_p8, %p3317_p7 }
  0x6f   :  { %p3320_p10 = pnand %p3319_p9, %p3315_p6 }
  0x71   :  { %3323 = shalt.err (!%p3320_p10)
}
  0x72   :  { %211 = dma.hbm_to_vmem [thread:$0]  %s3978_s23, 32, %s206_s0, [#allocation18], %s3775_s17, %s3775_s17, %s3776_s2  }
  0x73   :  { %s3780_s8 = smov [#allocation20]   ;;  %s255_s18 = sshll.u32 %s3904_s9, 4  ;;  %s3996_s18 = int_to_ptr.hbm [resolvable:$true] %s255_s18 }
  0x74   :  { %s231_s16 = sshll.u32 %s3780_s8, 4  ;;  %s3336_s12 = sshra.s32 %s3986_s1, 4  ;;  %s232_s16 = int_to_ptr.vmem [resolvable:$true] %s231_s16  ;;  %s3337_s12 = int_to_ptr.hbm [resolvable:$true] %s3336_s12 }
  0x75   :  { %s3338_s11 = scalar_lea.hbm %s3337_s12, 2  ;;  %s3340_s22 = scalar_lea.hbm %s3894_s27, 2 }
  0x76   :  { %p3339_p11 = scmp.ne.s32.totalorder %s3337_s12, %s3338_s11  ;;  %p3341_p12 = scmp.lt.s32.totalorder %s3337_s12, %s3894_s27 }
  0x77   :  { %p3342_p13 = scmp.lt.s32.totalorder %s3340_s22, %s3338_s11 }
  0x79   :  { %p3343_p0 = por %p3342_p13, %p3341_p12 }
  0x7b   :  { %p3344_p1 = pnand %p3343_p0, %p3339_p11 }
  0x7d   :  { %3347 = shalt.err (!%p3344_p1)
}
  0x7e   :  { %237 = dma.hbm_to_vmem [thread:$0]  %s3986_s1, 32, %s232_s16, [#allocation21], %s3775_s17, %s3775_s17, %s3776_s2  }
  0x7f   :  { %s283_s23 = sshll.u32 %s3919_s25, 4  ;;  %s3781_s26 = smov [#allocation23]   ;;  %s4006_s23 = int_to_ptr.hbm [resolvable:$true] %s283_s23 }
  0x80   :  { %s257_s19 = sshll.u32 %s3781_s26, 4  ;;  %s3360_s27 = sshra.s32 %s3996_s18, 4  ;;  %s258_s19 = int_to_ptr.vmem [resolvable:$true] %s257_s19  ;;  %s3361_s27 = int_to_ptr.hbm [resolvable:$true] %s3360_s27 }
  0x81   :  { %s3362_s28 = scalar_lea.hbm %s3361_s27, 2  ;;  %s3364_s7 = scalar_lea.hbm %s3904_s9, 2 }
  0x82   :  { %p3363_p2 = scmp.ne.s32.totalorder %s3361_s27, %s3362_s28  ;;  %p3365_p3 = scmp.lt.s32.totalorder %s3361_s27, %s3904_s9 }
  0x83   :  { %p3366_p4 = scmp.lt.s32.totalorder %s3364_s7, %s3362_s28 }
  0x85   :  { %p3367_p5 = por %p3366_p4, %p3365_p3 }
  0x87   :  { %p3368_p6 = pnand %p3367_p5, %p3363_p2 }
  0x89   :  { %3371 = shalt.err (!%p3368_p6)
}
  0x8a   :  { %263 = dma.hbm_to_vmem [thread:$0]  %s3996_s18, 32, %s258_s19, [#allocation24], %s3775_s17, %s3775_s17, %s3776_s2  }
  0x8b   :  { %s3782_s1 = smov [#allocation26]   ;;  %s309_s10 = sshll.u32 %s3929_s3, 4  ;;  %s4016_s10 = int_to_ptr.hbm [resolvable:$true] %s309_s10 }
  0x8c   :  { %s285_s0 = sshll.u32 %s3782_s1, 4  ;;  %s3384_s9 = sshra.s32 %s4006_s23, 4  ;;  %s286_s0 = int_to_ptr.vmem [resolvable:$true] %s285_s0  ;;  %s3385_s9 = int_to_ptr.hbm [resolvable:$true] %s3384_s9 }
  0x8d   :  { %s3386_s30 = scalar_lea.hbm %s3385_s9, 2  ;;  %s3388_s15 = scalar_lea.hbm %s3919_s25, 2 }
  0x8e   :  { %p3387_p7 = scmp.ne.s32.totalorder %s3385_s9, %s3386_s30  ;;  %p3389_p8 = scmp.lt.s32.totalorder %s3385_s9, %s3919_s25 }
  0x8f   :  { %p3390_p9 = scmp.lt.s32.totalorder %s3388_s15, %s3386_s30 }
  0x91   :  { %p3391_p10 = por %p3390_p9, %p3389_p8 }
  0x93   :  { %p3392_p11 = pnand %p3391_p10, %p3387_p7 }
  0x95   :  { %3395 = shalt.err (!%p3392_p11)
}
  0x96   :  { %291 = dma.hbm_to_vmem [thread:$0]  %s4006_s23, 32, %s286_s0, [#allocation27], %s3775_s17, %s3775_s17, %s3776_s2  }
  0x97   :  { %s84_s8 = sshll.u32 %s3824_s13, 4  ;;  %s3783_s16 = smov [#allocation29]   ;;  %s4026_s8 = int_to_ptr.hbm [resolvable:$true] %s84_s8 }
  0x98   :  { %s311_s18 = sshll.u32 %s3783_s16, 4  ;;  %s3408_s25 = sshra.s32 %s4016_s10, 4  ;;  %s312_s18 = int_to_ptr.vmem [resolvable:$true] %s311_s18  ;;  %s3409_s25 = int_to_ptr.hbm [resolvable:$true] %s3408_s25 }
  0x99   :  { %s3410_s12 = scalar_lea.hbm %s3409_s25, 2  ;;  %s3412_s11 = scalar_lea.hbm %s3929_s3, 2 }
  0x9a   :  { %p3411_p12 = scmp.ne.s32.totalorder %s3409_s25, %s3410_s12  ;;  %p3413_p13 = scmp.lt.s32.totalorder %s3409_s25, %s3929_s3 }
  0x9b   :  { %p3414_p0 = scmp.lt.s32.totalorder %s3412_s11, %s3410_s12 }
  0x9d   :  { %p3415_p1 = por %p3414_p0, %p3413_p13 }
  0x9f   :  { %p3416_p2 = pnand %p3415_p1, %p3411_p12 }
  0xa1   :  { %3419 = shalt.err (!%p3416_p2)
}
  0xa2   :  { %317 = dma.hbm_to_vmem [thread:$0]  %s4016_s10, 32, %s312_s18, [#allocation30], %s3775_s17, %s3775_s17, %s3776_s2  }
  0xa3   :  { %s3784_s22 = smov [#allocation2]   ;;  %s3432_s26 = sshra.s32 %s4026_s8, 4  ;;  %s3433_s26 = int_to_ptr.hbm [resolvable:$true] %s3432_s26 }
  0xa4   :  { %s86_s23 = sshll.u32 %s3784_s22, 4  ;;  %s3434_s19 = scalar_lea.hbm %s3433_s26, 8  ;;  %s87_s23 = int_to_ptr.vmem [resolvable:$true] %s86_s23 }
  0xa5   :  { %p3435_p3 = scmp.ne.s32.totalorder %s3433_s26, %s3434_s19  ;;  %s3436_s3 = scalar_lea.hbm %s3824_s13, 8 }
  0xa6   :  { %p3437_p4 = scmp.lt.s32.totalorder %s3433_s26, %s3824_s13  ;;  %p3438_p5 = scmp.lt.s32.totalorder %s3436_s3, %s3434_s19 }
  0xa8   :  { %p3439_p6 = por %p3438_p5, %p3437_p4 }
  0xaa   :  { %p3440_p7 = pnand %p3439_p6, %p3435_p3 }
  0xac   :  { %3443 = shalt.err (!%p3440_p7)
}
  0xad   :  { %s3785_s27 = smov 64   ;;  %s3786_s28 = smov 4  }
  0xae   :  { %92 = dma.hbm_to_vmem [thread:$0]  %s4026_s8, 128, %s87_s23, [#allocation3], %s3785_s27, %s3785_s27, %s3786_s28  }
  0xaf   :  { %s109_s7 = sshll.u32 %s3834_s21, 4  ;;  %s3787_s1 = smov [#allocation7]   ;;  %s110_s7 = int_to_ptr.hbm [resolvable:$true] %s109_s7 }
  0xb0   :  { %s111_s0 = sshll.u32 %s3787_s1, 4  ;;  %s138_s13 = sshll.u32 %s3859_s14, 4  ;;  %s112_s0 = int_to_ptr.vmem [resolvable:$true] %s111_s0  ;;  %s139_s13 = int_to_ptr.hbm [resolvable:$true] %s138_s13 }
  0xb1   :  { %s3456_s10 = sshra.s32 %s110_s7, 4  ;;  %s3460_s30 = scalar_lea.hbm %s3834_s21, 8  ;;  %s3457_s10 = int_to_ptr.hbm [resolvable:$true] %s3456_s10 }
  0xb2   :  { %s3458_s9 = scalar_lea.hbm %s3457_s10, 8  ;;  %p3461_p9 = scmp.lt.s32.totalorder %s3457_s10, %s3834_s21 }
  0xb3   :  { %p3459_p8 = scmp.ne.s32.totalorder %s3457_s10, %s3458_s9  ;;  %p3462_p10 = scmp.lt.s32.totalorder %s3460_s30, %s3458_s9 }
  0xb5   :  { %p3463_p11 = por %p3462_p10, %p3461_p9 }
  0xb7   :  { %p3464_p12 = pnand %p3463_p11, %p3459_p8 }
  0xb9   :  { %3467 = shalt.err (!%p3464_p12)
}
  0xba   :  { %114 = dma.hbm_to_vmem [thread:$0]  %s110_s7, 128, %s112_s0, [#allocation6]  }
  0xbb   :  { %s3788_s15 = smov [#allocation10]   ;;  %s164_s16 = sshll.u32 %s3869_s24, 4  ;;  %s4047_s16 = int_to_ptr.hbm [resolvable:$true] %s164_s16 }
  0xbc   :  { %s140_s8 = sshll.u32 %s3788_s15, 4  ;;  %s3480_s18 = sshra.s32 %s139_s13, 4  ;;  %s141_s8 = int_to_ptr.vmem [resolvable:$true] %s140_s8  ;;  %s3481_s18 = int_to_ptr.hbm [resolvable:$true] %s3480_s18 }
  0xbd   :  { %s3482_s25 = scalar_lea.hbm %s3481_s18, 2  ;;  %s3484_s21 = scalar_lea.hbm %s3859_s14, 2 }
  0xbe   :  { %p3483_p13 = scmp.ne.s32.totalorder %s3481_s18, %s3482_s25  ;;  %p3485_p0 = scmp.lt.s32.totalorder %s3481_s18, %s3859_s14 }
  0xbf   :  { %p3486_p1 = scmp.lt.s32.totalorder %s3484_s21, %s3482_s25 }
  0xc1   :  { %p3487_p2 = por %p3486_p1, %p3485_p0 }
  0xc3   :  { %p3488_p3 = pnand %p3487_p2, %p3483_p13 }
  0xc5   :  { %3491 = shalt.err (!%p3488_p3)
}
  0xc6   :  { %146 = dma.hbm_to_vmem [thread:$0]  %s139_s13, 32, %s141_s8, [#allocation9], %s3775_s17, %s3775_s17, %s3776_s2  }
  0xc7   :  { %s190_s12 = sshll.u32 %s3879_s6, 4  ;;  %s3789_s11 = smov [#allocation13]   ;;  %s4055_s12 = int_to_ptr.hbm [resolvable:$true] %s190_s12 }
  0xc8   :  { %s166_s22 = sshll.u32 %s3789_s11, 4  ;;  %s3504_s23 = sshra.s32 %s4047_s16, 4  ;;  %s167_s22 = int_to_ptr.vmem [resolvable:$true] %s166_s22  ;;  %s3505_s23 = int_to_ptr.hbm [resolvable:$true] %s3504_s23 }
  0xc9   :  { %s3506_s14 = scalar_lea.hbm %s3505_s23, 32  ;;  %s3508_s26 = scalar_lea.hbm %s3869_s24, 32 }
  0xca   :  { %p3507_p4 = scmp.ne.s32.totalorder %s3505_s23, %s3506_s14  ;;  %p3509_p5 = scmp.lt.s32.totalorder %s3505_s23, %s3869_s24 }
  0xcb   :  { %p3510_p6 = scmp.lt.s32.totalorder %s3508_s26, %s3506_s14 }
  0xcd   :  { %p3511_p7 = por %p3510_p6, %p3509_p5 }
  0xcf   :  { %p3512_p8 = pnand %p3511_p7, %p3507_p4 }
  0xd1   :  { %3515 = shalt.err (!%p3512_p8)
}
  0xd2   :  { %s4513_s19 = sld [smem:[#allocation52_spill]]  ;;  %s3790_s3 = smov [#allocation16]  }
  0xd3   :  { %172 = dma.hbm_to_vmem [thread:$0]  %s4047_s16, 512, %s167_s22, [#allocation12], %s3785_s27, %s3785_s27, %s3786_s28  }
  0xd4   :  { %s192_s7 = sshll.u32 %s3790_s3, 4  ;;  %s3528_s24 = sshra.s32 %s4055_s12, 4  ;;  %s193_s7 = int_to_ptr.vmem [resolvable:$true] %s192_s7  ;;  %s3529_s24 = int_to_ptr.hbm [resolvable:$true] %s3528_s24 }
  0xd5   :  { %s3530_s0 = scalar_lea.hbm %s3529_s24, 32  ;;  %s3532_s13 = scalar_lea.hbm %s3879_s6, 32 }
  0xd6   :  { %p3531_p9 = scmp.ne.s32.totalorder %s3529_s24, %s3530_s0  ;;  %p3533_p10 = scmp.lt.s32.totalorder %s3529_s24, %s3879_s6 }
  0xd7   :  { %p3534_p11 = scmp.lt.s32.totalorder %s3532_s13, %s3530_s0 }
  0xd8   :  { %s216_s1 = sshll.u32 %s4513_s19, 4  ;;  %s4065_s1 = int_to_ptr.hbm [resolvable:$true] %s216_s1 }
  0xd9   :  { %p3535_p12 = por %p3534_p11, %p3533_p10 }
  0xdb   :  { %p3536_p13 = pnand %p3535_p12, %p3531_p9 }
  0xdd   :  { %3539 = shalt.err (!%p3536_p13)
}
  0xde   :  { %s4514_s10 = sld [smem:[#allocation53_spill]]  ;;  %s3791_s30 = smov [#allocation19]  }
  0xdf   :  { %198 = dma.hbm_to_vmem [thread:$0]  %s4055_s12, 512, %s193_s7, [#allocation15], %s3785_s27, %s3785_s27, %s3786_s28  }
  0xe0   :  { %s218_s15 = sshll.u32 %s3791_s30, 4  ;;  %s3552_s6 = sshra.s32 %s4065_s1, 4  ;;  %s219_s15 = int_to_ptr.vmem [resolvable:$true] %s218_s15  ;;  %s3553_s6 = int_to_ptr.hbm [resolvable:$true] %s3552_s6 }
  0xe1   :  { %s3554_s8 = scalar_lea.hbm %s3553_s6, 32  ;;  %s3556_s16 = scalar_lea.hbm %s4513_s19, 32 }
  0xe2   :  { %p3555_p0 = scmp.ne.s32.totalorder %s3553_s6, %s3554_s8  ;;  %p3557_p1 = scmp.lt.s32.totalorder %s3553_s6, %s4513_s19 }
  0xe3   :  { %p3558_p2 = scmp.lt.s32.totalorder %s3556_s16, %s3554_s8 }
  0xe4   :  { %s242_s9 = sshll.u32 %s4514_s10, 4  ;;  %s4075_s9 = int_to_ptr.hbm [resolvable:$true] %s242_s9 }
  0xe5   :  { %p3559_p3 = por %p3558_p2, %p3557_p1 }
  0xe7   :  { %p3560_p4 = pnand %p3559_p3, %p3555_p0 }
  0xe9   :  { %3563 = shalt.err (!%p3560_p4)
}
  0xea   :  { %s4515_s18 = sld [smem:[#allocation55_spill]]  ;;  %s3792_s25 = smov [#allocation22]  }
  0xeb   :  { %224 = dma.hbm_to_vmem [thread:$0]  %s4065_s1, 512, %s219_s15, [#allocation18], %s3785_s27, %s3785_s27, %s3786_s28  }
  0xec   :  { %s244_s21 = sshll.u32 %s3792_s25, 4  ;;  %s3576_s11 = sshra.s32 %s4075_s9, 4  ;;  %s245_s21 = int_to_ptr.vmem [resolvable:$true] %s244_s21  ;;  %s3577_s11 = int_to_ptr.hbm [resolvable:$true] %s3576_s11 }
  0xed   :  { %s3578_s22 = scalar_lea.hbm %s3577_s11, 32  ;;  %s3580_s23 = scalar_lea.hbm %s4514_s10, 32 }
  0xee   :  { %p3579_p5 = scmp.ne.s32.totalorder %s3577_s11, %s3578_s22  ;;  %p3581_p6 = scmp.lt.s32.totalorder %s3577_s11, %s4514_s10 }
  0xef   :  { %p3582_p7 = scmp.lt.s32.totalorder %s3580_s23, %s3578_s22 }
  0xf0   :  { %s270_s12 = sshll.u32 %s4515_s18, 4  ;;  %s4085_s12 = int_to_ptr.hbm [resolvable:$true] %s270_s12 }
  0xf1   :  { %p3583_p8 = por %p3582_p7, %p3581_p6 }
  0xf3   :  { %p3584_p9 = pnand %p3583_p8, %p3579_p5 }
  0xf5   :  { %3587 = shalt.err (!%p3584_p9)
}
  0xf6   :  { %s4516_s14 = sld [smem:[#allocation56_spill]]  ;;  %s3793_s19 = smov [#allocation25]  }
  0xf7   :  { %250 = dma.hbm_to_vmem [thread:$0]  %s4075_s9, 512, %s245_s21, [#allocation21], %s3785_s27, %s3785_s27, %s3786_s28  }
  0xf8   :  { %s272_s3 = sshll.u32 %s3793_s19, 4  ;;  %s3600_s7 = sshra.s32 %s4085_s12, 4  ;;  %s273_s3 = int_to_ptr.vmem [resolvable:$true] %s272_s3  ;;  %s3601_s7 = int_to_ptr.hbm [resolvable:$true] %s3600_s7 }
  0xf9   :  { %s3602_s1 = scalar_lea.hbm %s3601_s7, 2  ;;  %s3604_s24 = scalar_lea.hbm %s4515_s18, 2 }
  0xfa   :  { %p3603_p10 = scmp.ne.s32.totalorder %s3601_s7, %s3602_s1  ;;  %p3605_p11 = scmp.lt.s32.totalorder %s3601_s7, %s4515_s18 }
  0xfb   :  { %p3606_p12 = scmp.lt.s32.totalorder %s3604_s24, %s3602_s1 }
  0xfc   :  { %s296_s26 = sshll.u32 %s4516_s14, 4  ;;  %s4095_s26 = int_to_ptr.hbm [resolvable:$true] %s296_s26 }
  0xfd   :  { %p3607_p13 = por %p3606_p12, %p3605_p11 }
  0xff   :  { %p3608_p0 = pnand %p3607_p13, %p3603_p10 }
 0x101   :  { %3611 = shalt.err (!%p3608_p0)
}
 0x102   :  { %s4517_s0 = sld [smem:[#allocation58_spill]]  ;;  %s3794_s13 = smov [#allocation28]  }
 0x103   :  { %278 = dma.hbm_to_vmem [thread:$0]  %s4085_s12, 32, %s273_s3, [#allocation24], %s3775_s17, %s3775_s17, %s3776_s2  }
 0x104   :  { %s298_s10 = sshll.u32 %s3794_s13, 4  ;;  %s3624_s30 = sshra.s32 %s4095_s26, 4  ;;  %s299_s10 = int_to_ptr.vmem [resolvable:$true] %s298_s10  ;;  %s3625_s30 = int_to_ptr.hbm [resolvable:$true] %s3624_s30 }
 0x105   :  { %s3626_s15 = scalar_lea.hbm %s3625_s30, 2  ;;  %s3628_s6 = scalar_lea.hbm %s4516_s14, 2 }
 0x106   :  { %p3627_p1 = scmp.ne.s32.totalorder %s3625_s30, %s3626_s15  ;;  %p3629_p2 = scmp.lt.s32.totalorder %s3625_s30, %s4516_s14 }
 0x107   :  { %p3630_p3 = scmp.lt.s32.totalorder %s3628_s6, %s3626_s15 }
 0x108   :  { %s324_s9 = sshll.u32 %s4517_s0, 4  ;;  %s4105_s9 = int_to_ptr.hbm [resolvable:$true] %s324_s9 }
 0x109   :  { %p3631_p4 = por %p3630_p3, %p3629_p2 }
 0x10b   :  { %p3632_p5 = pnand %p3631_p4, %p3627_p1 }
 0x10d   :  { %3635 = shalt.err (!%p3632_p5)
}
 0x10e   :  { %304 = dma.hbm_to_vmem [thread:$0]  %s4095_s26, 32, %s299_s10, [#allocation27], %s3775_s17, %s3775_s17, %s3776_s2  }
 0x10f   :  { %s339_s8 = sshll.u32 %s3949_s20, 4  ;;  %s3795_s16 = smov [#allocation31]   ;;  %s4115_s8 = int_to_ptr.hbm [resolvable:$true] %s339_s8 }
 0x110   :  { %s326_s18 = sshll.u32 %s3795_s16, 4  ;;  %s3648_s25 = sshra.s32 %s4105_s9, 4  ;;  %s327_s18 = int_to_ptr.vmem [resolvable:$true] %s326_s18  ;;  %s3649_s25 = int_to_ptr.hbm [resolvable:$true] %s3648_s25 }
 0x111   :  { %s3650_s21 = scalar_lea.hbm %s3649_s25, 2  ;;  %s3652_s12 = scalar_lea.hbm %s4517_s0, 2 }
 0x112   :  { %p3651_p6 = scmp.ne.s32.totalorder %s3649_s25, %s3650_s21  ;;  %p3653_p7 = scmp.lt.s32.totalorder %s3649_s25, %s4517_s0 }
 0x113   :  { %p3654_p8 = scmp.lt.s32.totalorder %s3652_s12, %s3650_s21 }
 0x115   :  { %p3655_p9 = por %p3654_p8, %p3653_p7 }
 0x117   :  { %p3656_p10 = pnand %p3655_p9, %p3651_p6 }
 0x119   :  { %3659 = shalt.err (!%p3656_p10)
}
 0x11a   :  { %332 = dma.hbm_to_vmem [thread:$0]  %s4105_s9, 32, %s327_s18, [#allocation30], %s3775_s17, %s3775_s17, %s3776_s2  }
 0x11b   :  { %s3796_s11 = smov [#allocation32]   ;;  %s3672_s23 = sshra.s32 %s4115_s8, 4  ;;  %s3673_s23 = int_to_ptr.hbm [resolvable:$true] %s3672_s23 }
 0x11c   :  { %s341_s22 = sshll.u32 %s3796_s11, 4  ;;  %s3674_s14 = scalar_lea.hbm %s3673_s23, 16  ;;  %s342_s22 = int_to_ptr.vmem [resolvable:$true] %s341_s22 }
 0x11d   :  { %p3675_p11 = scmp.ne.s32.totalorder %s3673_s23, %s3674_s14  ;;  %s3676_s26 = scalar_lea.hbm %s3949_s20, 16 }
 0x11e   :  { %p3677_p12 = scmp.lt.s32.totalorder %s3673_s23, %s3949_s20  ;;  %p3678_p13 = scmp.lt.s32.totalorder %s3676_s26, %s3674_s14 }
 0x120   :  { %p3679_p0 = por %p3678_p13, %p3677_p12 }
 0x122   :  { %p3680_p1 = pnand %p3679_p0, %p3675_p11 }
 0x124   :  { %3683 = shalt.err (!%p3680_p1)
}
 0x125   :  { %347 = dma.hbm_to_vmem [thread:$0]  %s4115_s8, 256, %s342_s22, [#allocation33], %s3785_s27, %s3785_s27, %s3786_s28  }
 0x126   :  { %3720 = dma.done.wait [#allocation3], 128  }
 0x127   :  { %3721 = vsyncadd [#allocation3], 4294967168 }
 0x128   :  { %3722 = dma.done.wait [#allocation6], 256  }
 0x129   :  { %3723 = vsyncadd [#allocation6], 4294967040 }
 0x12a   :  { %3724 = dma.done.wait [#allocation9], 64  }
 0x12b   :  { %3725 = vsyncadd [#allocation9], 4294967232 }
 0x12c   :  { %3726 = dma.done.wait [#allocation12], 544  }
 0x12d   :  { %3727 = vsyncadd [#allocation12], 4294966752 }
 0x12e   :  { %3728 = dma.done.wait [#allocation15], 544  }
 0x12f   :  { %3729 = vsyncadd [#allocation15], 4294966752 }
 0x130   :  { %3730 = dma.done.wait [#allocation18], 544  }
 0x131   :  { %3731 = vsyncadd [#allocation18], 4294966752 }
 0x132   :  { %3732 = dma.done.wait [#allocation21], 544  }
 0x133   :  { %3733 = vsyncadd [#allocation21], 4294966752 }
 0x134   :  { %3734 = dma.done.wait [#allocation24], 64  }
 0x135   :  { %3735 = vsyncadd [#allocation24], 4294967232 }
 0x136   :  { %3736 = dma.done.wait [#allocation27], 64  }
 0x137   :  { %3737 = vsyncadd [#allocation27], 4294967232 }
 0x138   :  { %3738 = dma.done.wait [#allocation30], 64  }
 0x139   :  { %3739 = vsyncadd [#allocation30], 4294967232 }
 0x13a   :  { %3740 = dma.done.wait [#allocation33], 256  }
 0x13b   :  { %3741 = vsyncadd [#allocation33], 4294967040  ;;  %s4518_s20 = sld [smem:[#allocation47_spill]]  ;;  %v3797_v0 = vmov 0   ;;  %v2990_v3 = vld [vmem:[#allocation2] sm:$0xff]  ;;  %v433_v4 = vlaneseq  ;;  %v3798_v8 = vmov 0.0  }
 0x13c   :  { %3087 = vset.pattern.permute.xlu0 %v3797_v0  ;;  %s4519_s17 = sld [smem:[#allocation49_spill]]  ;;  %467 = vmatpush.bf16.msra.mxu0 %v2990_v3  ;;  %vm456_vm2 = vcmask 130048   ;;  %v474_v19 = vld [vmem:[#allocation5] sm:$0xff]  ;;  %vm500_vm3 = vcmask 261120   ;;  %v3089_v24 = vld [vmem:[#allocation10] ss:$0 sm:$0xff] }
 0x13d   :  { %s4520_s2 = sld [smem:[#allocation50_spill]]  ;;  %v434_v6 = vand.u32 127, %v433_v4  ;;  %v3088_v26 = vld [vmem:[#allocation8] ss:$0 sm:$0xff]  ;;  %vm590_vm4 = vcmask 64512   ;;  %s3799_s28 = smov 120  }
 0x13e   :  { %s4521_s27 = sld [smem:[#allocation51_spill]]  ;;  %v3090_v31 = vld [vmem:[#allocation11] ss:$0 sm:$0xff]  ;;  %v4176_v41 = vld [vmem:[#allocation7] sm:$0xff]  ;;  %s3800_s19 = smov 112   ;;  %vm848_vm5 = vcmask 1043456  }
 0x13f   :  { %s3801_s3 = smov 104   ;;  %s4522_s7 = sld [smem:[#allocation48_spill]] }
 0x140   :  { %s4523_s1 = sld [smem:[#allocation57_spill]]  ;;  %s2702_s0 = sshll.u32 %s3959_s4, 4  ;;  %s2703_s0 = int_to_ptr.hbm [resolvable:$true] %s2702_s0 }
 0x141   :  { %v431_v1 = vld [vmem:[%s4518_s20] sm:$0xff]  ;;  %v432_v2 = vld [vmem:[%s4518_s20 + $0x8] sm:$0xff]  ;;  %s4524_s24 = sld [smem:[#allocation54_spill]]  ;;  %s3708_s13 = sshra.s32 %s2703_s0, 4  ;;  %s3709_s13 = int_to_ptr.hbm [resolvable:$true] %s3708_s13 }
 0x142   :  { %436 = vperm.xlu0 %3087, %v431_v1   ;;  %v2992_v12 = vld [vmem:[%s4519_s17 + $0x8] sm:$0xff]  ;;  %v2991_v15 = vld [vmem:[%s4519_s17] sm:$0xff]  ;;  %s3710_s10 = scalar_lea.hbm %s3709_s13, 16  ;;  %s3712_s9 = scalar_lea.hbm %s3959_s4, 16 }
 0x143   :  { %v2994_v13 = vld [vmem:[%s4520_s2 + $0x8] sm:$0xff]  ;;  %510 = vmatpush.bf16.msra.mxu1 %v2992_v12  ;;  %v2993_v16 = vld [vmem:[%s4520_s2] sm:$0xff]  ;;  %p3711_p2 = scmp.ne.s32.totalorder %s3709_s13, %s3710_s10  ;;  %p3713_p3 = scmp.lt.s32.totalorder %s3709_s13, %s3959_s4 }
 0x144   :  { %v2996_v14 = vld [vmem:[%s4521_s27 + $0x8] sm:$0xff]  ;;  %544 = vmatpush.bf16.msra.mxu2 %v2994_v13  ;;  %v2995_v17 = vld [vmem:[%s4521_s27] sm:$0xff]  ;;  %p3714_p4 = scmp.lt.s32.totalorder %s3712_s9, %s3710_s10 }
 0x145   :  { %578 = vmatpush.bf16.msra.mxu3 %v2996_v14 }
 0x146   :  { %p3715_p5 = por %p3714_p4, %p3713_p3 }
 0x147   :  { %511 = vmatpush.bf16.msra.mxu1 %v2991_v15 }
 0x148   :  { %545 = vmatpush.bf16.msra.mxu2 %v2993_v16  ;;  %p3716_p6 = pnand %p3715_p5, %p3711_p2 }
 0x149   :  { %579 = vmatpush.bf16.msra.mxu3 %v2995_v17 }
 0x14a   :  { %439 = vperm.xlu0 %3087, %v432_v2  }
 0x1b4   :  { %v437_v5 = vpop.permute.xlu0 %436 }
 0x1b5   :  { %vm441_vm0 = vcmp.eq.s32.totalorder %v437_v5, %v434_v6 }
 0x1b6   :  { %v2754_v9 = vsel %vm441_vm0, 1.0, %v3798_v8 }
 0x1bc   :  { %v440_v7 = vpop.permute.xlu0 %439 }
 0x1bd   :  { %vm442_vm1 = vcmp.eq.s32.totalorder %v440_v7, %v434_v6 }
 0x1be   :  { %v2755_v10 = vsel %vm442_vm1, 1.0, %v3798_v8 }
 0x1bf   :  { %v447_v11 = vpack.c.bf16 %v2755_v10, %v2754_v9 }
 0x1c1   :  { %2760 = vmatmul.msk.bf16.vlgmr.msra.gmra.mxu0 %vm456_vm2, %v447_v11 }
 0x23e   :  { %v469_v18 = vpop.f32.mrf.mxu0 }
 0x23f   :  { %v4139_v21 = vadd.f32 %v474_v19, %v469_v18 }
 0x246   :  { %v471_v20 = vpop.f32.mrf.mxu0 }
 0x247   :  { %v4141_v22 = vadd.f32 %v474_v19, %v471_v20 }
 0x249   :  { %v483_v23 = vpack.c.bf16 %v4141_v22, %v4139_v21 }
 0x24b   :  { %2769 = vmatmul.msk.bf16.vlgmr.msra.gmra.mxu1 %vm500_vm3, %v483_v23  ;;  %2778 = vmatmul.msk.bf16.vlgmr.msra.gmra.mxu2 %vm500_vm3, %v483_v23 }
 0x24c   :  { %2787 = vmatmul.msk.bf16.vlgmr.msra.gmra.mxu3 %vm500_vm3, %v483_v23 }
 0x2c8   :  { %v513_v25 = vpop.f32.mrf.mxu1 }
 0x2c9   :  { %v4154_v30 = vadd.f32 %v3088_v26, %v513_v25 }
 0x2ce   :  { %v547_v27 = vpop.f32.mrf.mxu2 }
 0x2cf   :  { %v4148_v28 = vadd.f32 %v3089_v24, %v547_v27  ;;  %v581_v29 = vpop.f32.mrf.mxu3 }
 0x2d0   :  { %v515_v33 = vpop.f32.mrf.mxu1  ;;  %v4160_v36 = vadd.f32 %v3090_v31, %v581_v29 }
 0x2d1   :  { %714 = vrot.lane.b32.xlu1 %v4148_v28, %s3799_s28  ;;  %2788 = vmatpush.xpose.msk.msrb.mxu3 %vm590_vm4, %v4148_v28  ;;  %v4168_v38 = vadd.f32 %v3088_v26, %v515_v33  ;;  %v586_v33 = vld [vmem:[#allocation13] sm:$0xf] }
 0x2d4   :  { %2789 = vmatmul.msk.f32.vlgmr.msrb.gmra.mxu3 %vm590_vm4, %v4154_v30 }
 0x2d6   :  { %v549_v32 = vpop.f32.mrf.mxu2 }
 0x2d7   :  { %v4158_v34 = vadd.f32 %v3089_v24, %v549_v32  ;;  %v583_v35 = vpop.f32.mrf.mxu3 }
 0x2d8   :  { %v4162_v37 = vadd.f32 %v3090_v31, %v583_v35  ;;  %v870_v35 = vsel %vm848_vm5, %v586_v33, 0 }
 0x2d9   :  { %2790 = vmatpush.xpose.msk.msrb.mxu2 %vm590_vm4, %v4158_v34  ;;  %712 = vrot.lane.b32.xlu1 %v4154_v30, %s3799_s28 }
 0x2da   :  { %706 = vmatpush.msra.mxu3 %v4162_v37 }
 0x2dc   :  { %2791 = vmatmul.msk.f32.vlgmr.msrb.gmra.mxu2 %vm590_vm4, %v4168_v38 }
 0x2dd   :  { %683 = vmatpush.msra.mxu2 %v4160_v36 }
 0x343   :  { %v715_v39 = vpop.permute.xlu1 %714 }
 0x344   :  { %2794 = vmatpush.xpose.msk.msrb.mxu0 %vm590_vm4, %v715_v39 }
 0x34b   :  { %v713_v40 = vpop.permute.xlu1 %712 }
 0x34c   :  { %2795 = vmatmul.msk.f32.vlgmr.msrb.gmra.mxu0 %vm590_vm4, %v713_v40 }
 0x357   :  { %v614_v42 = vpop.f32.mrf.mxu3 }
 0x358   :  { %v615_v43 = vadd.f32 %v614_v42, %v4176_v41 }
 0x35a   :  { %v643_v44 = vsel %vm590_vm4, %v615_v43, -inf }
 0x35b   :  { %644 = vmax.xlane.f32.xlu2 %v643_v44 }
 0x35f   :  { %v640_v59 = vpop.f32.mrf.mxu2 }
 0x360   :  { %v641_v61 = vadd.f32 %v640_v59, %v4176_v41 }
 0x362   :  { %v646_v63 = vsel %vm590_vm4, %v641_v61, -inf }
 0x3c9   :  { %v737_v45 = vpop.f32.mrf.mxu0 }
 0x3ca   :  { %v738_v46 = vadd.f32 %v737_v45, %v4176_v41 }
 0x3cc   :  { %v768_v47 = vsel %vm590_vm4, %v738_v46, -inf }
 0x3cd   :  { %769 = vmax.xlane.f32.xlu2 %v768_v47 }
 0x3ce   :  { %v645_v48 = vpop.xlane.xlu2 %644 }
 0x3cf   :  { %v649_v49 = vsub.f32 %v615_v43, %v645_v48 }
 0x3d1   :  { %v651_v50 = vmul.f32 1.442695, %v649_v49 }
 0x3d3   :  { %3117 = vpow2.f32 %v651_v50 }
 0x3d9   :  { %v3118_v51 = vpop.eup %3117 }
 0x3da   :  { %v655_v52 = vsel %vm590_vm4, %v3118_v51, 0.0 }
 0x3db   :  { %656 = vadd.xlane.f32.xlu0 %v655_v52 }
 0x3e5   :  { %742 = vrot.lane.b32.xlu2 %v4158_v34, %s3799_s28 }
 0x3ed   :  { %791 = vrot.lane.b32.xlu2 %v4160_v36, %s3799_s28 }
 0x3ef   :  { %886 = vrot.lane.b32.xlu0 %v4154_v30, %s3800_s19 }
 0x3f5   :  { %740 = vrot.lane.b32.xlu2 %v4168_v38, %s3799_s28 }
 0x3fd   :  { %888 = vrot.lane.b32.xlu2 %v4148_v28, %s3800_s19 }
 0x440   :  { %v770_v53 = vpop.xlane.xlu2 %769 }
 0x441   :  { %v774_v54 = vsub.f32 %v738_v46, %v770_v53 }
 0x443   :  { %v776_v55 = vmul.f32 1.442695, %v774_v54  ;;  %v587_v54 = vld [vmem:[#allocation13 + $0x4] sm:$0xf] }
 0x445   :  { %3119 = vpow2.f32 %v776_v55  ;;  %v850_v55 = vsel %vm848_vm5, %v587_v54, 0 }
 0x446   :  { %859 = vmatpush.bf16.msra.mxu0 %v850_v55 }
 0x448   :  { %v743_v56 = vpop.permute.xlu2 %742 }
 0x449   :  { %2796 = vmatpush.xpose.msk.msrb.mxu1 %vm590_vm4, %v743_v56 }
 0x44b   :  { %v3120_v57 = vpop.eup %3119 }
 0x44c   :  { %v780_v58 = vsel %vm590_vm4, %v3120_v57, 0.0 }
 0x44d   :  { %781 = vadd.xlane.f32.xlu1 %v780_v58  ;;  %879 = vmatpush.bf16.msra.mxu1 %v870_v35 }
 0x44e   :  { %v657_v60 = vpop.xlane.xlu0 %656 }
 0x44f   :  { %3121 = vrcp.f32 %v657_v60 }
 0x450   :  { %v792_v62 = vpop.permute.xlu2 %791 }
 0x451   :  { %812 = vmatpush.msrb.mxu2 %v792_v62 }
 0x455   :  { %v3122_v0 = vpop.eup %3121  ;;  %647 = vmax.xlane.f32.xlu1 %v646_v63 }
 0x456   :  { %v663_v1 = vmul.f32 %v3122_v0, %v3118_v51 }
 0x458   :  { %2792 = vmatmul.msk.f32.vlgmr.msra.gmra.mxu2 %vm590_vm4, %v663_v1  ;;  %v741_v2 = vpop.permute.xlu2 %740 }
 0x459   :  { %2797 = vmatmul.msk.f32.vlgmr.msrb.gmra.mxu1 %vm590_vm4, %v741_v2 }
 0x460   :  { %v889_v3 = vpop.permute.xlu2 %888 }
 0x461   :  { %2802 = vmatpush.xpose.msk.msra.mxu2 %vm590_vm4, %v889_v3  ;;  %v887_v10 = vpop.permute.xlu0 %886 }
 0x4c0   :  { %v782_v4 = vpop.xlane.xlu1 %781 }
 0x4c1   :  { %3123 = vrcp.f32 %v782_v4 }
 0x4c7   :  { %v3124_v5 = vpop.eup %3123 }
 0x4c8   :  { %v788_v6 = vmul.f32 %v3124_v5, %v3120_v57  ;;  %v648_v7 = vpop.xlane.xlu1 %647 }
 0x4c9   :  { %v650_v8 = vsub.f32 %v641_v61, %v648_v7 }
 0x4ca   :  { %2798 = vmatmul.msk.f32.vlgmr.msrb.gmra.mxu2 %vm590_vm4, %v788_v6 }
 0x4cb   :  { %v653_v9 = vmul.f32 1.442695, %v650_v8 }
 0x4cd   :  { %3125 = vpow2.f32 %v653_v9 }
 0x4d2   :  { %2803 = vmatmul.msk.f32.vlgmr.msra.gmra.mxu2 %vm590_vm4, %v887_v10 }
 0x4d3   :  { %v3126_v11 = vpop.eup %3125 }
 0x4d4   :  { %v658_v12 = vsel %vm590_vm4, %v3126_v11, 0.0 }
 0x4d5   :  { %659 = vadd.xlane.f32.xlu2 %v658_v12 }
 0x4d6   :  { %v765_v13 = vpop.f32.mrf.mxu1 }
 0x4d7   :  { %v766_v14 = vadd.f32 %v765_v13, %v4176_v41 }
 0x4d9   :  { %v771_v15 = vsel %vm590_vm4, %v766_v14, -inf }
 0x4da   :  { %772 = vmax.xlane.f32.xlu1 %v771_v15 }
 0x4db   :  { %v685_v16 = vpop.f32.mrf.mxu2 }
 0x4ed   :  { %914 = vrot.lane.b32.xlu2 %v4168_v38, %s3800_s19 }
 0x548   :  { %v660_v17 = vpop.xlane.xlu2 %659 }
 0x549   :  { %3127 = vrcp.f32 %v660_v17 }
 0x54d   :  { %v4207_v18 = vpop.f32.mrf.mxu2  ;;  %v773_v19 = vpop.xlane.xlu1 %772 }
 0x54e   :  { %v775_v20 = vsub.f32 %v766_v14, %v773_v19 }
 0x54f   :  { %v3128_v23 = vpop.eup %3127 }
 0x550   :  { %v664_v24 = vmul.f32 %v3128_v23, %v3126_v11  ;;  %v778_v25 = vmul.f32 1.442695, %v775_v20  ;;  %v915_v50 = vpop.permute.xlu2 %914 }
 0x552   :  { %3129 = vpow2.f32 %v778_v25  ;;  %2793 = vmatmul.msk.f32.vlgmr.msra.gmra.mxu3 %vm590_vm4, %v664_v24 }
 0x555   :  { %v911_v26 = vpop.f32.mrf.mxu2 }
 0x556   :  { %v912_v27 = vadd.f32 %v911_v26, %v4176_v41 }
 0x558   :  { %v3130_v29 = vpop.eup %3129  ;;  %v942_v31 = vsel %vm590_vm4, %v912_v27, -inf }
 0x559   :  { %943 = vmax.xlane.f32.xlu1 %v942_v31  ;;  %v783_v32 = vsel %vm590_vm4, %v3130_v29, 0.0 }
 0x55a   :  { %784 = vadd.xlane.f32.xlu0 %v783_v32 }
 0x56e   :  { %1041 = vrot.lane.b32.xlu0 %v4148_v28, %s3801_s3 }
 0x572   :  { %818 = vrot.lane.b32.xlu1 %v4162_v37, %s3799_s28 }
 0x57a   :  { %916 = vrot.lane.b32.xlu1 %v4158_v34, %s3800_s19 }
 0x582   :  { %964 = vrot.lane.b32.xlu1 %v4160_v36, %s3800_s19 }
 0x58a   :  { %1069 = vrot.lane.b32.xlu1 %v4158_v34, %s3801_s3 }
 0x592   :  { %1039 = vrot.lane.b32.xlu1 %v4154_v30, %s3801_s3 }
 0x5cc   :  { %v944_v28 = vpop.xlane.xlu1 %943 }
 0x5cd   :  { %v948_v39 = vsub.f32 %v912_v27, %v944_v28  ;;  %v785_v45 = vpop.xlane.xlu0 %784  ;;  %v588_v28 = vld [vmem:[#allocation13 + $0x8] sm:$0xf] }
 0x5cf   :  { %v950_v40 = vmul.f32 1.442695, %v948_v39  ;;  %v1021_v39 = vsel %vm848_vm5, %v588_v28, 0 }
 0x5d0   :  { %1030 = vmatpush.bf16.msrb.mxu0 %v1021_v39 }
 0x5d1   :  { %3131 = vpow2.f32 %v950_v40 }
 0x5d2   :  { %3133 = vrcp.f32 %v785_v45 }
 0x5d5   :  { %v708_v42 = vpop.f32.mrf.mxu3 }
 0x5d6   :  { %v711_v43 = vpack.c.bf16 %v708_v42, %v685_v16 }
 0x5d7   :  { %v3132_v44 = vpop.eup %3131 }
 0x5d8   :  { %2801 = vmatmul.msk.bf16.vlgmr.msra.gmra.mxu1 %vm590_vm4, %v711_v43  ;;  %v954_v34 = vsel %vm590_vm4, %v3132_v44, 0.0  ;;  %v3134_v46 = vpop.eup %3133 }
 0x5d9   :  { %955 = vadd.xlane.f32.xlu2 %v954_v34  ;;  %v789_v47 = vmul.f32 %v3134_v46, %v3130_v29  ;;  %v589_v34 = vld [vmem:[#allocation13 + $0xc] sm:$0xf] }
 0x5e0   :  { %v1042_v30 = vpop.permute.xlu0 %1041 }
 0x5e1   :  { %2809 = vmatpush.xpose.msk.msrb.mxu1 %vm590_vm4, %v1042_v30  ;;  %v1174_v30 = vsel %vm848_vm5, %v589_v34, 0 }
 0x5e4   :  { %v819_v48 = vpop.permute.xlu1 %818 }
 0x5e5   :  { %839 = vmatpush.msrb.mxu3 %v819_v48 }
 0x5e6   :  { %2799 = vmatmul.msk.f32.vlgmr.msrb.gmra.mxu3 %vm590_vm4, %v789_v47 }
 0x5ec   :  { %v917_v49 = vpop.permute.xlu1 %916 }
 0x5ed   :  { %2804 = vmatpush.xpose.msk.msra.mxu3 %vm590_vm4, %v917_v49  ;;  %v2998_v49 = vld [vmem:[#allocation16 + $0x8] sm:$0xff] }
 0x5f0   :  { %2805 = vmatmul.msk.f32.vlgmr.msra.gmra.mxu3 %vm590_vm4, %v915_v50  ;;  %v2997_v50 = vld [vmem:[#allocation16] sm:$0xff] }
 0x5f1   :  { %1067 = vrot.lane.b32.xlu2 %v4168_v38, %s3801_s3 }
 0x5f4   :  { %v965_v51 = vpop.permute.xlu1 %964 }
 0x5f5   :  { %985 = vmatpush.msrb.mxu2 %v965_v51  ;;  %v477_v51 = vld [vmem:[%s4522_s7] sm:$0x3] }
 0x5fc   :  { %v1070_v52 = vpop.permute.xlu1 %1069 }
 0x5fd   :  { %2811 = vmatpush.xpose.msk.msra.mxu2 %vm590_vm4, %v1070_v52  ;;  %v4268_v52 = vpack.c.bf16 %v477_v51, %v477_v51  ;;  %v3094_v51 = vld [vmem:[#allocation26] ss:$0 sm:$0xff] }
 0x604   :  { %v1040_v53 = vpop.permute.xlu1 %1039 }
 0x605   :  { %2810 = vmatmul.msk.f32.vlgmr.msrb.gmra.mxu1 %vm590_vm4, %v1040_v53 }
 0x64c   :  { %v956_v56 = vpop.xlane.xlu2 %955 }
 0x64d   :  { %3135 = vrcp.f32 %v956_v56 }
 0x653   :  { %v3136_v57 = vpop.eup %3135 }
 0x654   :  { %v962_v58 = vmul.f32 %v3136_v57, %v3132_v44  ;;  %v1068_v59 = vpop.permute.xlu2 %1067 }
 0x655   :  { %v4241_v61 = vpop.f32.mrf.mxu1 }
 0x656   :  { %2806 = vmatmul.msk.f32.vlgmr.msrb.gmra.mxu2 %vm590_vm4, %v962_v58  ;;  %v3091_v58 = vld [vmem:[#allocation14] ss:$0 sm:$0xff] }
 0x657   :  { %1183 = vmatpush.bf16.msrb.mxu2 %v1174_v30  ;;  %v3093_v30 = vld [vmem:[#allocation20] ss:$0 sm:$0xff] }
 0x65d   :  { %v4245_v1 = vpop.f32.mrf.mxu1 }
 0x65e   :  { %2812 = vmatmul.msk.f32.vlgmr.msra.gmra.mxu2 %vm590_vm4, %v1068_v59 }
 0x669   :  { %v841_v38 = vpop.f32.mrf.mxu3 }
 0x66a   :  { %v844_v60 = vpack.c.bf16 %v841_v38, %v4207_v18 }
 0x66c   :  { %2800 = vmatmul.msk.bf16.vlgmr.msra.gmra.mxu0 %vm590_vm4, %v844_v60 }
 0x673   :  { %v939_v62 = vpop.f32.mrf.mxu3 }
 0x674   :  { %v940_v63 = vadd.f32 %v939_v62, %v4176_v41 }
 0x676   :  { %v945_v0 = vsel %vm590_vm4, %v940_v63, -inf }
 0x677   :  { %946 = vmax.xlane.f32.xlu1 %v945_v0 }
 0x682   :  { %v1064_v2 = vpop.f32.mrf.mxu1 }
 0x683   :  { %v1065_v3 = vadd.f32 %v1064_v2, %v4176_v41 }
 0x685   :  { %v1095_v4 = vsel %vm590_vm4, %v1065_v3, -inf }
 0x686   :  { %1096 = vmax.xlane.f32.xlu0 %v1095_v4 }
 0x6d9   :  { %v987_v5 = vpop.f32.mrf.mxu2 }
 0x6e1   :  { %v1092_v6 = vpop.f32.mrf.mxu2 }
 0x6e2   :  { %v1093_v7 = vadd.f32 %v1092_v6, %v4176_v41 }
 0x6e4   :  { %v1098_v8 = vsel %vm590_vm4, %v1093_v7, -inf }
 0x6e5   :  { %1099 = vmax.xlane.f32.xlu2 %v1098_v8  ;;  %v3802_v8 = vmov 32.0  }
 0x6e9   :  { %v861_v53 = vpop.f32.mrf.mxu0 }
 0x6ea   :  { %v947_v9 = vpop.xlane.xlu1 %946  ;;  %v882_v56 = vadd.f32 %v4241_v61, %v861_v53 }
 0x6eb   :  { %v949_v10 = vsub.f32 %v940_v63, %v947_v9 }
 0x6ed   :  { %v952_v11 = vmul.f32 1.442695, %v949_v10  ;;  %v3000_v10 = vld [vmem:[#allocation19 + $0x8] sm:$0xff] }
 0x6ee   :  { %1330 = vmatpush.bf16.msra.mxu0 %v3000_v10 }
 0x6ef   :  { %3137 = vpow2.f32 %v952_v11 }
 0x6f1   :  { %v863_v54 = vpop.f32.mrf.mxu0 }
 0x6f2   :  { %v884_v63 = vadd.f32 %v4245_v1, %v863_v54  ;;  %v3092_v1 = vld [vmem:[#allocation17] ss:$0 sm:$0xff] }
 0x6f5   :  { %v3138_v12 = vpop.eup %3137 }
 0x6f6   :  { %v957_v13 = vsel %vm590_vm4, %v3138_v12, 0.0 }
 0x6f7   :  { %958 = vadd.xlane.f32.xlu1 %v957_v13 }
 0x6f9   :  { %v1097_v14 = vpop.xlane.xlu0 %1096 }
 0x6fa   :  { %v1101_v15 = vsub.f32 %v1065_v3, %v1097_v14 }
 0x6fc   :  { %v1103_v16 = vmul.f32 1.442695, %v1101_v15 }
 0x6fd   :  { %990 = vrot.lane.b32.xlu2 %v4162_v37, %s3800_s19 }
 0x6fe   :  { %3139 = vpow2.f32 %v1103_v16 }
 0x704   :  { %v3140_v17 = vpop.eup %3139 }
 0x705   :  { %v1107_v18 = vsel %vm590_vm4, %v3140_v17, 0.0 }
 0x706   :  { %1108 = vadd.xlane.f32.xlu0 %v1107_v18 }
 0x71a   :  { %1117 = vrot.lane.b32.xlu0 %v4160_v36, %s3801_s3 }
 0x758   :  { %v1100_v19 = vpop.xlane.xlu2 %1099 }
 0x759   :  { %v1102_v20 = vsub.f32 %v1093_v7, %v1100_v19 }
 0x75b   :  { %v1105_v23 = vmul.f32 1.442695, %v1102_v20 }
 0x75d   :  { %3141 = vpow2.f32 %v1105_v23 }
 0x760   :  { %v991_v24 = vpop.permute.xlu2 %990 }
 0x761   :  { %1011 = vmatpush.msrb.mxu3 %v991_v24 }
 0x763   :  { %v3142_v25 = vpop.eup %3141 }
 0x764   :  { %v1110_v26 = vsel %vm590_vm4, %v3142_v25, 0.0 }
 0x765   :  { %1111 = vadd.xlane.f32.xlu1 %v1110_v26 }
 0x76a   :  { %v959_v27 = vpop.xlane.xlu1 %958 }
 0x76b   :  { %3143 = vrcp.f32 %v959_v27 }
 0x771   :  { %v3144_v29 = vpop.eup %3143 }
 0x772   :  { %v963_v31 = vmul.f32 %v3144_v29, %v3138_v12  ;;  %v2999_v12 = vld [vmem:[#allocation19] sm:$0xff] }
 0x773   :  { %1331 = vmatpush.bf16.msra.mxu0 %v2999_v12 }
 0x774   :  { %2807 = vmatmul.msk.f32.vlgmr.msrb.gmra.mxu3 %vm590_vm4, %v963_v31 }
 0x779   :  { %v1109_v36 = vpop.xlane.xlu0 %1108 }
 0x77a   :  { %3145 = vrcp.f32 %v1109_v36 }
 0x77e   :  { %1143 = vrot.lane.b32.xlu1 %v4162_v37, %s3801_s3 }
 0x780   :  { %v3146_v32 = vpop.eup %3145 }
 0x781   :  { %v1115_v33 = vmul.f32 %v3146_v32, %v3140_v17 }
 0x78c   :  { %v1118_v35 = vpop.permute.xlu0 %1117 }
 0x78d   :  { %1138 = vmatpush.msra.mxu3 %v1118_v35 }
 0x78e   :  { %2813 = vmatmul.msk.f32.vlgmr.msra.gmra.mxu3 %vm590_vm4, %v1115_v33 }
 0x78f   :  { %1293 = vmatpush.bf16.msrb.mxu3 %v2998_v49 }
 0x793   :  { %1294 = vmatpush.bf16.msrb.mxu3 %v2997_v50 }
 0x796   :  { %2824 = vmatmul.msk.bf16.vlgmr.msrb.gmra.mxu3 %vm500_vm3, %v4268_v52 }
 0x7d8   :  { %v1112_v40 = vpop.xlane.xlu1 %1111 }
 0x7d9   :  { %3147 = vrcp.f32 %v1112_v40 }
 0x7da   :  { %3149 = vrcp.f32 %v3802_v8 }
 0x7df   :  { %v3148_v42 = vpop.eup %3147 }
 0x7e0   :  { %v1116_v43 = vmul.f32 %v3148_v42, %v3142_v25  ;;  %v3150_v9 = vpop.eup %3149 }
 0x7e1   :  { %v1209_v11 = vmul.f32 32.0, %v3150_v9  ;;  %vm1213_vm6 = vweird.f32 %v3150_v9 }
 0x7e3   :  { %v1210_v14 = vsub.f32 1.0, %v1209_v11 }
 0x7e5   :  { %v1211_v16 = vmul.f32 %v3150_v9, %v1210_v14 }
 0x7e7   :  { %v1212_v17 = vadd.f32 %v3150_v9, %v1211_v16 }
 0x7e9   :  { %v4279_v18 = vsel %vm1213_vm6, %v3150_v9, %v1212_v17  ;;  %vm1478_vm6 = vcmask 523264  }
 0x7f0   :  { %v1144_v44 = vpop.permute.xlu1 %1143 }
 0x7f1   :  { %1164 = vmatpush.msra.mxu1 %v1144_v44 }
 0x7f2   :  { %2814 = vmatmul.msk.f32.vlgmr.msra.gmra.mxu1 %vm590_vm4, %v1116_v43 }
 0x7f7   :  { %v1013_v37 = vpop.f32.mrf.mxu3 }
 0x7f8   :  { %v1016_v45 = vpack.c.bf16 %v1013_v37, %v987_v5 }
 0x7fa   :  { %2808 = vmatmul.msk.bf16.vlgmr.msrb.gmra.mxu0 %vm590_vm4, %v1016_v45 }
 0x811   :  { %v1140_v46 = vpop.f32.mrf.mxu3 }
 0x86f   :  { %v1166_v47 = vpop.f32.mrf.mxu1 }
 0x870   :  { %v1169_v48 = vpack.c.bf16 %v1166_v47, %v1140_v46 }
 0x872   :  { %2815 = vmatmul.msk.bf16.vlgmr.msrb.gmra.mxu2 %vm590_vm4, %v1169_v48 }
 0x877   :  { %v1032_v55 = vpop.f32.mrf.mxu0 }
 0x878   :  { %v1037_v57 = vadd.f32 %v1032_v55, %v882_v56  ;;  %v3095_v56 = vld [vmem:[#allocation28] ss:$0 sm:$0xff] }
 0x87f   :  { %v1034_v62 = vpop.f32.mrf.mxu0 }
 0x880   :  { %v1038_v2 = vadd.f32 %v1034_v62, %v884_v63 }
 0x8f5   :  { %v1185_v59 = vpop.f32.mrf.mxu2 }
 0x8f6   :  { %v1190_v38 = vadd.f32 %v1185_v59, %v1037_v57 }
 0x8f8   :  { %v1196_v60 = vadd.f32 %v3091_v58, %v1190_v38 }
 0x8fa   :  { %v1198_v0 = vadd.f32 %v1196_v60, %v4139_v21  ;;  %v1296_v21 = vpop.f32.mrf.mxu3 }
 0x8fb   :  { %v1297_v13 = vadd.f32 %v3092_v1, %v1296_v21 }
 0x8fc   :  { %v1202_v3 = vsel %vm500_vm3, %v1198_v0, 0.0 }
 0x8fd   :  { %v1187_v4 = vpop.f32.mrf.mxu2  ;;  %1203 = vadd.xlane.f32.xlu0 %v1202_v3  ;;  %v1304_v15 = vpack.c.bf16 %v1297_v13, %v1297_v13 }
 0x8fe   :  { %v1191_v5 = vadd.f32 %v1187_v4, %v1038_v2 }
 0x8ff   :  { %2833 = vmatmul.msk.bf16.vlgmr.msra.gmra.mxu0 %vm500_vm3, %v1304_v15 }
 0x900   :  { %v1197_v6 = vadd.f32 %v3091_v58, %v1191_v5 }
 0x902   :  { %v1199_v7 = vadd.f32 %v1197_v6, %v4141_v22  ;;  %v1298_v22 = vpop.f32.mrf.mxu3 }
 0x903   :  { %v3002_v22 = vld [vmem:[#allocation22 + $0x8] sm:$0xff] }
 0x904   :  { %v1205_v61 = vsel %vm500_vm3, %v1199_v7, 0.0  ;;  %1431 = vmatpush.bf16.msrb.mxu1 %v3002_v22 }
 0x905   :  { %1206 = vadd.xlane.f32.xlu2 %v1205_v61 }
 0x970   :  { %v1204_v19 = vpop.xlane.xlu0 %1203 }
 0x971   :  { %v1215_v20 = vmul.f32 %v4279_v18, %v1204_v19 }
 0x973   :  { %v1217_v23 = vsub.f32 %v1198_v0, %v1215_v20 }
 0x975   :  { %v1219_v24 = vmul.f32 %v1217_v23, %v1217_v23 }
 0x977   :  { %v1221_v25 = vsel %vm500_vm3, %v1219_v24, 0.0 }
 0x978   :  { %1222 = vadd.xlane.f32.xlu1 %v1221_v25  ;;  %v1207_v26 = vpop.xlane.xlu2 %1206 }
 0x979   :  { %v1216_v27 = vmul.f32 %v4279_v18, %v1207_v26 }
 0x97b   :  { %v1218_v29 = vsub.f32 %v1199_v7, %v1216_v27 }
 0x97c   :  { %v1333_v32 = vpop.f32.mrf.mxu0 }
 0x97d   :  { %v1220_v31 = vmul.f32 %v1218_v29, %v1218_v29  ;;  %v1334_v50 = vadd.f32 %v3093_v30, %v1333_v32  ;;  %v3097_v30 = vld [vmem:[%s4523_s1] ss:$0 sm:$0xff] }
 0x97f   :  { %v1224_v36 = vsel %vm500_vm3, %v1220_v31, 0.0  ;;  %v1339_v58 = vperm.slane %v1334_v50, 0  ;;  %v1338_v63 = vrot.slane %v1334_v50, 1 }
 0x980   :  { %1225 = vadd.xlane.f32.xlu2 %v1224_v36 }
 0x981   :  { %v1340_v5 = vperm.slane %v1338_v63, 0 }
 0x984   :  { %v1335_v33 = vpop.f32.mrf.mxu0 }
 0x9eb   :  { %v1223_v35 = vpop.xlane.xlu1 %1222 }
 0x9ec   :  { %v1227_v28 = vmul.f32 %v1223_v35, %v4279_v18 }
 0x9ee   :  { %v1229_v39 = vadd.f32 1e-05, %v1227_v28 }
 0x9f0   :  { %3151 = vrsqrt.f32 %v1229_v39  ;;  %vm1237_vm8 = vweird.f32 %v1229_v39 }
 0x9f3   :  { %v1226_v40 = vpop.xlane.xlu2 %1225 }
 0x9f4   :  { %v1228_v42 = vmul.f32 %v1226_v40, %v4279_v18 }
 0x9f6   :  { %v3152_v43 = vpop.eup %3151  ;;  %v1230_v44 = vadd.f32 1e-05, %v1228_v42 }
 0x9f7   :  { %v1232_v37 = vmul.f32 %v3152_v43, %v1229_v39  ;;  %vm1238_vm7 = vweird.f32 %v3152_v43 }
 0x9f8   :  { %3153 = vrsqrt.f32 %v1230_v44  ;;  %vm1239_vm9 = vmor %vm1237_vm8, %vm1238_vm7  ;;  %vm1247_vm11 = vweird.f32 %v1230_v44 }
 0x9f9   :  { %v1233_v45 = vmul.f32 %v3152_v43, %v1232_v37 }
 0x9fb   :  { %v1234_v34 = vmul.f32 0.5, %v1233_v45 }
 0x9fd   :  { %v1235_v46 = vsub.f32 1.5, %v1234_v34 }
 0x9fe   :  { %v3154_v47 = vpop.eup %3153 }
 0x9ff   :  { %v1236_v48 = vmul.f32 %v3152_v43, %v1235_v46  ;;  %v1242_v49 = vmul.f32 %v3154_v47, %v1230_v44  ;;  %vm1248_vm10 = vweird.f32 %v3154_v47  ;;  %v3096_v44 = vld [vmem:[#allocation29] ss:$0 sm:$0xff] }
 0xa00   :  { %vm1249_vm12 = vmor %vm1247_vm11, %vm1248_vm10 }
 0xa01   :  { %v1240_v53 = vsel %vm1239_vm9, %v3152_v43, %v1236_v48  ;;  %v1243_v54 = vmul.f32 %v3154_v47, %v1242_v49 }
 0xa02   :  { %v1251_v55 = vmul.f32 %v1240_v53, %v1217_v23  ;;  %v3001_v23 = vld [vmem:[#allocation22] sm:$0xff]  ;;  %v3006_v53 = vld [vmem:[%s4524_s24 + $0x18] sm:$0xff] }
 0xa03   :  { %v1244_v57 = vmul.f32 0.5, %v1243_v54  ;;  %1432 = vmatpush.bf16.msrb.mxu1 %v3001_v23  ;;  %1486 = vmatpush.bf16.msra.mxu2 %v3006_v53  ;;  %v3005_v54 = vld [vmem:[%s4524_s24 + $0x10] sm:$0xff] }
 0xa04   :  { %v1256_v59 = vmul.f32 %v3094_v51, %v1251_v55  ;;  %v3004_v55 = vld [vmem:[%s4524_s24 + $0x8] sm:$0xff] }
 0xa05   :  { %v1245_v38 = vsub.f32 1.5, %v1244_v57 }
 0xa06   :  { %v1261_v60 = vadd.f32 %v3095_v56, %v1256_v59 }
 0xa07   :  { %v1246_v62 = vmul.f32 %v3154_v47, %v1245_v38  ;;  %1487 = vmatpush.bf16.msra.mxu2 %v3005_v54 }
 0xa08   :  { %v1343_v0 = vadd.f32 %v1339_v58, %v1261_v60  ;;  %v3098_v58 = vld [vmem:[#allocation23] ss:$0 sm:$0xff] }
 0xa09   :  { %v1250_v2 = vsel %vm1249_vm12, %v3154_v47, %v1246_v62 }
 0xa0a   :  { %v1347_v3 = vsel %vm500_vm3, %v1343_v0, 0.0  ;;  %v1252_v4 = vmul.f32 %v1250_v2, %v1218_v29  ;;  %v3099_v2 = vld [vmem:[#allocation25] ss:$0 sm:$0xff] }
 0xa0b   :  { %1348 = vadd.xlane.f32.xlu0 %v1347_v3  ;;  %1488 = vmatpush.bf16.msra.mxu2 %v3004_v55 }
 0xa0c   :  { %v1257_v6 = vmul.f32 %v3094_v51, %v1252_v4 }
 0xa0e   :  { %v1262_v7 = vadd.f32 %v3095_v56, %v1257_v6  ;;  %v3003_v56 = vld [vmem:[%s4524_s24] sm:$0xff] }
 0xa0f   :  { %1489 = vmatpush.bf16.msra.mxu2 %v3003_v56 }
 0xa10   :  { %v1344_v61 = vadd.f32 %v1340_v5, %v1262_v7 }
 0xa12   :  { %v1350_v8 = vsel %vm500_vm3, %v1344_v61, 0.0 }
 0xa13   :  { %1351 = vadd.xlane.f32.xlu2 %v1350_v8 }
 0xa7e   :  { %v1349_v9 = vpop.xlane.xlu0 %1348 }
 0xa7f   :  { %v1353_v10 = vmul.f32 %v1349_v9, %v4279_v18 }
 0xa81   :  { %v1355_v1 = vsub.f32 %v1343_v0, %v1353_v10 }
 0xa83   :  { %v1357_v11 = vmul.f32 %v1355_v1, %v1355_v1 }
 0xa85   :  { %v1359_v21 = vsel %vm500_vm3, %v1357_v11, 0.0 }
 0xa86   :  { %1360 = vadd.xlane.f32.xlu0 %v1359_v21  ;;  %v1352_v12 = vpop.xlane.xlu2 %1351 }
 0xa87   :  { %v1354_v13 = vmul.f32 %v1352_v12, %v4279_v18 }
 0xa89   :  { %v1356_v14 = vsub.f32 %v1344_v61, %v1354_v13 }
 0xa8b   :  { %v1358_v15 = vmul.f32 %v1356_v14, %v1356_v14 }
 0xa8d   :  { %v1362_v16 = vsel %vm500_vm3, %v1358_v15, 0.0 }
 0xa8e   :  { %1363 = vadd.xlane.f32.xlu1 %v1362_v16 }
 0xaf9   :  { %v1361_v17 = vpop.xlane.xlu0 %1360 }
 0xafa   :  { %v1365_v19 = vmul.f32 %v1361_v17, %v4279_v18  ;;  %v3008_v17 = vld [vmem:[%s4519_s17 + $0x18] sm:$0xff] }
 0xafb   :  { %1586 = vmatpush.bf16.msra.mxu3 %v3008_v17 }
 0xafc   :  { %v1367_v20 = vadd.f32 1e-05, %v1365_v19  ;;  %v3010_v19 = vld [vmem:[%s4520_s2 + $0x18] sm:$0xff] }
 0xafd   :  { %1622 = vmatpush.bf16.msrb.mxu0 %v3010_v19 }
 0xafe   :  { %3155 = vrsqrt.f32 %v1367_v20  ;;  %vm1375_vm14 = vweird.f32 %v1367_v20 }
 0xb01   :  { %v1364_v24 = vpop.xlane.xlu1 %1363 }
 0xb02   :  { %v1366_v25 = vmul.f32 %v1364_v24, %v4279_v18 }
 0xb04   :  { %v3156_v26 = vpop.eup %3155  ;;  %v1368_v27 = vadd.f32 1e-05, %v1366_v25 }
 0xb05   :  { %v1370_v29 = vmul.f32 %v3156_v26, %v1367_v20  ;;  %vm1376_vm13 = vweird.f32 %v3156_v26  ;;  %v3012_v20 = vld [vmem:[%s4521_s27 + $0x18] sm:$0xff] }
 0xb06   :  { %3157 = vrsqrt.f32 %v1368_v27  ;;  %vm1377_vm15 = vmor %vm1375_vm14, %vm1376_vm13  ;;  %vm1385_vm1 = vweird.f32 %v1368_v27  ;;  %1658 = vmatpush.bf16.msra.mxu1 %v3012_v20 }
 0xb07   :  { %v1371_v31 = vmul.f32 %v3156_v26, %v1370_v29  ;;  %v3011_v29 = vld [vmem:[%s4521_s27 + $0x10] sm:$0xff] }
 0xb09   :  { %v1372_v36 = vmul.f32 0.5, %v1371_v31 }
 0xb0a   :  { %1659 = vmatpush.bf16.msra.mxu1 %v3011_v29 }
 0xb0b   :  { %v1373_v32 = vsub.f32 1.5, %v1372_v36 }
 0xb0c   :  { %v3158_v33 = vpop.eup %3157 }
 0xb0d   :  { %v1374_v35 = vmul.f32 %v3156_v26, %v1373_v32  ;;  %v1380_v28 = vmul.f32 %v3158_v33, %v1368_v27  ;;  %vm1386_vm0 = vweird.f32 %v3158_v33  ;;  %v3009_v27 = vld [vmem:[%s4520_s2 + $0x10] sm:$0xff] }
 0xb0e   :  { %vm1387_vm2 = vmor %vm1385_vm1, %vm1386_vm0  ;;  %1623 = vmatpush.bf16.msrb.mxu0 %v3009_v27 }
 0xb0f   :  { %v1381_v39 = vmul.f32 %v3158_v33, %v1380_v28  ;;  %v1378_v40 = vsel %vm1377_vm15, %v3156_v26, %v1374_v35  ;;  %v3007_v26 = vld [vmem:[%s4519_s17 + $0x10] sm:$0xff] }
 0xb10   :  { %v1389_v37 = vmul.f32 %v1378_v40, %v1355_v1  ;;  %1587 = vmatpush.bf16.msra.mxu3 %v3007_v26  ;;  %v4369_v26 = vld [vmem:[#allocation7] sm:$0xff] }
 0xb11   :  { %v1382_v42 = vmul.f32 0.5, %v1381_v39 }
 0xb12   :  { %v1394_v46 = vmul.f32 %v3096_v44, %v1389_v37 }
 0xb13   :  { %v1383_v43 = vsub.f32 1.5, %v1382_v42 }
 0xb14   :  { %v1399_v49 = vadd.f32 %v3097_v30, %v1394_v46  ;;  %v3100_v46 = vld [vmem:[#allocation31] ss:$0 sm:$0xff] }
 0xb15   :  { %v1384_v45 = vmul.f32 %v3158_v33, %v1383_v43 }
 0xb17   :  { %v1388_v34 = vsel %vm1387_vm2, %v3158_v33, %v1384_v45 }
 0xb18   :  { %v1390_v47 = vmul.f32 %v1388_v34, %v1356_v14 }
 0xb1a   :  { %v1395_v48 = vmul.f32 %v3096_v44, %v1390_v47 }
 0xb1c   :  { %v1400_v50 = vadd.f32 %v3097_v30, %v1395_v48 }
 0xb1e   :  { %v1405_v51 = vpack.c.bf16 %v1400_v50, %v1399_v49 }
 0xb20   :  { %2842 = vmatmul.msk.bf16.vlgmr.msrb.gmra.mxu1 %vm500_vm3, %v1405_v51 }
 0xb9d   :  { %v1434_v57 = vpop.f32.mrf.mxu1 }
 0xb9e   :  { %v1435_v59 = vadd.f32 %v3098_v58, %v1434_v57 }
 0xba0   :  { %v1439_v62 = vmax.f32 %v1435_v59, 0.0  ;;  %v3103_v59 = vld [vmem:[#allocation11 + $0x1] ss:$0 sm:$0xff] }
 0xba5   :  { %v1436_v38 = vpop.f32.mrf.mxu1 }
 0xba6   :  { %v1437_v60 = vadd.f32 %v3098_v58, %v1436_v38  ;;  %v3102_v58 = vld [vmem:[#allocation10 + $0x1] ss:$0 sm:$0xff] }
 0xba8   :  { %v1440_v63 = vmax.f32 %v1437_v60, 0.0 }
 0xbaa   :  { %v1449_v0 = vpack.c.bf16 %v1440_v63, %v1439_v62 }
 0xbac   :  { %2859 = vmatmul.msk.bf16.vlgmr.msra.gmra.mxu2 %vm1478_vm6, %v1449_v0  ;;  %v3104_v0 = vld [vmem:[#allocation8 + $0x1] ss:$0 sm:$0xff] }
 0xc2f   :  { %v1491_v3 = vpop.f32.mrf.mxu2 }
 0xc30   :  { %v1492_v4 = vadd.f32 %v3099_v2, %v1491_v3 }
 0xc32   :  { %v1496_v5 = vadd.f32 %v1492_v4, %v1399_v49 }
 0xc34   :  { %v1500_v6 = vsel %vm500_vm3, %v1496_v5, 0.0 }
 0xc35   :  { %1501 = vadd.xlane.f32.xlu2 %v1500_v6 }
 0xc37   :  { %v1493_v7 = vpop.f32.mrf.mxu2 }
 0xc38   :  { %v1494_v61 = vadd.f32 %v3099_v2, %v1493_v7 }
 0xc3a   :  { %v1497_v8 = vadd.f32 %v1494_v61, %v1400_v50  ;;  %v3101_v50 = vld [vmem:[%s3944_s5] ss:$0 sm:$0xff] }
 0xc3c   :  { %v1503_v9 = vsel %vm500_vm3, %v1497_v8, 0.0 }
 0xc3d   :  { %1504 = vadd.xlane.f32.xlu0 %v1503_v9 }
 0xca8   :  { %v1502_v10 = vpop.xlane.xlu2 %1501 }
 0xca9   :  { %v1506_v1 = vmul.f32 %v1502_v10, %v4279_v18 }
 0xcab   :  { %v1508_v11 = vsub.f32 %v1496_v5, %v1506_v1 }
 0xcad   :  { %v1510_v21 = vmul.f32 %v1508_v11, %v1508_v11 }
 0xcaf   :  { %v1512_v12 = vsel %vm500_vm3, %v1510_v21, 0.0 }
 0xcb0   :  { %v1505_v13 = vpop.xlane.xlu0 %1504  ;;  %1513 = vadd.xlane.f32.xlu1 %v1512_v12 }
 0xcb1   :  { %v1507_v14 = vmul.f32 %v1505_v13, %v4279_v18 }
 0xcb3   :  { %v1509_v15 = vsub.f32 %v1497_v8, %v1507_v14 }
 0xcb5   :  { %v1511_v16 = vmul.f32 %v1509_v15, %v1509_v15 }
 0xcb7   :  { %v1515_v22 = vsel %vm500_vm3, %v1511_v16, 0.0 }
 0xcb8   :  { %1516 = vadd.xlane.f32.xlu2 %v1515_v22 }
 0xd23   :  { %v1514_v23 = vpop.xlane.xlu1 %1513 }
 0xd24   :  { %v1518_v24 = vmul.f32 %v1514_v23, %v4279_v18 }
 0xd26   :  { %v1520_v25 = vadd.f32 1e-05, %v1518_v24 }
 0xd28   :  { %3159 = vrsqrt.f32 %v1520_v25  ;;  %vm1528_vm8 = vweird.f32 %v1520_v25 }
 0xd2b   :  { %v1517_v31 = vpop.xlane.xlu2 %1516 }
 0xd2c   :  { %v1519_v36 = vmul.f32 %v1517_v31, %v4279_v18 }
 0xd2e   :  { %v3160_v32 = vpop.eup %3159  ;;  %v1521_v33 = vadd.f32 1e-05, %v1519_v36 }
 0xd2f   :  { %v1523_v35 = vmul.f32 %v3160_v32, %v1520_v25  ;;  %vm1529_vm7 = vweird.f32 %v3160_v32 }
 0xd30   :  { %3161 = vrsqrt.f32 %v1521_v33  ;;  %vm1530_vm9 = vmor %vm1528_vm8, %vm1529_vm7  ;;  %vm1538_vm11 = vweird.f32 %v1521_v33 }
 0xd31   :  { %v1524_v28 = vmul.f32 %v3160_v32, %v1523_v35 }
 0xd33   :  { %v1525_v39 = vmul.f32 0.5, %v1524_v28 }
 0xd35   :  { %v1526_v40 = vsub.f32 1.5, %v1525_v39 }
 0xd36   :  { %v3162_v42 = vpop.eup %3161 }
 0xd37   :  { %v1527_v43 = vmul.f32 %v3160_v32, %v1526_v40  ;;  %v1533_v44 = vmul.f32 %v3162_v42, %v1521_v33  ;;  %vm1539_vm10 = vweird.f32 %v3162_v42 }
 0xd38   :  { %vm1540_vm12 = vmor %vm1538_vm11, %vm1539_vm10 }
 0xd39   :  { %v1534_v37 = vmul.f32 %v3162_v42, %v1533_v44  ;;  %v1531_v45 = vsel %vm1530_vm9, %v3160_v32, %v1527_v43 }
 0xd3a   :  { %v1542_v47 = vmul.f32 %v1531_v45, %v1508_v11 }
 0xd3b   :  { %v1535_v34 = vmul.f32 0.5, %v1534_v37 }
 0xd3c   :  { %v1547_v51 = vmul.f32 %v3100_v46, %v1542_v47 }
 0xd3d   :  { %v1536_v30 = vsub.f32 1.5, %v1535_v34 }
 0xd3e   :  { %v4317_v55 = vadd.f32 %v3101_v50, %v1547_v51 }
 0xd3f   :  { %v1537_v48 = vmul.f32 %v3162_v42, %v1536_v30 }
 0xd41   :  { %v1541_v49 = vsel %vm1540_vm12, %v3162_v42, %v1537_v48 }
 0xd42   :  { %v1543_v53 = vmul.f32 %v1541_v49, %v1509_v15 }
 0xd44   :  { %v1548_v54 = vmul.f32 %v3100_v46, %v1543_v53 }
 0xd46   :  { %v4319_v56 = vadd.f32 %v3101_v50, %v1548_v54 }
 0xd48   :  { %v1559_v57 = vpack.c.bf16 %v4319_v56, %v4317_v55 }
 0xd4a   :  { %2872 = vmatmul.msk.bf16.vlgmr.msra.gmra.mxu3 %vm500_vm3, %v1559_v57  ;;  %2885 = vmatmul.msk.bf16.vlgmr.msrb.gmra.mxu0 %vm500_vm3, %v1559_v57 }
 0xd4b   :  { %2898 = vmatmul.msk.bf16.vlgmr.msra.gmra.mxu1 %vm500_vm3, %v1559_v57 }
 0xdc7   :  { %v1625_v38 = vpop.f32.mrf.mxu0 }
 0xdc8   :  { %v4326_v60 = vadd.f32 %v3102_v58, %v1625_v38  ;;  %v1661_v62 = vpop.f32.mrf.mxu1 }
 0xdc9   :  { %v4328_v63 = vadd.f32 %v3103_v59, %v1661_v62 }
 0xdca   :  { %1794 = vrot.lane.b32.xlu0 %v4326_v60, %s3799_s28  ;;  %2899 = vmatpush.xpose.msk.msrb.mxu2 %vm590_vm4, %v4326_v60 }
 0xdcb   :  { %1763 = vmatpush.msra.mxu0 %v4328_v63 }
 0xdcd   :  { %v1589_v2 = vpop.f32.mrf.mxu3 }
 0xdce   :  { %v4335_v3 = vadd.f32 %v3104_v0, %v1589_v2 }
 0xdcf   :  { %v1627_v4 = vpop.f32.mrf.mxu0 }
 0xdd0   :  { %v4337_v5 = vadd.f32 %v3102_v58, %v1627_v4  ;;  %v1663_v6 = vpop.f32.mrf.mxu1  ;;  %1792 = vrot.lane.b32.xlu1 %v4335_v3, %s3799_s28  ;;  %2900 = vmatmul.msk.f32.vlgmr.msrb.gmra.mxu2 %vm590_vm4, %v4335_v3 }
 0xdd1   :  { %v4343_v7 = vadd.f32 %v3103_v59, %v1663_v6 }
 0xdd2   :  { %2901 = vmatpush.xpose.msk.msrb.mxu3 %vm590_vm4, %v4337_v5 }
 0xdd3   :  { %1786 = vmatpush.msrb.mxu1 %v4343_v7 }
 0xdd5   :  { %v1591_v61 = vpop.f32.mrf.mxu3 }
 0xdd6   :  { %v4348_v8 = vadd.f32 %v3104_v0, %v1591_v61 }
 0xdd8   :  { %2902 = vmatmul.msk.f32.vlgmr.msrb.gmra.mxu3 %vm590_vm4, %v4348_v8  ;;  %1822 = vrot.lane.b32.xlu1 %v4337_v5, %s3799_s28 }
 0xde0   :  { %1820 = vrot.lane.b32.xlu1 %v4348_v8, %s3799_s28 }
 0xde8   :  { %1967 = vrot.lane.b32.xlu1 %v4326_v60, %s3800_s19 }
 0xdf0   :  { %1965 = vrot.lane.b32.xlu1 %v4335_v3, %s3800_s19 }
 0xe3c   :  { %v1795_v9 = vpop.permute.xlu0 %1794 }
 0xe3d   :  { %2905 = vmatpush.xpose.msk.msra.mxu2 %vm590_vm4, %v1795_v9 }
 0xe42   :  { %v1793_v10 = vpop.permute.xlu1 %1792 }
 0xe43   :  { %2906 = vmatmul.msk.f32.vlgmr.msra.gmra.mxu2 %vm590_vm4, %v1793_v10 }
 0xe4a   :  { %v1823_v1 = vpop.permute.xlu1 %1822 }
 0xe4b   :  { %2907 = vmatpush.xpose.msk.msra.mxu3 %vm590_vm4, %v1823_v1 }
 0xe52   :  { %v1821_v11 = vpop.permute.xlu1 %1820 }
 0xe53   :  { %v1694_v21 = vpop.f32.mrf.mxu2  ;;  %2908 = vmatmul.msk.f32.vlgmr.msra.gmra.mxu3 %vm590_vm4, %v1821_v11 }
 0xe54   :  { %v1695_v12 = vadd.f32 %v1694_v21, %v4176_v41 }
 0xe56   :  { %v1723_v13 = vsel %vm590_vm4, %v1695_v12, -inf }
 0xe57   :  { %1724 = vmax.xlane.f32.xlu2 %v1723_v13 }
 0xe5a   :  { %v1968_v48 = vpop.permute.xlu1 %1967 }
 0xe5b   :  { %v1720_v20 = vpop.f32.mrf.mxu3 }
 0xe5c   :  { %v1721_v34 = vadd.f32 %v4369_v26, %v1720_v20 }
 0xe5e   :  { %v1726_v30 = vsel %vm590_vm4, %v1721_v34, -inf }
 0xe62   :  { %v1966_v51 = vpop.permute.xlu1 %1965 }
 0xec6   :  { %v1817_v14 = vpop.f32.mrf.mxu2 }
 0xec7   :  { %v1818_v15 = vadd.f32 %v1817_v14, %v4176_v41 }
 0xec9   :  { %v1848_v16 = vsel %vm590_vm4, %v1818_v15, -inf }
 0xeca   :  { %1849 = vmax.xlane.f32.xlu2 %v1848_v16  ;;  %v1725_v22 = vpop.xlane.xlu2 %1724 }
 0xecb   :  { %v1729_v17 = vsub.f32 %v1695_v12, %v1725_v22  ;;  %v1667_v12 = vld [vmem:[#allocation13 + $0x10] sm:$0xf] }
 0xecc   :  { %v1949_v13 = vsel %vm848_vm5, %v1667_v12, 0 }
 0xecd   :  { %v1731_v19 = vmul.f32 1.442695, %v1729_v17  ;;  %1958 = vmatpush.bf16.msrb.mxu3 %v1949_v13  ;;  %v1670_v13 = vld [vmem:[#allocation13 + $0x1c] sm:$0xf] }
 0xecf   :  { %3163 = vpow2.f32 %v1731_v19  ;;  %v1668_v19 = vld [vmem:[#allocation13 + $0x14] sm:$0xf] }
 0xed0   :  { %v1929_v20 = vsel %vm848_vm5, %v1668_v19, 0  ;;  %v3014_v19 = vld [vmem:[#allocation16 + $0x18] sm:$0xff] }
 0xed1   :  { %1938 = vmatpush.bf16.msrb.mxu2 %v1929_v20  ;;  %v3013_v20 = vld [vmem:[#allocation16 + $0x10] sm:$0xff] }
 0xed5   :  { %v3164_v23 = vpop.eup %3163 }
 0xed6   :  { %v1735_v24 = vsel %vm590_vm4, %v3164_v23, 0.0  ;;  %v1845_v25 = vpop.f32.mrf.mxu3 }
 0xed7   :  { %1736 = vadd.xlane.f32.xlu0 %v1735_v24  ;;  %v1846_v27 = vadd.f32 %v4369_v26, %v1845_v25 }
 0xed9   :  { %v1851_v29 = vsel %vm590_vm4, %v1846_v27, -inf }
 0xedf   :  { %1852 = vmax.xlane.f32.xlu0 %v1851_v29 }
 0xef3   :  { %1898 = vrot.lane.b32.xlu0 %v4343_v7, %s3799_s28 }
 0xf3d   :  { %v1850_v41 = vpop.xlane.xlu2 %1849 }
 0xf3e   :  { %v1854_v31 = vsub.f32 %v1818_v15, %v1850_v41 }
 0xf40   :  { %v1856_v36 = vmul.f32 1.442695, %v1854_v31 }
 0xf42   :  { %3165 = vpow2.f32 %v1856_v36 }
 0xf48   :  { %v3166_v32 = vpop.eup %3165 }
 0xf49   :  { %v1860_v33 = vsel %vm590_vm4, %v3166_v32, 0.0 }
 0xf4a   :  { %v1737_v35 = vpop.xlane.xlu0 %1736  ;;  %1861 = vadd.xlane.f32.xlu2 %v1860_v33 }
 0xf4b   :  { %3167 = vrcp.f32 %v1737_v35 }
 0xf51   :  { %v3168_v28 = vpop.eup %3167 }
 0xf52   :  { %v1743_v39 = vmul.f32 %v3168_v28, %v3164_v23  ;;  %v1853_v40 = vpop.xlane.xlu0 %1852 }
 0xf53   :  { %v1855_v42 = vsub.f32 %v1846_v27, %v1853_v40 }
 0xf54   :  { %2903 = vmatmul.msk.f32.vlgmr.msra.gmra.mxu0 %vm590_vm4, %v1743_v39 }
 0xf55   :  { %v1858_v43 = vmul.f32 1.442695, %v1855_v42 }
 0xf57   :  { %3169 = vpow2.f32 %v1858_v43 }
 0xf5d   :  { %v3170_v44 = vpop.eup %3169 }
 0xf5e   :  { %v1863_v37 = vsel %vm590_vm4, %v3170_v44, 0.0 }
 0xf5f   :  { %1864 = vadd.xlane.f32.xlu0 %v1863_v37 }
 0xf62   :  { %1871 = vrot.lane.b32.xlu2 %v4328_v63, %s3799_s28 }
 0xf65   :  { %v1899_v45 = vpop.permute.xlu0 %1898 }
 0xf66   :  { %1919 = vmatpush.msra.mxu1 %v1899_v45 }
 0xf8b   :  { %1727 = vmax.xlane.f32.xlu2 %v1726_v30 }
 0xfa3   :  { %2043 = vrot.lane.b32.xlu2 %v4328_v63, %s3800_s19 }
 0xfab   :  { %2148 = vrot.lane.b32.xlu2 %v4337_v5, %s3801_s3 }
 0xfb3   :  { %2146 = vrot.lane.b32.xlu2 %v4348_v8, %s3801_s3 }
 0xfbd   :  { %v1862_v46 = vpop.xlane.xlu2 %1861 }
 0xfbe   :  { %3171 = vrcp.f32 %v1862_v46 }
 0xfc4   :  { %v3172_v47 = vpop.eup %3171 }
 0xfc5   :  { %v1868_v49 = vmul.f32 %v3172_v47, %v3166_v32  ;;  %v1872_v50 = vpop.permute.xlu2 %1871 }
 0xfc6   :  { %1892 = vmatpush.msrb.mxu0 %v1872_v50 }
 0xfc7   :  { %2909 = vmatmul.msk.f32.vlgmr.msrb.gmra.mxu0 %vm590_vm4, %v1868_v49 }
 0xfc8   :  { %2913 = vmatpush.xpose.msk.msra.mxu0 %vm590_vm4, %v1968_v48 }
 0xfcf   :  { %2914 = vmatmul.msk.f32.vlgmr.msra.gmra.mxu0 %vm590_vm4, %v1966_v51 }
 0xfd1   :  { %v1765_v0 = vpop.f32.mrf.mxu0 }
 0xfd2   :  { %v1865_v10 = vpop.xlane.xlu0 %1864 }
 0xffe   :  { %v1728_v53 = vpop.xlane.xlu2 %1727 }
 0xfff   :  { %v1730_v54 = vsub.f32 %v1721_v34, %v1728_v53 }
0x1001   :  { %v1733_v57 = vmul.f32 1.442695, %v1730_v54 }
0x1003   :  { %3173 = vpow2.f32 %v1733_v57 }
0x1006   :  { %v2044_v58 = vpop.permute.xlu2 %2043 }
0x1007   :  { %2064 = vmatpush.msrb.mxu0 %v2044_v58 }
0x1009   :  { %v3174_v59 = vpop.eup %3173 }
0x100a   :  { %v1738_v38 = vsel %vm590_vm4, %v3174_v59, 0.0 }
0x100b   :  { %1739 = vadd.xlane.f32.xlu1 %v1738_v38 }
0x100e   :  { %v2149_v62 = vpop.permute.xlu2 %2148 }
0x100f   :  { %2922 = vmatpush.xpose.msk.msra.mxu0 %vm590_vm4, %v2149_v62 }
0x1024   :  { %1995 = vrot.lane.b32.xlu1 %v4337_v5, %s3800_s19 }
0x102c   :  { %2118 = vrot.lane.b32.xlu1 %v4335_v3, %s3801_s3 }
0x1044   :  { %v1894_v2 = vpop.f32.mrf.mxu0 }
0x104c   :  { %v1990_v4 = vpop.f32.mrf.mxu0 }
0x104d   :  { %v1991_v6 = vadd.f32 %v4369_v26, %v1990_v4 }
0x104f   :  { %v2021_v61 = vsel %vm590_vm4, %v1991_v6, -inf }
0x1050   :  { %2022 = vmax.xlane.f32.xlu0 %v2021_v61 }
0x1064   :  { %2120 = vrot.lane.b32.xlu0 %v4326_v60, %s3801_s3 }
0x107e   :  { %v1740_v9 = vpop.xlane.xlu1 %1739 }
0x107f   :  { %3175 = vrcp.f32 %v1740_v9 }
0x1080   :  { %3177 = vrcp.f32 %v1865_v10 }
0x1085   :  { %v3176_v1 = vpop.eup %3175 }
0x1086   :  { %v1744_v5 = vmul.f32 %v3176_v1, %v3174_v59  ;;  %v3178_v3 = vpop.eup %3177 }
0x1087   :  { %v1869_v11 = vmul.f32 %v3178_v3, %v3170_v44 }
0x1088   :  { %2904 = vmatmul.msk.f32.vlgmr.msrb.gmra.mxu1 %vm590_vm4, %v1744_v5 }
0x1090   :  { %2910 = vmatmul.msk.f32.vlgmr.msra.gmra.mxu1 %vm590_vm4, %v1869_v11 }
0x1096   :  { %v1996_v21 = vpop.permute.xlu1 %1995 }
0x1097   :  { %2915 = vmatpush.xpose.msk.msrb.mxu1 %vm590_vm4, %v1996_v21  ;;  %v1669_v21 = vld [vmem:[#allocation13 + $0x18] sm:$0xf] }
0x1098   :  { %v2100_v12 = vsel %vm848_vm5, %v1669_v21, 0 }
0x1099   :  { %2109 = vmatpush.bf16.msra.mxu2 %v2100_v12 }
0x109e   :  { %v2119_v29 = vpop.permute.xlu1 %2118 }
0x10c3   :  { %v2023_v60 = vpop.xlane.xlu0 %2022 }
0x10c4   :  { %v2027_v14 = vsub.f32 %v1991_v6, %v2023_v60  ;;  %v2253_v60 = vsel %vm848_vm5, %v1670_v13, 0  ;;  %v3108_v13 = vld [vmem:[#allocation26 + $0x1] ss:$0 sm:$0xff] }
0x10c6   :  { %v2029_v15 = vmul.f32 1.442695, %v2027_v14 }
0x10c8   :  { %3179 = vpow2.f32 %v2029_v15 }
0x10ce   :  { %v3180_v16 = vpop.eup %3179 }
0x10cf   :  { %v2033_v22 = vsel %vm590_vm4, %v3180_v16, 0.0 }
0x10d0   :  { %2034 = vadd.xlane.f32.xlu0 %v2033_v22 }
0x10d6   :  { %v2121_v17 = vpop.permute.xlu0 %2120 }
0x10d7   :  { %2920 = vmatpush.xpose.msk.msra.mxu3 %vm590_vm4, %v2121_v17 }
0x10e4   :  { %1993 = vrot.lane.b32.xlu0 %v4348_v8, %s3800_s19  ;;  %v2147_v8 = vpop.permute.xlu2 %2146 }
0x1105   :  { %v1788_v23 = vpop.f32.mrf.mxu1 }
0x1106   :  { %v1791_v24 = vpack.c.bf16 %v1788_v23, %v1765_v0 }
0x1108   :  { %2912 = vmatmul.msk.bf16.vlgmr.msrb.gmra.mxu3 %vm590_vm4, %v1791_v24 }
0x110d   :  { %v1921_v25 = vpop.f32.mrf.mxu1 }
0x110e   :  { %v1924_v27 = vpack.c.bf16 %v1921_v25, %v1894_v2 }
0x1110   :  { %2911 = vmatmul.msk.bf16.vlgmr.msrb.gmra.mxu2 %vm590_vm4, %v1924_v27 }
0x1118   :  { %2921 = vmatmul.msk.f32.vlgmr.msra.gmra.mxu3 %vm590_vm4, %v2119_v29 }
0x1143   :  { %v2035_v41 = vpop.xlane.xlu0 %2034 }
0x1144   :  { %3181 = vrcp.f32 %v2035_v41  ;;  %v3105_v41 = vld [vmem:[#allocation14 + $0x1] ss:$0 sm:$0xff] }
0x114a   :  { %v3182_v31 = vpop.eup %3181 }
0x114b   :  { %v2041_v36 = vmul.f32 %v3182_v31, %v3180_v16 }
0x114d   :  { %2917 = vmatmul.msk.f32.vlgmr.msrb.gmra.mxu0 %vm590_vm4, %v2041_v36 }
0x114e   :  { %2262 = vmatpush.bf16.msrb.mxu0 %v2253_v60 }
0x1155   :  { %2923 = vmatmul.msk.f32.vlgmr.msra.gmra.mxu0 %vm590_vm4, %v2147_v8 }
0x1156   :  { %v1994_v32 = vpop.permute.xlu0 %1993 }
0x1157   :  { %2916 = vmatmul.msk.f32.vlgmr.msrb.gmra.mxu1 %vm590_vm4, %v1994_v32 }
0x118b   :  { %v4416_v33 = vpop.f32.mrf.mxu3 }
0x1193   :  { %v4418_v35 = vpop.f32.mrf.mxu3  ;;  %v1940_v23 = vpop.f32.mrf.mxu2 }
0x1194   :  { %v1961_v25 = vadd.f32 %v4416_v33, %v1940_v23 }
0x119b   :  { %v2143_v28 = vpop.f32.mrf.mxu3  ;;  %v1942_v24 = vpop.f32.mrf.mxu2 }
0x119c   :  { %v2144_v39 = vadd.f32 %v4369_v26, %v2143_v28  ;;  %v1963_v32 = vadd.f32 %v4418_v35, %v1942_v24  ;;  %v3015_v35 = vld [vmem:[#allocation19 + $0x10] sm:$0xff] }
0x119e   :  { %v2174_v40 = vsel %vm590_vm4, %v2144_v39, -inf }
0x119f   :  { %2175 = vmax.xlane.f32.xlu2 %v2174_v40 }
0x11ca   :  { %v4422_v42 = vpop.f32.mrf.mxu0 }
0x11d2   :  { %v2171_v43 = vpop.f32.mrf.mxu0 }
0x11d3   :  { %v2172_v44 = vadd.f32 %v4369_v26, %v2171_v43 }
0x11d4   :  { %v2018_v37 = vpop.f32.mrf.mxu1 }
0x11d5   :  { %v2019_v45 = vadd.f32 %v4369_v26, %v2018_v37  ;;  %v2177_v34 = vsel %vm590_vm4, %v2172_v44, -inf }
0x11d6   :  { %2178 = vmax.xlane.f32.xlu1 %v2177_v34  ;;  %v3106_v34 = vld [vmem:[#allocation17 + $0x1] ss:$0 sm:$0xff] }
0x11d7   :  { %v2024_v30 = vsel %vm590_vm4, %v2019_v45, -inf }
0x11d8   :  { %2025 = vmax.xlane.f32.xlu0 %v2024_v30 }
0x1212   :  { %v2176_v46 = vpop.xlane.xlu2 %2175 }
0x1213   :  { %v2180_v47 = vsub.f32 %v2144_v39, %v2176_v46 }
0x1215   :  { %v2182_v48 = vmul.f32 1.442695, %v2180_v47 }
0x1217   :  { %3183 = vpow2.f32 %v2182_v48 }
0x121d   :  { %v3184_v49 = vpop.eup %3183 }
0x121e   :  { %v2186_v50 = vsel %vm590_vm4, %v3184_v49, 0.0 }
0x121f   :  { %2187 = vadd.xlane.f32.xlu1 %v2186_v50 }
0x1238   :  { %2196 = vrot.lane.b32.xlu1 %v4328_v63, %s3801_s3 }
0x1249   :  { %v2179_v51 = vpop.xlane.xlu1 %2178 }
0x124a   :  { %v2181_v53 = vsub.f32 %v2172_v44, %v2179_v51 }
0x124b   :  { %v2026_v26 = vpop.xlane.xlu0 %2025 }
0x124c   :  { %v2184_v54 = vmul.f32 1.442695, %v2181_v53  ;;  %v2028_v57 = vsub.f32 %v2019_v45, %v2026_v26  ;;  %v3016_v45 = vld [vmem:[#allocation19 + $0x18] sm:$0xff] }
0x124d   :  { %2405 = vmatpush.bf16.msrb.mxu2 %v3016_v45 }
0x124e   :  { %3185 = vpow2.f32 %v2184_v54  ;;  %v2031_v58 = vmul.f32 1.442695, %v2028_v57 }
0x1250   :  { %3187 = vpow2.f32 %v2031_v58 }
0x1251   :  { %2406 = vmatpush.bf16.msrb.mxu2 %v3015_v35  ;;  %v3018_v35 = vld [vmem:[#allocation22 + $0x18] sm:$0xff] }
0x1254   :  { %v3186_v59 = vpop.eup %3185 }
0x1255   :  { %v2189_v38 = vsel %vm590_vm4, %v3186_v59, 0.0 }
0x1256   :  { %v3188_v62 = vpop.eup %3187  ;;  %2190 = vadd.xlane.f32.xlu2 %v2189_v38 }
0x1257   :  { %v2036_v0 = vsel %vm590_vm4, %v3188_v62, 0.0 }
0x1258   :  { %2037 = vadd.xlane.f32.xlu0 %v2036_v0 }
0x126c   :  { %2069 = vrot.lane.b32.xlu0 %v4343_v7, %s3800_s19 }
0x126e   :  { %2222 = vrot.lane.b32.xlu2 %v4343_v7, %s3801_s3 }
0x1292   :  { %v2188_v9 = vpop.xlane.xlu1 %2187 }
0x12aa   :  { %v2197_v3 = vpop.permute.xlu1 %2196 }
0x12c9   :  { %v2191_v63 = vpop.xlane.xlu2 %2190 }
0x12ca   :  { %3189 = vrcp.f32 %v2191_v63 }
0x12cb   :  { %v2038_v61 = vpop.xlane.xlu0 %2037 }
0x12cc   :  { %3191 = vrcp.f32 %v2038_v61 }
0x12cd   :  { %3193 = vrcp.f32 %v2188_v9 }
0x12d0   :  { %v3190_v2 = vpop.eup %3189 }
0x12d1   :  { %v2195_v4 = vmul.f32 %v3190_v2, %v3186_v59  ;;  %v2223_v6 = vpop.permute.xlu2 %2222 }
0x12d2   :  { %2243 = vmatpush.msrb.mxu3 %v2223_v6  ;;  %v3192_v10 = vpop.eup %3191 }
0x12d3   :  { %2925 = vmatmul.msk.f32.vlgmr.msrb.gmra.mxu3 %vm590_vm4, %v2195_v4  ;;  %v2042_v1 = vmul.f32 %v3192_v10, %v3188_v62  ;;  %v3194_v7 = vpop.eup %3193 }
0x12d4   :  { %v2194_v11 = vmul.f32 %v3194_v7, %v3184_v49  ;;  %2510 = vmatpush.bf16.msra.mxu3 %v3018_v35 }
0x12de   :  { %v2070_v5 = vpop.permute.xlu0 %2069 }
0x12df   :  { %2090 = vmatpush.msra.mxu1 %v2070_v5  ;;  %v3107_v5 = vld [vmem:[#allocation20 + $0x1] ss:$0 sm:$0xff] }
0x12e0   :  { %2918 = vmatmul.msk.f32.vlgmr.msra.gmra.mxu1 %vm590_vm4, %v2042_v1 }
0x12e1   :  { %2217 = vmatpush.msrb.mxu1 %v2197_v3 }
0x12e3   :  { %2366 = vmatpush.bf16.msra.mxu1 %v3014_v19 }
0x12e7   :  { %2367 = vmatpush.bf16.msra.mxu1 %v3013_v20 }
0x12e8   :  { %2924 = vmatmul.msk.f32.vlgmr.msrb.gmra.mxu1 %vm590_vm4, %v2194_v11 }
0x12f0   :  { %2935 = vmatmul.msk.bf16.vlgmr.msra.gmra.mxu1 %vm500_vm3, %v4268_v52 }
0x1356   :  { %v2245_v16 = vpop.f32.mrf.mxu3 }
0x135d   :  { %v2092_v14 = vpop.f32.mrf.mxu1 }
0x135e   :  { %v2095_v15 = vpack.c.bf16 %v2092_v14, %v4422_v42 }
0x1360   :  { %2919 = vmatmul.msk.bf16.vlgmr.msra.gmra.mxu2 %vm590_vm4, %v2095_v15 }
0x1365   :  { %v2219_v22 = vpop.f32.mrf.mxu1 }
0x1366   :  { %v2248_v17 = vpack.c.bf16 %v2245_v16, %v2219_v22  ;;  %v3109_v16 = vld [vmem:[#allocation28 + $0x1] ss:$0 sm:$0xff] }
0x1368   :  { %2926 = vmatmul.msk.bf16.vlgmr.msrb.gmra.mxu0 %vm590_vm4, %v2248_v17 }
0x136d   :  { %v2369_v30 = vpop.f32.mrf.mxu1 }
0x136e   :  { %v2370_v46 = vadd.f32 %v3106_v34, %v2369_v30 }
0x1375   :  { %v2371_v47 = vpop.f32.mrf.mxu1 }
0x13e3   :  { %v2111_v27 = vpop.f32.mrf.mxu2 }
0x13e4   :  { %v2116_v29 = vadd.f32 %v2111_v27, %v1961_v25 }
0x13e5   :  { %v2264_v31 = vpop.f32.mrf.mxu0 }
0x13e6   :  { %v2269_v36 = vadd.f32 %v2264_v31, %v2116_v29 }
0x13e8   :  { %v2276_v8 = vadd.f32 %v3105_v41, %v2269_v36 }
0x13ea   :  { %v2278_v28 = vadd.f32 %v2276_v8, %v4317_v55  ;;  %v2378_v55 = vpack.c.bf16 %v2370_v46, %v2370_v46 }
0x13eb   :  { %v2113_v39 = vpop.f32.mrf.mxu2 }
0x13ec   :  { %v2117_v40 = vadd.f32 %v2113_v39, %v1963_v32  ;;  %v2284_v42 = vsel %vm500_vm3, %v2278_v28, 0.0  ;;  %2944 = vmatmul.msk.bf16.vlgmr.msrb.gmra.mxu2 %vm500_vm3, %v2378_v55 }
0x13ed   :  { %2285 = vadd.xlane.f32.xlu0 %v2284_v42  ;;  %v2266_v52 = vpop.f32.mrf.mxu0 }
0x13ee   :  { %v2270_v43 = vadd.f32 %v2266_v52, %v2117_v40 }
0x13f0   :  { %v2277_v44 = vadd.f32 %v3105_v41, %v2270_v43 }
0x13f2   :  { %v2279_v33 = vadd.f32 %v2277_v44, %v4319_v56 }
0x13f4   :  { %v2287_v37 = vsel %vm500_vm3, %v2279_v33, 0.0 }
0x13f5   :  { %2288 = vadd.xlane.f32.xlu2 %v2287_v37 }
0x1460   :  { %v2286_v48 = vpop.xlane.xlu0 %2285 }
0x1461   :  { %v2290_v49 = vmul.f32 %v2286_v48, %v4279_v18  ;;  %v3017_v48 = vld [vmem:[#allocation22 + $0x10] sm:$0xff] }
0x1462   :  { %2511 = vmatpush.bf16.msra.mxu3 %v3017_v48 }
0x1463   :  { %v2292_v50 = vsub.f32 %v2278_v28, %v2290_v49 }
0x1465   :  { %v2294_v51 = vmul.f32 %v2292_v50, %v2292_v50 }
0x1467   :  { %v2296_v56 = vsel %vm500_vm3, %v2294_v51, 0.0 }
0x1468   :  { %2297 = vadd.xlane.f32.xlu1 %v2296_v56  ;;  %v2289_v53 = vpop.xlane.xlu2 %2288 }
0x1469   :  { %v2291_v26 = vmul.f32 %v2289_v53, %v4279_v18 }
0x146b   :  { %v2293_v54 = vsub.f32 %v2279_v33, %v2291_v26 }
0x146d   :  { %v2295_v57 = vmul.f32 %v2293_v54, %v2293_v54 }
0x146f   :  { %v2299_v58 = vsel %vm500_vm3, %v2295_v57, 0.0  ;;  %v2408_v59 = vpop.f32.mrf.mxu2 }
0x1470   :  { %2300 = vadd.xlane.f32.xlu0 %v2299_v58  ;;  %v2409_v12 = vadd.f32 %v3107_v5, %v2408_v59 }
0x1472   :  { %v2414_v17 = vperm.slane %v2409_v12, 0  ;;  %v2413_v25 = vrot.slane %v2409_v12, 1  ;;  %v3022_v12 = vld [vmem:[%s4524_s24 + $0x38] sm:$0xff] }
0x1473   :  { %2566 = vmatpush.bf16.msra.mxu0 %v3022_v12 }
0x1474   :  { %v2415_v36 = vperm.slane %v2413_v25, 0  ;;  %v3113_v25 = vld [vmem:[#allocation25 + $0x1] ss:$0 sm:$0xff] }
0x1477   :  { %v2410_v38 = vpop.f32.mrf.mxu2 }
0x14db   :  { %v2298_v62 = vpop.xlane.xlu1 %2297 }
0x14dc   :  { %v2302_v0 = vmul.f32 %v2298_v62, %v4279_v18 }
0x14de   :  { %v2304_v63 = vadd.f32 1e-05, %v2302_v0 }
0x14e0   :  { %3195 = vrsqrt.f32 %v2304_v63  ;;  %vm2312_vm5 = vweird.f32 %v2304_v63 }
0x14e3   :  { %v2301_v2 = vpop.xlane.xlu0 %2300 }
0x14e4   :  { %v2303_v4 = vmul.f32 %v2301_v2, %v4279_v18 }
0x14e6   :  { %v3196_v6 = vpop.eup %3195  ;;  %v2305_v61 = vadd.f32 1e-05, %v2303_v4  ;;  %v3110_v4 = vld [vmem:[#allocation29 + $0x1] ss:$0 sm:$0xff] }
0x14e7   :  { %v2307_v9 = vmul.f32 %v3196_v6, %v2304_v63  ;;  %vm2313_vm4 = vweird.f32 %v3196_v6 }
0x14e8   :  { %3197 = vrsqrt.f32 %v2305_v61  ;;  %vm2314_vm13 = vmor %vm2312_vm5, %vm2313_vm4  ;;  %vm2322_vm15 = vweird.f32 %v2305_v61 }
0x14e9   :  { %v2308_v10 = vmul.f32 %v3196_v6, %v2307_v9 }
0x14eb   :  { %v2309_v1 = vmul.f32 0.5, %v2308_v10  ;;  %v3111_v10 = vld [vmem:[%s4523_s1 + $0x1] ss:$0 sm:$0xff] }
0x14ed   :  { %v2310_v3 = vsub.f32 1.5, %v2309_v1 }
0x14ee   :  { %v3198_v7 = vpop.eup %3197 }
0x14ef   :  { %v2311_v11 = vmul.f32 %v3196_v6, %v2310_v3  ;;  %v2317_v21 = vmul.f32 %v3198_v7, %v2305_v61  ;;  %vm2323_vm14 = vweird.f32 %v3198_v7 }
0x14f0   :  { %vm2324_vm0 = vmor %vm2322_vm15, %vm2323_vm14 }
0x14f1   :  { %v2315_v60 = vsel %vm2314_vm13, %v3196_v6, %v2311_v11  ;;  %v2318_v14 = vmul.f32 %v3198_v7, %v2317_v21 }
0x14f2   :  { %v2326_v15 = vmul.f32 %v2315_v60, %v2292_v50  ;;  %v3020_v60 = vld [vmem:[%s4524_s24 + $0x28] sm:$0xff] }
0x14f3   :  { %v2319_v22 = vmul.f32 0.5, %v2318_v14  ;;  %v3019_v14 = vld [vmem:[%s4524_s24 + $0x20] sm:$0xff] }
0x14f4   :  { %v2331_v19 = vmul.f32 %v3108_v13, %v2326_v15 }
0x14f5   :  { %v2320_v20 = vsub.f32 1.5, %v2319_v22 }
0x14f6   :  { %v2336_v23 = vadd.f32 %v3109_v16, %v2331_v19 }
0x14f7   :  { %v2321_v24 = vmul.f32 %v3198_v7, %v2320_v20 }
0x14f8   :  { %v2418_v27 = vadd.f32 %v2414_v17, %v2336_v23 }
0x14f9   :  { %v2325_v29 = vsel %vm2324_vm0, %v3198_v7, %v2321_v24 }
0x14fa   :  { %v2424_v41 = vsel %vm500_vm3, %v2418_v27, 0.0  ;;  %v2327_v31 = vmul.f32 %v2325_v29, %v2293_v54 }
0x14fb   :  { %2425 = vadd.xlane.f32.xlu0 %v2424_v41 }
0x14fc   :  { %v2332_v8 = vmul.f32 %v3108_v13, %v2327_v31  ;;  %v3021_v13 = vld [vmem:[%s4524_s24 + $0x30] sm:$0xff] }
0x14fd   :  { %2567 = vmatpush.bf16.msra.mxu0 %v3021_v13 }
0x14fe   :  { %v2337_v32 = vadd.f32 %v3109_v16, %v2332_v8  ;;  %v3112_v16 = vld [vmem:[#allocation23 + $0x1] ss:$0 sm:$0xff] }
0x1500   :  { %v2419_v28 = vadd.f32 %v2415_v36, %v2337_v32 }
0x1501   :  { %2568 = vmatpush.bf16.msra.mxu0 %v3020_v60 }
0x1502   :  { %v2427_v39 = vsel %vm500_vm3, %v2419_v28, 0.0 }
0x1503   :  { %2428 = vadd.xlane.f32.xlu2 %v2427_v39 }
0x1505   :  { %2569 = vmatpush.bf16.msra.mxu0 %v3019_v14 }
0x156e   :  { %v2426_v40 = vpop.xlane.xlu0 %2425 }
0x156f   :  { %v2430_v42 = vmul.f32 %v2426_v40, %v4279_v18 }
0x1571   :  { %v2432_v52 = vsub.f32 %v2418_v27, %v2430_v42 }
0x1573   :  { %v2434_v43 = vmul.f32 %v2432_v52, %v2432_v52 }
0x1575   :  { %v2436_v44 = vsel %vm500_vm3, %v2434_v43, 0.0 }
0x1576   :  { %v2429_v33 = vpop.xlane.xlu2 %2428  ;;  %2437 = vadd.xlane.f32.xlu1 %v2436_v44 }
0x1577   :  { %v2431_v37 = vmul.f32 %v2429_v33, %v4279_v18 }
0x1579   :  { %v2433_v45 = vsub.f32 %v2419_v28, %v2431_v37 }
0x157b   :  { %v2435_v34 = vmul.f32 %v2433_v45, %v2433_v45 }
0x157d   :  { %v2439_v30 = vsel %vm500_vm3, %v2435_v34, 0.0 }
0x157e   :  { %2440 = vadd.xlane.f32.xlu0 %v2439_v30  ;;  %v3024_v30 = vld [vmem:[#allocation32 + $0x8] sm:$0xff] }
0x157f   :  { %2666 = vmatpush.bf16.msrb.mxu1 %v3024_v30 }
0x15e9   :  { %v2438_v46 = vpop.xlane.xlu1 %2437 }
0x15ea   :  { %v2442_v55 = vmul.f32 %v2438_v46, %v4279_v18 }
0x15ec   :  { %v2444_v47 = vadd.f32 1e-05, %v2442_v55 }
0x15ee   :  { %3199 = vrsqrt.f32 %v2444_v47  ;;  %vm2452_vm2 = vweird.f32 %v2444_v47 }
0x15f1   :  { %v2441_v49 = vpop.xlane.xlu0 %2440 }
0x15f2   :  { %v2443_v50 = vmul.f32 %v2441_v49, %v4279_v18 }
0x15f4   :  { %v3200_v51 = vpop.eup %3199  ;;  %v2445_v56 = vadd.f32 1e-05, %v2443_v50 }
0x15f5   :  { %v2447_v53 = vmul.f32 %v3200_v51, %v2444_v47  ;;  %vm2453_vm1 = vweird.f32 %v3200_v51  ;;  %v3023_v47 = vld [vmem:[#allocation32] sm:$0xff] }
0x15f6   :  { %3201 = vrsqrt.f32 %v2445_v56  ;;  %vm2454_vm7 = vmor %vm2452_vm2, %vm2453_vm1  ;;  %vm2462_vm9 = vweird.f32 %v2445_v56  ;;  %2667 = vmatpush.bf16.msrb.mxu1 %v3023_v47 }
0x15f7   :  { %v2448_v26 = vmul.f32 %v3200_v51, %v2447_v53 }
0x15f9   :  { %v2449_v54 = vmul.f32 0.5, %v2448_v26 }
0x15fb   :  { %v2450_v57 = vsub.f32 1.5, %v2449_v54 }
0x15fc   :  { %v3202_v58 = vpop.eup %3201 }
0x15fd   :  { %v2451_v59 = vmul.f32 %v3200_v51, %v2450_v57  ;;  %v2457_v38 = vmul.f32 %v3202_v58, %v2445_v56  ;;  %vm2463_vm8 = vweird.f32 %v3202_v58 }
0x15fe   :  { %vm2464_vm10 = vmor %vm2462_vm9, %vm2463_vm8 }
0x15ff   :  { %v2458_v62 = vmul.f32 %v3202_v58, %v2457_v38  ;;  %v2455_v0 = vsel %vm2454_vm7, %v3200_v51, %v2451_v59 }
0x1600   :  { %v2466_v6 = vmul.f32 %v2455_v0, %v2432_v52 }
0x1601   :  { %v2459_v63 = vmul.f32 0.5, %v2458_v62 }
0x1602   :  { %v2471_v1 = vmul.f32 %v3110_v4, %v2466_v6 }
0x1603   :  { %v2460_v2 = vsub.f32 1.5, %v2459_v63 }
0x1604   :  { %v2476_v7 = vadd.f32 %v3111_v10, %v2471_v1 }
0x1605   :  { %v2461_v61 = vmul.f32 %v3202_v58, %v2460_v2 }
0x1607   :  { %v2465_v9 = vsel %vm2464_vm10, %v3202_v58, %v2461_v61  ;;  %v3115_v61 = vld [vmem:[%s3944_s5 + $0x1] ss:$0 sm:$0xff]  ;;  %s3803_s5 = smov [#allocation34]  }
0x1608   :  { %v2467_v5 = vmul.f32 %v2465_v9, %v2433_v45 }
0x160a   :  { %v2472_v3 = vmul.f32 %v3110_v4, %v2467_v5 }
0x160c   :  { %v2477_v11 = vadd.f32 %v3111_v10, %v2472_v3 }
0x160e   :  { %v2483_v21 = vpack.c.bf16 %v2477_v11, %v2476_v7 }
0x1610   :  { %2954 = vmatmul.msk.bf16.vlgmr.msra.gmra.mxu3 %vm500_vm3, %v2483_v21 }
0x1693   :  { %v2513_v15 = vpop.f32.mrf.mxu3 }
0x1694   :  { %v2514_v22 = vadd.f32 %v3112_v16, %v2513_v15 }
0x1696   :  { %v2518_v20 = vmax.f32 %v2514_v22, 0.0 }
0x169b   :  { %v2515_v17 = vpop.f32.mrf.mxu3 }
0x169c   :  { %v2516_v19 = vadd.f32 %v3112_v16, %v2515_v17 }
0x169e   :  { %v2519_v23 = vmax.f32 %v2516_v19, 0.0 }
0x16a0   :  { %v2529_v24 = vpack.c.bf16 %v2519_v23, %v2518_v20 }
0x16a2   :  { %2979 = vmatmul.msk.bf16.vlgmr.msra.gmra.mxu0 %vm1478_vm6, %v2529_v24 }
0x171f   :  { %v2571_v27 = vpop.f32.mrf.mxu0 }
0x1720   :  { %v2572_v29 = vadd.f32 %v3113_v25, %v2571_v27 }
0x1722   :  { %v2576_v41 = vadd.f32 %v2572_v29, %v2476_v7 }
0x1724   :  { %v2582_v31 = vsel %vm500_vm3, %v2576_v41, 0.0 }
0x1725   :  { %2583 = vadd.xlane.f32.xlu2 %v2582_v31 }
0x1727   :  { %v2573_v36 = vpop.f32.mrf.mxu0 }
0x1728   :  { %v2574_v8 = vadd.f32 %v3113_v25, %v2573_v36 }
0x172a   :  { %v2577_v32 = vadd.f32 %v2574_v8, %v2477_v11  ;;  %v3116_v11 = vld [vmem:[%s3954_s29] ss:$0 sm:$0xff]  ;;  %s2700_s29 = sshll.u32 %s3803_s5, 4  ;;  %s2701_s29 = int_to_ptr.vmem [resolvable:$true] %s2700_s29 }
0x172c   :  { %v2585_v28 = vsel %vm500_vm3, %v2577_v32, 0.0 }
0x172d   :  { %2586 = vadd.xlane.f32.xlu1 %v2585_v28 }
0x1798   :  { %v2584_v39 = vpop.xlane.xlu2 %2583 }
0x1799   :  { %v2588_v40 = vmul.f32 %v2584_v39, %v4279_v18 }
0x179b   :  { %v2590_v42 = vsub.f32 %v2576_v41, %v2588_v40 }
0x179d   :  { %v2592_v52 = vmul.f32 %v2590_v42, %v2590_v42 }
0x179f   :  { %v2594_v43 = vsel %vm500_vm3, %v2592_v52, 0.0 }
0x17a0   :  { %v2587_v44 = vpop.xlane.xlu1 %2586  ;;  %2595 = vadd.xlane.f32.xlu0 %v2594_v43 }
0x17a1   :  { %v2589_v33 = vmul.f32 %v2587_v44, %v4279_v18 }
0x17a3   :  { %v2591_v37 = vsub.f32 %v2577_v32, %v2589_v33 }
0x17a5   :  { %v2593_v45 = vmul.f32 %v2591_v37, %v2591_v37 }
0x17a7   :  { %v2597_v34 = vsel %vm500_vm3, %v2593_v45, 0.0 }
0x17a8   :  { %2598 = vadd.xlane.f32.xlu2 %v2597_v34 }
0x1813   :  { %v2596_v35 = vpop.xlane.xlu0 %2595 }
0x1814   :  { %v2600_v46 = vmul.f32 %v2596_v35, %v4279_v18 }
0x1816   :  { %v2602_v55 = vadd.f32 1e-05, %v2600_v46 }
0x1818   :  { %3203 = vrsqrt.f32 %v2602_v55  ;;  %vm2610_vm11 = vweird.f32 %v2602_v55 }
0x181b   :  { %v2599_v48 = vpop.xlane.xlu2 %2598 }
0x181c   :  { %v2601_v49 = vmul.f32 %v2599_v48, %v4279_v18  ;;  %v3114_v18 = vld [vmem:[#allocation31 + $0x1] ss:$0 sm:$0xff] }
0x181e   :  { %v3204_v50 = vpop.eup %3203  ;;  %v2603_v51 = vadd.f32 1e-05, %v2601_v49 }
0x181f   :  { %v2605_v56 = vmul.f32 %v3204_v50, %v2602_v55  ;;  %vm2611_vm6 = vweird.f32 %v3204_v50 }
0x1820   :  { %3205 = vrsqrt.f32 %v2603_v51  ;;  %vm2612_vm12 = vmor %vm2610_vm11, %vm2611_vm6  ;;  %vm2620_vm5 = vweird.f32 %v2603_v51 }
0x1821   :  { %v2606_v53 = vmul.f32 %v3204_v50, %v2605_v56 }
0x1823   :  { %v2607_v26 = vmul.f32 0.5, %v2606_v53 }
0x1825   :  { %v2608_v54 = vsub.f32 1.5, %v2607_v26 }
0x1826   :  { %v3206_v57 = vpop.eup %3205 }
0x1827   :  { %v2609_v58 = vmul.f32 %v3204_v50, %v2608_v54  ;;  %v2615_v59 = vmul.f32 %v3206_v57, %v2603_v51  ;;  %vm2621_vm4 = vweird.f32 %v3206_v57 }
0x1828   :  { %vm2622_vm13 = vmor %vm2620_vm5, %vm2621_vm4 }
0x1829   :  { %v2616_v38 = vmul.f32 %v3206_v57, %v2615_v59  ;;  %v2613_v62 = vsel %vm2612_vm12, %v3204_v50, %v2609_v58 }
0x182a   :  { %v2624_v2 = vmul.f32 %v2613_v62, %v2590_v42 }
0x182b   :  { %v2617_v0 = vmul.f32 0.5, %v2616_v38 }
0x182c   :  { %v2629_v9 = vmul.f32 %v3114_v18, %v2624_v2 }
0x182d   :  { %v2618_v63 = vsub.f32 1.5, %v2617_v0 }
0x182e   :  { %v2634_v5 = vadd.f32 %v3115_v61, %v2629_v9 }
0x182f   :  { %v2619_v4 = vmul.f32 %v3206_v57, %v2618_v63 }
0x1831   :  { %v2623_v6 = vsel %vm2622_vm13, %v3206_v57, %v2619_v4 }
0x1832   :  { %v2625_v10 = vmul.f32 %v2623_v6, %v2591_v37 }
0x1834   :  { %v2630_v1 = vmul.f32 %v3114_v18, %v2625_v10 }
0x1836   :  { %v2635_v3 = vadd.f32 %v3115_v61, %v2630_v1 }
0x1838   :  { %v2640_v7 = vpack.c.bf16 %v2635_v3, %v2634_v5 }
0x183a   :  { %2989 = vmatmul.msk.bf16.vlgmr.msrb.gmra.mxu1 %vm500_vm3, %v2640_v7 }
0x18b7   :  { %v2669_v21 = vpop.f32.mrf.mxu1 }
0x18b8   :  { %v2670_v12 = vadd.f32 %v3116_v11, %v2669_v21 }
0x18ba   :  { %2674 = vmax.xlane.f32.xlu1 %v2670_v12 }
0x18bf   :  { %v2671_v13 = vpop.f32.mrf.mxu1 }
0x18c0   :  { %v2672_v60 = vadd.f32 %v3116_v11, %v2671_v13 }
0x18c2   :  { %2676 = vmax.xlane.f32.xlu0 %v2672_v60 }
0x192d   :  { %v2675_v14 = vpop.xlane.xlu1 %2674 }
0x192e   :  { %v2678_v15 = vsub.f32 %v2670_v12, %v2675_v14 }
0x1930   :  { %v2680_v16 = vmul.f32 1.442695, %v2678_v15 }
0x1932   :  { %3207 = vpow2.f32 %v2680_v16 }
0x1935   :  { %v2677_v22 = vpop.xlane.xlu0 %2676 }
0x1936   :  { %v2679_v17 = vsub.f32 %v2672_v60, %v2677_v22 }
0x1938   :  { %v3208_v19 = vpop.eup %3207  ;;  %v2682_v20 = vmul.f32 1.442695, %v2679_v17 }
0x1939   :  { %2684 = vadd.xlane.f32.xlu2 %v3208_v19 }
0x193a   :  { %3209 = vpow2.f32 %v2682_v20 }
0x1940   :  { %v3210_v23 = vpop.eup %3209 }
0x1941   :  { %2686 = vadd.xlane.f32.xlu1 %v3210_v23 }
0x19ac   :  { %v2685_v24 = vpop.xlane.xlu2 %2684 }
0x19ad   :  { %3211 = vlog2.f32 %v2685_v24 }
0x19b3   :  { %v3212_v25 = vpop.eup %3211 }
0x19b4   :  { %v2689_v27 = vmul.f32 0.6931472, %v3212_v25  ;;  %v2687_v29 = vpop.xlane.xlu1 %2686 }
0x19b5   :  { %3213 = vlog2.f32 %v2687_v29 }
0x19b6   :  { %v2692_v41 = vsub.f32 %v2678_v15, %v2689_v27 }
0x19b8   :  { %2694 = vst [vmem:[#allocation34] sm:$0xff] %v2692_v41 }
0x19bb   :  { %v3214_v31 = vpop.eup %3213 }
0x19bc   :  { %v2691_v36 = vmul.f32 0.6931472, %v3214_v31 }
0x19be   :  { %v2693_v8 = vsub.f32 %v2679_v17, %v2691_v36 }
0x19c0   :  { %2695 = vst [vmem:[#allocation34 + $0x8] sm:$0xff] %v2693_v8 }
0x19c1   :  { %3719 = shalt.err (!%p3716_p6)
}
0x19c2   :  { %s3804_s30 = smov 128   ;;  %s3805_s15 = smov 8  }
0x19c3   :  { %2708 = dma.vmem_to_hbm [thread:$0]  %s2701_s29, 256, %s2703_s0, [#allocation4], %s3804_s30, %s3804_s30, %s3805_s15  }
0x19c4   :  { %3742 = dma.done.wait [#allocation4], 256  }
0x19c5   :  { %3743 = vsyncadd [#allocation4], 4294967040 }
0x19c6   :  { %2713 = vsyncpa [#allocation3], 1 }
0x19c7   :  { %2714 = vsyncpa [#allocation6], 1 }
0x19c8   :  { %2715 = vsyncpa [#allocation9], 1 }
0x19c9   :  { %2716 = vsyncpa [#allocation12], 1 }
0x19ca   :  { %2717 = vsyncpa [#allocation15], 1 }
0x19cb   :  { %2718 = vsyncpa [#allocation18], 1 }
0x19cc   :  { %2719 = vsyncpa [#allocation21], 1 }
0x19cd   :  { %2720 = vsyncpa [#allocation24], 1 }
0x19ce   :  { %2721 = vsyncpa [#allocation27], 1 }
0x19cf   :  { %2722 = vsyncpa [#allocation30], 1 }
0x19d0   :  { %2723 = vsyncpa [#allocation33], 1 }
0x19d1   :  { %2724 = vsyncpa [#allocation4], 1 }

</bundles_post_ra>
